<compile_context>
chip_gen: v5e
topology: v5e:2x2
jax: 0.10.0
libtpu: 0.0.40
codegen_flags: <defaults>
</compile_context>

<pallas_src>
import functools
import math

import jax
import jax.numpy as jnp
from jax import lax
from jax.experimental import pallas as pl
from jax.experimental.pallas import tpu as pltpu

LN_EPS = 1e-5


# ----------------------------------------------------------------------------
# In-kernel helpers (operate on values, not refs)
# ----------------------------------------------------------------------------
def _layer_norm(y, g, b):
    mu = jnp.mean(y, axis=-1, keepdims=True)
    var = jnp.mean((y - mu) ** 2, axis=-1, keepdims=True)
    return (y - mu) * lax.rsqrt(var + LN_EPS) * g + b


def _cross_block(x, kv, wq, wk, wv, wo, w1, w2, b1, vec, *, bb, seq, num_heads):
    """MHA(q=x, kv=kv) + residual + LN + FFN(GELU) + residual + LN.

    x, kv: (bb*seq, D) sublane-stacked batch rows.  `vec` rows:
      0:bq(scaled) 1:bk 2:bv 3:bo 4:g1 5:be1 6:b2 7:g2 8:be2
    """
    D = x.shape[-1]
    H = num_heads
    hd = D // H
    S = seq

    bq, bk, bv, bo = vec[0:1], vec[1:2], vec[2:3], vec[3:4]
    g1, be1, b2, g2, be2 = vec[4:5], vec[5:6], vec[6:7], vec[7:8], vec[8:9]

    # --- three clean matmuls; 1/sqrt(hd) already folded into wq / bq host-side ---
    q = jnp.dot(x, wq, preferred_element_type=jnp.float32) + bq     # (bb*S, D)
    k = jnp.dot(kv, wk, preferred_element_type=jnp.float32) + bk    # (bb*S, D)
    v = jnp.dot(kv, wv, preferred_element_type=jnp.float32) + bv    # (bb*S, D)

    # --- per-(batch, head) scores, sublane-packed; one softmax for everything ---
    nt_dims = (((1,), (1,)), ((), ()))   # contract last dims of both operands
    scores = []
    for i in range(bb):
        for h in range(H):
            qh = q[i * S:(i + 1) * S, h * hd:(h + 1) * hd]
            kh = k[i * S:(i + 1) * S, h * hd:(h + 1) * hd]
            scores.append(lax.dot_general(qh, kh, nt_dims,
                                          preferred_element_type=jnp.float32))
    s_pack = scores[0] if len(scores) == 1 else jnp.concatenate(scores, axis=0)
    s_pack = s_pack - jnp.max(s_pack, axis=-1, keepdims=True)
    e = jnp.exp(s_pack)
    p_pack = e * pl.reciprocal(jnp.sum(e, axis=-1, keepdims=True), approx=False)

    # --- P@V per (batch, head); heads lane-concatenated so the output projection
    #     is a single (bb*S, D) @ (D, D) matmul ---
    rows = []
    for i in range(bb):
        heads = []
        for h in range(H):
            idx = i * H + h
            p = p_pack[idx * S:(idx + 1) * S, :]
            vh = v[i * S:(i + 1) * S, h * hd:(h + 1) * hd]
            heads.append(jnp.dot(p, vh, preferred_element_type=jnp.float32))
        rows.append(heads[0] if H == 1 else jnp.concatenate(heads, axis=-1))
    attn = rows[0] if bb == 1 else jnp.concatenate(rows, axis=0)             # (bb*S, D)
    attn = jnp.dot(attn, wo, preferred_element_type=jnp.float32) + bo

    x1 = _layer_norm(x + attn, g1, be1)

    h1 = jnp.dot(x1, w1, preferred_element_type=jnp.float32) + b1
    h1 = 0.5 * h1 * (1.0 + lax.erf(h1 * (1.0 / math.sqrt(2.0))))             # exact GELU
    ffn = jnp.dot(h1, w2, preferred_element_type=jnp.float32) + b2
    return _layer_norm(x1 + ffn, g2, be2)


# ----------------------------------------------------------------------------
# Fused kernel: bb batch elements per grid step, everything resident in VMEM
# ----------------------------------------------------------------------------
def _fused_kernel(bb, num_blocks, num_heads,
                  a_ref, b_ref, pos_a_ref, pos_b_ref,
                  wa_ref, ba_ref, wb_ref, bpb_ref,
                  wq_ref, wk_ref, wv_ref, wo_ref, w1_ref, w2_ref,
                  vec_ref, b1_ref, gn_ref, bn_ref,
                  o_ref):
    S = a_ref.shape[1]

    def stack_batch(x_ref, pos_ref):
        pos = pos_ref[0]                                          # (S, Din)
        rows = [x_ref[i] + pos for i in range(bb)]
        return rows[0] if bb == 1 else jnp.concatenate(rows, axis=0)

    # pos-embed add + input projections (activations stay in VMEM/vregs from here on)
    a = stack_batch(a_ref, pos_a_ref)                             # (bb*S, Din)
    b = stack_batch(b_ref, pos_b_ref)
    a = jnp.dot(a, wa_ref[...], preferred_element_type=jnp.float32) + ba_ref[...]
    b = jnp.dot(b, wb_ref[...], preferred_element_type=jnp.float32) + bpb_ref[...]

    # interleaved bidirectional cross blocks: even = a2b (updates a), odd = b2a (updates b)
    for l in range(num_blocks):
        args = (wq_ref[l], wk_ref[l], wv_ref[l], wo_ref[l],
                w1_ref[l], w2_ref[l], b1_ref[l], vec_ref[l])
        if l % 2 == 0:
            a = _cross_block(a, b, *args, bb=bb, seq=S, num_heads=num_heads)
        else:
            b = _cross_block(b, a, *args, bb=bb, seq=S, num_heads=num_heads)

    fused = _layer_norm(a, gn_ref[...], bn_ref[...])              # (bb*S, D)
    for i in range(bb):
        o_ref[i] = fused[i * S:(i + 1) * S, :]


# ----------------------------------------------------------------------------
# Wrapper
# ----------------------------------------------------------------------------
def _default_batch_block(batch):
    """Single-TC chips (v5e/v6e/...): fold the whole batch into one grid step.
    Multi-TC chips (v4/v5p/v7x): keep batch as a parallel grid axis."""
    try:
        kind = jax.devices()[0].device_kind.lower()
    except Exception:
        return batch
    multi_tc = any(tag in kind for tag in ("v4", "v5p", "v7"))
    return 1 if multi_tc else batch


def eeg_fusion_forward(a, b, params, num_heads, *, batch_block=None):
    B, S, Din = a.shape
    D = params["proj_a_w"].shape[1]
    assert D % num_heads == 0
    hd = D // num_heads
    scale = 1.0 / math.sqrt(hd)

    if batch_block is None:
        batch_block = _default_batch_block(B)
    assert B % batch_block == 0
    grid = (B // batch_block,)

    # interleave blocks in execution order and stack weights (layer axis leading)
    blocks = []
    for pa, pb in zip(params["a2b"], params["b2a"]):
        blocks.append(pa)
        blocks.append(pb)
    nb = len(blocks)

    wq = jnp.stack([p["wq"] * scale for p in blocks])             # scale folded in
    wk = jnp.stack([p["wk"] for p in blocks])
    wv = jnp.stack([p["wv"] for p in blocks])
    wo = jnp.stack([p["wo"] for p in blocks])
    w1 = jnp.stack([p["w1"] for p in blocks])
    w2 = jnp.stack([p["w2"] for p in blocks])
    b1 = jnp.stack([p["b1"] for p in blocks])                     # (nb, 1, 4D)
    # coalesce all (1, D)-wide per-block vectors into one (nb, 9, D) array
    vecs = jnp.stack([jnp.concatenate(
        [p["bq"] * scale, p["bk"], p["bv"], p["bo"],
         p["g1"], p["be1"], p["b2"], p["g2"], p["be2"]], axis=0) for p in blocks])

    ins = [a, b, params["pos_a"], params["pos_b"],
           params["proj_a_w"], params["proj_a_b"],
           params["proj_b_w"], params["proj_b_b"],
           wq, wk, wv, wo, w1, w2, vecs, b1,
           params["norm_g"], params["norm_b"]]

    def const_spec(arr):
        nd = arr.ndim
        return pl.BlockSpec(arr.shape, lambda i, _nd=nd: (0,) * _nd)

    in_specs = ([pl.BlockSpec((batch_block, S, Din), lambda i: (i, 0, 0)),
                 pl.BlockSpec((batch_block, S, Din), lambda i: (i, 0, 0))]
                + [const_spec(w) for w in ins[2:]])

    return pl.pallas_call(
        functools.partial(_fused_kernel, batch_block, nb, num_heads),
        out_shape=jax.ShapeDtypeStruct((B, S, D), jnp.float32),
        grid=grid,
        in_specs=in_specs,
        out_specs=pl.BlockSpec((batch_block, S, D), lambda i: (i, 0, 0)),
        compiler_params=pltpu.CompilerParams(dimension_semantics=("parallel",)),
    )(*ins)


# ----------------------------------------------------------------------------
# Parameter construction (deterministic, synthetic)
# ----------------------------------------------------------------------------
def _make_block_params(key, dim):
    ks = jax.random.split(key, 8)
    n = lambda k, shp: (0.02 * jax.random.normal(k, shp)).astype(jnp.float32)
    return {
        "wq": n(ks[0], (dim, dim)), "bq": n(ks[1], (1, dim)),
        "wk": n(ks[2], (dim, dim)), "bk": n(ks[3], (1, dim)),
        "wv": n(ks[4], (dim, dim)), "bv": n(ks[5], (1, dim)),
        "wo": n(ks[6], (dim, dim)), "bo": jnp.zeros((1, dim), jnp.float32),
        "g1": jnp.ones((1, dim), jnp.float32), "be1": jnp.zeros((1, dim), jnp.float32),
        "w1": n(ks[7], (dim, 4 * dim)), "b1": jnp.zeros((1, 4 * dim), jnp.float32),
        "w2": n(jax.random.fold_in(key, 99), (4 * dim, dim)),
        "b2": jnp.zeros((1, dim), jnp.float32),
        "g2": jnp.ones((1, dim), jnp.float32), "be2": jnp.zeros((1, dim), jnp.float32),
    }


def make_params(key, input_dim, fusion_dim, seq_len, num_layers):
    keys = jax.random.split(key, 6 + 2 * num_layers)
    n = lambda k, shp: (0.02 * jax.random.normal(k, shp)).astype(jnp.float32)
    return {
        "pos_a": n(keys[0], (1, seq_len, input_dim)),
        "pos_b": n(keys[1], (1, seq_len, input_dim)),
        "proj_a_w": n(keys[2], (input_dim, fusion_dim)),
        "proj_a_b": n(keys[3], (1, fusion_dim)),
        "proj_b_w": n(keys[4], (input_dim, fusion_dim)),
        "proj_b_b": n(keys[5], (1, fusion_dim)),
        "norm_g": jnp.ones((1, fusion_dim), jnp.float32),
        "norm_b": jnp.zeros((1, fusion_dim), jnp.float32),
        "a2b": [_make_block_params(keys[6 + i], fusion_dim) for i in range(num_layers)],
        "b2a": [_make_block_params(keys[6 + num_layers + i], fusion_dim)
                for i in range(num_layers)],
    }


# ----------------------------------------------------------------------------
# Pure-JAX reference (independent formulation, unscaled weights)
# ----------------------------------------------------------------------------
def _ref_ln(y, g, b):
    mu = jnp.mean(y, axis=-1, keepdims=True)
    var = jnp.mean((y - mu) ** 2, axis=-1, keepdims=True)
    return (y - mu) / jnp.sqrt(var + LN_EPS) * g + b


def _ref_block(x, kv, p, num_heads):
    B, S, D = x.shape
    hd = D // num_heads
    q = x @ p["wq"] + p["bq"]
    k = kv @ p["wk"] + p["bk"]
    v = kv @ p["wv"] + p["bv"]
    q = q.reshape(B, S, num_heads, hd).transpose(0, 2, 1, 3)
    k = k.reshape(B, S, num_heads, hd).transpose(0, 2, 1, 3)
    v = v.reshape(B, S, num_heads, hd).transpose(0, 2, 1, 3)
    s = jnp.einsum("bhqd,bhkd->bhqk", q, k) / math.sqrt(hd)
    pmat = jax.nn.softmax(s, axis=-1)
    o = jnp.einsum("bhqk,bhkd->bhqd", pmat, v).transpose(0, 2, 1, 3).reshape(B, S, D)
    o = o @ p["wo"] + p["bo"]
    x1 = _ref_ln(x + o, p["g1"], p["be1"])
    h = x1 @ p["w1"] + p["b1"]
    h = 0.5 * h * (1.0 + lax.erf(h / math.sqrt(2.0)))
    f = h @ p["w2"] + p["b2"]
    return _ref_ln(x1 + f, p["g2"], p["be2"])


def eeg_fusion_ref(a, b, params, num_heads):
    a = (a + params["pos_a"]) @ params["proj_a_w"] + params["proj_a_b"]
    b = (b + params["pos_b"]) @ params["proj_b_w"] + params["proj_b_b"]
    for pa, pb in zip(params["a2b"], params["b2a"]):
        a = _ref_block(a, b, pa, num_heads)
        b = _ref_block(b, a, pb, num_heads)
    return _ref_ln(a, params["norm_g"], params["norm_b"])


# ----------------------------------------------------------------------------
if __name__ == "__main__":
    B, S, INPUT_DIM, FUSION_DIM, NUM_HEADS, NUM_LAYERS = 2, 8, 16, 32, 4, 2

    key = jax.random.PRNGKey(0)
    ka, kb, kp = jax.random.split(key, 3)
    a = jax.random.normal(ka, (B, S, INPUT_DIM), dtype=jnp.float32)
    b = jax.random.normal(kb, (B, S, INPUT_DIM), dtype=jnp.float32)
    params = make_params(kp, INPUT_DIM, FUSION_DIM, S, NUM_LAYERS)

    out = eeg_fusion_forward(a, b, params, NUM_HEADS)
    out = jax.block_until_ready(out)

    ref = eeg_fusion_ref(a, b, params, NUM_HEADS)
    assert out.shape == (B, S, FUSION_DIM)
    assert jnp.allclose(out, ref, atol=1e-4, rtol=1e-4), "mismatch vs pure-JAX reference"

    print("KERNEL_OK")
</pallas_src>

<mosaic_0001>
module attributes {stable_mosaic.version = 11 : i64} {
  func.func @_fused_kernel(%arg0: i32, %arg1: memref<2x8x16xf32, #tpu.memory_space<vmem>>, %arg2: memref<2x8x16xf32, #tpu.memory_space<vmem>>, %arg3: memref<1x8x16xf32, #tpu.memory_space<vmem>>, %arg4: memref<1x8x16xf32, #tpu.memory_space<vmem>>, %arg5: memref<16x32xf32, #tpu.memory_space<vmem>>, %arg6: memref<1x32xf32, #tpu.memory_space<vmem>>, %arg7: memref<16x32xf32, #tpu.memory_space<vmem>>, %arg8: memref<1x32xf32, #tpu.memory_space<vmem>>, %arg9: memref<4x32x32xf32, #tpu.memory_space<vmem>>, %arg10: memref<4x32x32xf32, #tpu.memory_space<vmem>>, %arg11: memref<4x32x32xf32, #tpu.memory_space<vmem>>, %arg12: memref<4x32x32xf32, #tpu.memory_space<vmem>>, %arg13: memref<4x32x128xf32, #tpu.memory_space<vmem>>, %arg14: memref<4x128x32xf32, #tpu.memory_space<vmem>>, %arg15: memref<4x9x32xf32, #tpu.memory_space<vmem>>, %arg16: memref<4x1x128xf32, #tpu.memory_space<vmem>>, %arg17: memref<1x32xf32, #tpu.memory_space<vmem>>, %arg18: memref<1x32xf32, #tpu.memory_space<vmem>>, %arg19: memref<2x8x32xf32, #tpu.memory_space<vmem>>) attributes {dimension_semantics = [#tpu.dimension_semantics<parallel>], iteration_bounds = array<i64: 1>, scalar_prefetch = 0 : i64, scratch_operands = 0 : i64, tpu.core_type = #tpu.core_type<tc>, window_params = [{transform_indices = @transform_0, window_bounds = array<i64: 2, 8, 16>}, {transform_indices = @transform_1, window_bounds = array<i64: 2, 8, 16>}, {pipeline_mode = #tpu.pipeline_mode<synchronous>, transform_indices = @transform_2, window_bounds = array<i64: 1, 8, 16>}, {pipeline_mode = #tpu.pipeline_mode<synchronous>, transform_indices = @transform_3, window_bounds = array<i64: 1, 8, 16>}, {pipeline_mode = #tpu.pipeline_mode<synchronous>, transform_indices = @transform_4, window_bounds = array<i64: 16, 32>}, {pipeline_mode = #tpu.pipeline_mode<synchronous>, transform_indices = @transform_5, window_bounds = array<i64: 1, 32>}, {pipeline_mode = #tpu.pipeline_mode<synchronous>, transform_indices = @transform_6, window_bounds = array<i64: 16, 32>}, {pipeline_mode = #tpu.pipeline_mode<synchronous>, transform_indices = @transform_7, window_bounds = array<i64: 1, 32>}, {pipeline_mode = #tpu.pipeline_mode<synchronous>, transform_indices = @transform_8, window_bounds = array<i64: 4, 32, 32>}, {pipeline_mode = #tpu.pipeline_mode<synchronous>, transform_indices = @transform_9, window_bounds = array<i64: 4, 32, 32>}, {pipeline_mode = #tpu.pipeline_mode<synchronous>, transform_indices = @transform_10, window_bounds = array<i64: 4, 32, 32>}, {pipeline_mode = #tpu.pipeline_mode<synchronous>, transform_indices = @transform_11, window_bounds = array<i64: 4, 32, 32>}, {pipeline_mode = #tpu.pipeline_mode<synchronous>, transform_indices = @transform_12, window_bounds = array<i64: 4, 32, 128>}, {pipeline_mode = #tpu.pipeline_mode<synchronous>, transform_indices = @transform_13, window_bounds = array<i64: 4, 128, 32>}, {pipeline_mode = #tpu.pipeline_mode<synchronous>, transform_indices = @transform_14, window_bounds = array<i64: 4, 9, 32>}, {pipeline_mode = #tpu.pipeline_mode<synchronous>, transform_indices = @transform_15, window_bounds = array<i64: 4, 1, 128>}, {pipeline_mode = #tpu.pipeline_mode<synchronous>, transform_indices = @transform_16, window_bounds = array<i64: 1, 32>}, {pipeline_mode = #tpu.pipeline_mode<synchronous>, transform_indices = @transform_17, window_bounds = array<i64: 1, 32>}, {transform_indices = @transform_18, window_bounds = array<i64: 2, 8, 32>}]} {
    %c0 = arith.constant 0 : index
    %c0_0 = arith.constant 0 : index
    %c0_1 = arith.constant 0 : index
    %0 = vector.load %arg3[%c0, %c0_0, %c0_1] : memref<1x8x16xf32, #tpu.memory_space<vmem>>, vector<1x8x16xf32>
    %1 = vector.shape_cast %0 : vector<1x8x16xf32> to vector<8x16xf32>
    %c0_2 = arith.constant 0 : index
    %c0_3 = arith.constant 0 : index
    %c0_4 = arith.constant 0 : index
    %2 = vector.load %arg1[%c0_2, %c0_3, %c0_4] : memref<2x8x16xf32, #tpu.memory_space<vmem>>, vector<1x8x16xf32>
    %3 = vector.shape_cast %2 : vector<1x8x16xf32> to vector<8x16xf32>
    %4 = arith.addf %3, %1 : vector<8x16xf32>
    %c1 = arith.constant 1 : index
    %c0_5 = arith.constant 0 : index
    %c0_6 = arith.constant 0 : index
    %5 = vector.load %arg1[%c1, %c0_5, %c0_6] : memref<2x8x16xf32, #tpu.memory_space<vmem>>, vector<1x8x16xf32>
    %6 = vector.shape_cast %5 : vector<1x8x16xf32> to vector<8x16xf32>
    %7 = arith.addf %6, %1 : vector<8x16xf32>
    %8 = tpu.concatenate %4, %7 in 0 : vector<8x16xf32>, vector<8x16xf32> -> vector<16x16xf32>
    %c0_7 = arith.constant 0 : index
    %c0_8 = arith.constant 0 : index
    %c0_9 = arith.constant 0 : index
    %9 = vector.load %arg4[%c0_7, %c0_8, %c0_9] : memref<1x8x16xf32, #tpu.memory_space<vmem>>, vector<1x8x16xf32>
    %10 = vector.shape_cast %9 : vector<1x8x16xf32> to vector<8x16xf32>
    %c0_10 = arith.constant 0 : index
    %c0_11 = arith.constant 0 : index
    %c0_12 = arith.constant 0 : index
    %11 = vector.load %arg2[%c0_10, %c0_11, %c0_12] : memref<2x8x16xf32, #tpu.memory_space<vmem>>, vector<1x8x16xf32>
    %12 = vector.shape_cast %11 : vector<1x8x16xf32> to vector<8x16xf32>
    %13 = arith.addf %12, %10 : vector<8x16xf32>
    %c1_13 = arith.constant 1 : index
    %c0_14 = arith.constant 0 : index
    %c0_15 = arith.constant 0 : index
    %14 = vector.load %arg2[%c1_13, %c0_14, %c0_15] : memref<2x8x16xf32, #tpu.memory_space<vmem>>, vector<1x8x16xf32>
    %15 = vector.shape_cast %14 : vector<1x8x16xf32> to vector<8x16xf32>
    %16 = arith.addf %15, %10 : vector<8x16xf32>
    %17 = tpu.concatenate %13, %16 in 0 : vector<8x16xf32>, vector<8x16xf32> -> vector<16x16xf32>
    %c0_16 = arith.constant 0 : index
    %c0_17 = arith.constant 0 : index
    %18 = vector.load %arg5[%c0_16, %c0_17] : memref<16x32xf32, #tpu.memory_space<vmem>>, vector<16x32xf32>
    %cst = arith.constant dense<0.000000e+00> : vector<16x32xf32>
    %19 = tpu.matmul %8, %18, %cst {dimension_numbers = #tpu.dot_dimension_numbers<[1], [0], [0], [1], [0, 0, 1, 1], [], []>} : vector<16x16xf32>, vector<16x32xf32>, vector<16x32xf32> -> vector<16x32xf32>
    %c0_18 = arith.constant 0 : index
    %c0_19 = arith.constant 0 : index
    %20 = vector.load %arg6[%c0_18, %c0_19] : memref<1x32xf32, #tpu.memory_space<vmem>>, vector<1x32xf32>
    %21 = vector.broadcast %20 : vector<1x32xf32> to vector<16x32xf32>
    %22 = arith.addf %19, %21 : vector<16x32xf32>
    %c0_20 = arith.constant 0 : index
    %c0_21 = arith.constant 0 : index
    %23 = vector.load %arg7[%c0_20, %c0_21] : memref<16x32xf32, #tpu.memory_space<vmem>>, vector<16x32xf32>
    %cst_22 = arith.constant dense<0.000000e+00> : vector<16x32xf32>
    %24 = tpu.matmul %17, %23, %cst_22 {dimension_numbers = #tpu.dot_dimension_numbers<[1], [0], [0], [1], [0, 0, 1, 1], [], []>} : vector<16x16xf32>, vector<16x32xf32>, vector<16x32xf32> -> vector<16x32xf32>
    %c0_23 = arith.constant 0 : index
    %c0_24 = arith.constant 0 : index
    %25 = vector.load %arg8[%c0_23, %c0_24] : memref<1x32xf32, #tpu.memory_space<vmem>>, vector<1x32xf32>
    %26 = vector.broadcast %25 : vector<1x32xf32> to vector<16x32xf32>
    %27 = arith.addf %24, %26 : vector<16x32xf32>
    %c0_25 = arith.constant 0 : index
    %c0_26 = arith.constant 0 : index
    %c0_27 = arith.constant 0 : index
    %28 = vector.load %arg9[%c0_25, %c0_26, %c0_27] : memref<4x32x32xf32, #tpu.memory_space<vmem>>, vector<1x32x32xf32>
    %29 = vector.shape_cast %28 : vector<1x32x32xf32> to vector<32x32xf32>
    %c0_28 = arith.constant 0 : index
    %c0_29 = arith.constant 0 : index
    %c0_30 = arith.constant 0 : index
    %30 = vector.load %arg10[%c0_28, %c0_29, %c0_30] : memref<4x32x32xf32, #tpu.memory_space<vmem>>, vector<1x32x32xf32>
    %31 = vector.shape_cast %30 : vector<1x32x32xf32> to vector<32x32xf32>
    %c0_31 = arith.constant 0 : index
    %c0_32 = arith.constant 0 : index
    %c0_33 = arith.constant 0 : index
    %32 = vector.load %arg11[%c0_31, %c0_32, %c0_33] : memref<4x32x32xf32, #tpu.memory_space<vmem>>, vector<1x32x32xf32>
    %33 = vector.shape_cast %32 : vector<1x32x32xf32> to vector<32x32xf32>
    %c0_34 = arith.constant 0 : index
    %c0_35 = arith.constant 0 : index
    %c0_36 = arith.constant 0 : index
    %34 = vector.load %arg12[%c0_34, %c0_35, %c0_36] : memref<4x32x32xf32, #tpu.memory_space<vmem>>, vector<1x32x32xf32>
    %35 = vector.shape_cast %34 : vector<1x32x32xf32> to vector<32x32xf32>
    %c0_37 = arith.constant 0 : index
    %c0_38 = arith.constant 0 : index
    %c0_39 = arith.constant 0 : index
    %36 = vector.load %arg13[%c0_37, %c0_38, %c0_39] : memref<4x32x128xf32, #tpu.memory_space<vmem>>, vector<1x32x128xf32>
    %37 = vector.shape_cast %36 : vector<1x32x128xf32> to vector<32x128xf32>
    %c0_40 = arith.constant 0 : index
    %c0_41 = arith.constant 0 : index
    %c0_42 = arith.constant 0 : index
    %38 = vector.load %arg14[%c0_40, %c0_41, %c0_42] : memref<4x128x32xf32, #tpu.memory_space<vmem>>, vector<1x128x32xf32>
    %39 = vector.shape_cast %38 : vector<1x128x32xf32> to vector<128x32xf32>
    %c0_43 = arith.constant 0 : index
    %c0_44 = arith.constant 0 : index
    %c0_45 = arith.constant 0 : index
    %40 = vector.load %arg16[%c0_43, %c0_44, %c0_45] : memref<4x1x128xf32, #tpu.memory_space<vmem>>, vector<1x1x128xf32>
    %41 = vector.shape_cast %40 : vector<1x1x128xf32> to vector<1x128xf32>
    %c0_46 = arith.constant 0 : index
    %c0_47 = arith.constant 0 : index
    %c0_48 = arith.constant 0 : index
    %42 = vector.load %arg15[%c0_46, %c0_47, %c0_48] : memref<4x9x32xf32, #tpu.memory_space<vmem>>, vector<1x9x32xf32>
    %43 = vector.shape_cast %42 : vector<1x9x32xf32> to vector<9x32xf32>
    %44 = vector.extract_strided_slice %43 {offsets = [0, 0], sizes = [1, 32], strides = [1, 1]} : vector<9x32xf32> to vector<1x32xf32>
    %45 = vector.extract_strided_slice %43 {offsets = [1, 0], sizes = [1, 32], strides = [1, 1]} : vector<9x32xf32> to vector<1x32xf32>
    %46 = vector.extract_strided_slice %43 {offsets = [2, 0], sizes = [1, 32], strides = [1, 1]} : vector<9x32xf32> to vector<1x32xf32>
    %47 = vector.extract_strided_slice %43 {offsets = [3, 0], sizes = [1, 32], strides = [1, 1]} : vector<9x32xf32> to vector<1x32xf32>
    %48 = vector.extract_strided_slice %43 {offsets = [4, 0], sizes = [1, 32], strides = [1, 1]} : vector<9x32xf32> to vector<1x32xf32>
    %49 = vector.extract_strided_slice %43 {offsets = [5, 0], sizes = [1, 32], strides = [1, 1]} : vector<9x32xf32> to vector<1x32xf32>
    %50 = vector.extract_strided_slice %43 {offsets = [6, 0], sizes = [1, 32], strides = [1, 1]} : vector<9x32xf32> to vector<1x32xf32>
    %51 = vector.extract_strided_slice %43 {offsets = [7, 0], sizes = [1, 32], strides = [1, 1]} : vector<9x32xf32> to vector<1x32xf32>
    %52 = vector.extract_strided_slice %43 {offsets = [8, 0], sizes = [1, 32], strides = [1, 1]} : vector<9x32xf32> to vector<1x32xf32>
    %cst_49 = arith.constant dense<0.000000e+00> : vector<16x32xf32>
    %53 = tpu.matmul %22, %29, %cst_49 {dimension_numbers = #tpu.dot_dimension_numbers<[1], [0], [0], [1], [0, 0, 1, 1], [], []>} : vector<16x32xf32>, vector<32x32xf32>, vector<16x32xf32> -> vector<16x32xf32>
    %54 = vector.broadcast %44 : vector<1x32xf32> to vector<16x32xf32>
    %55 = arith.addf %53, %54 : vector<16x32xf32>
    %cst_50 = arith.constant dense<0.000000e+00> : vector<16x32xf32>
    %56 = tpu.matmul %27, %31, %cst_50 {dimension_numbers = #tpu.dot_dimension_numbers<[1], [0], [0], [1], [0, 0, 1, 1], [], []>} : vector<16x32xf32>, vector<32x32xf32>, vector<16x32xf32> -> vector<16x32xf32>
    %57 = vector.broadcast %45 : vector<1x32xf32> to vector<16x32xf32>
    %58 = arith.addf %56, %57 : vector<16x32xf32>
    %cst_51 = arith.constant dense<0.000000e+00> : vector<16x32xf32>
    %59 = tpu.matmul %27, %33, %cst_51 {dimension_numbers = #tpu.dot_dimension_numbers<[1], [0], [0], [1], [0, 0, 1, 1], [], []>} : vector<16x32xf32>, vector<32x32xf32>, vector<16x32xf32> -> vector<16x32xf32>
    %60 = vector.broadcast %46 : vector<1x32xf32> to vector<16x32xf32>
    %61 = arith.addf %59, %60 : vector<16x32xf32>
    %62 = vector.extract_strided_slice %55 {offsets = [0, 0], sizes = [8, 8], strides = [1, 1]} : vector<16x32xf32> to vector<8x8xf32>
    %63 = vector.extract_strided_slice %58 {offsets = [0, 0], sizes = [8, 8], strides = [1, 1]} : vector<16x32xf32> to vector<8x8xf32>
    %cst_52 = arith.constant dense<0.000000e+00> : vector<8x8xf32>
    %64 = tpu.matmul %62, %63, %cst_52 {dimension_numbers = #tpu.dot_dimension_numbers<[1], [1], [0], [0], [0, 0, 1, 0], [], []>} : vector<8x8xf32>, vector<8x8xf32>, vector<8x8xf32> -> vector<8x8xf32>
    %65 = vector.extract_strided_slice %55 {offsets = [0, 8], sizes = [8, 8], strides = [1, 1]} : vector<16x32xf32> to vector<8x8xf32>
    %66 = vector.extract_strided_slice %58 {offsets = [0, 8], sizes = [8, 8], strides = [1, 1]} : vector<16x32xf32> to vector<8x8xf32>
    %cst_53 = arith.constant dense<0.000000e+00> : vector<8x8xf32>
    %67 = tpu.matmul %65, %66, %cst_53 {dimension_numbers = #tpu.dot_dimension_numbers<[1], [1], [0], [0], [0, 0, 1, 0], [], []>} : vector<8x8xf32>, vector<8x8xf32>, vector<8x8xf32> -> vector<8x8xf32>
    %68 = vector.extract_strided_slice %55 {offsets = [0, 16], sizes = [8, 8], strides = [1, 1]} : vector<16x32xf32> to vector<8x8xf32>
    %69 = vector.extract_strided_slice %58 {offsets = [0, 16], sizes = [8, 8], strides = [1, 1]} : vector<16x32xf32> to vector<8x8xf32>
    %cst_54 = arith.constant dense<0.000000e+00> : vector<8x8xf32>
    %70 = tpu.matmul %68, %69, %cst_54 {dimension_numbers = #tpu.dot_dimension_numbers<[1], [1], [0], [0], [0, 0, 1, 0], [], []>} : vector<8x8xf32>, vector<8x8xf32>, vector<8x8xf32> -> vector<8x8xf32>
    %71 = vector.extract_strided_slice %55 {offsets = [0, 24], sizes = [8, 8], strides = [1, 1]} : vector<16x32xf32> to vector<8x8xf32>
    %72 = vector.extract_strided_slice %58 {offsets = [0, 24], sizes = [8, 8], strides = [1, 1]} : vector<16x32xf32> to vector<8x8xf32>
    %cst_55 = arith.constant dense<0.000000e+00> : vector<8x8xf32>
    %73 = tpu.matmul %71, %72, %cst_55 {dimension_numbers = #tpu.dot_dimension_numbers<[1], [1], [0], [0], [0, 0, 1, 0], [], []>} : vector<8x8xf32>, vector<8x8xf32>, vector<8x8xf32> -> vector<8x8xf32>
    %74 = vector.extract_strided_slice %55 {offsets = [8, 0], sizes = [8, 8], strides = [1, 1]} : vector<16x32xf32> to vector<8x8xf32>
    %75 = vector.extract_strided_slice %58 {offsets = [8, 0], sizes = [8, 8], strides = [1, 1]} : vector<16x32xf32> to vector<8x8xf32>
    %cst_56 = arith.constant dense<0.000000e+00> : vector<8x8xf32>
    %76 = tpu.matmul %74, %75, %cst_56 {dimension_numbers = #tpu.dot_dimension_numbers<[1], [1], [0], [0], [0, 0, 1, 0], [], []>} : vector<8x8xf32>, vector<8x8xf32>, vector<8x8xf32> -> vector<8x8xf32>
    %77 = vector.extract_strided_slice %55 {offsets = [8, 8], sizes = [8, 8], strides = [1, 1]} : vector<16x32xf32> to vector<8x8xf32>
    %78 = vector.extract_strided_slice %58 {offsets = [8, 8], sizes = [8, 8], strides = [1, 1]} : vector<16x32xf32> to vector<8x8xf32>
    %cst_57 = arith.constant dense<0.000000e+00> : vector<8x8xf32>
    %79 = tpu.matmul %77, %78, %cst_57 {dimension_numbers = #tpu.dot_dimension_numbers<[1], [1], [0], [0], [0, 0, 1, 0], [], []>} : vector<8x8xf32>, vector<8x8xf32>, vector<8x8xf32> -> vector<8x8xf32>
    %80 = vector.extract_strided_slice %55 {offsets = [8, 16], sizes = [8, 8], strides = [1, 1]} : vector<16x32xf32> to vector<8x8xf32>
    %81 = vector.extract_strided_slice %58 {offsets = [8, 16], sizes = [8, 8], strides = [1, 1]} : vector<16x32xf32> to vector<8x8xf32>
    %cst_58 = arith.constant dense<0.000000e+00> : vector<8x8xf32>
    %82 = tpu.matmul %80, %81, %cst_58 {dimension_numbers = #tpu.dot_dimension_numbers<[1], [1], [0], [0], [0, 0, 1, 0], [], []>} : vector<8x8xf32>, vector<8x8xf32>, vector<8x8xf32> -> vector<8x8xf32>
    %83 = vector.extract_strided_slice %55 {offsets = [8, 24], sizes = [8, 8], strides = [1, 1]} : vector<16x32xf32> to vector<8x8xf32>
    %84 = vector.extract_strided_slice %58 {offsets = [8, 24], sizes = [8, 8], strides = [1, 1]} : vector<16x32xf32> to vector<8x8xf32>
    %cst_59 = arith.constant dense<0.000000e+00> : vector<8x8xf32>
    %85 = tpu.matmul %83, %84, %cst_59 {dimension_numbers = #tpu.dot_dimension_numbers<[1], [1], [0], [0], [0, 0, 1, 0], [], []>} : vector<8x8xf32>, vector<8x8xf32>, vector<8x8xf32> -> vector<8x8xf32>
    %86 = tpu.concatenate %64, %67, %70, %73, %76, %79, %82, %85 in 0 : vector<8x8xf32>, vector<8x8xf32>, vector<8x8xf32>, vector<8x8xf32>, vector<8x8xf32>, vector<8x8xf32>, vector<8x8xf32>, vector<8x8xf32> -> vector<64x8xf32>
    %cst_60 = arith.constant dense<0xFF800000> : vector<64xf32>
    %87 = vector.multi_reduction <maximumf>, %86, %cst_60 [1] : vector<64x8xf32> to vector<64xf32>
    %88 = vector.shape_cast %87 : vector<64xf32> to vector<64x1xf32>
    %89 = vector.broadcast %88 : vector<64x1xf32> to vector<64x8xf32>
    %90 = arith.subf %86, %89 : vector<64x8xf32>
    %91 = math.exp %90 : vector<64x8xf32>
    %cst_61 = arith.constant dense<0.000000e+00> : vector<64xf32>
    %92 = vector.multi_reduction <add>, %91, %cst_61 [1] : vector<64x8xf32> to vector<64xf32>
    %93 = vector.shape_cast %92 : vector<64xf32> to vector<64x1xf32>
    %94 = tpu.reciprocal %93 : vector<64x1xf32> -> vector<64x1xf32>
    %95 = vector.broadcast %94 : vector<64x1xf32> to vector<64x8xf32>
    %96 = arith.mulf %91, %95 : vector<64x8xf32>
    %97 = vector.extract_strided_slice %96 {offsets = [0, 0], sizes = [8, 8], strides = [1, 1]} : vector<64x8xf32> to vector<8x8xf32>
    %98 = vector.extract_strided_slice %61 {offsets = [0, 0], sizes = [8, 8], strides = [1, 1]} : vector<16x32xf32> to vector<8x8xf32>
    %cst_62 = arith.constant dense<0.000000e+00> : vector<8x8xf32>
    %99 = tpu.matmul %97, %98, %cst_62 {dimension_numbers = #tpu.dot_dimension_numbers<[1], [0], [0], [1], [0, 0, 1, 1], [], []>} : vector<8x8xf32>, vector<8x8xf32>, vector<8x8xf32> -> vector<8x8xf32>
    %100 = vector.extract_strided_slice %96 {offsets = [8, 0], sizes = [8, 8], strides = [1, 1]} : vector<64x8xf32> to vector<8x8xf32>
    %101 = vector.extract_strided_slice %61 {offsets = [0, 8], sizes = [8, 8], strides = [1, 1]} : vector<16x32xf32> to vector<8x8xf32>
    %cst_63 = arith.constant dense<0.000000e+00> : vector<8x8xf32>
    %102 = tpu.matmul %100, %101, %cst_63 {dimension_numbers = #tpu.dot_dimension_numbers<[1], [0], [0], [1], [0, 0, 1, 1], [], []>} : vector<8x8xf32>, vector<8x8xf32>, vector<8x8xf32> -> vector<8x8xf32>
    %103 = vector.extract_strided_slice %96 {offsets = [16, 0], sizes = [8, 8], strides = [1, 1]} : vector<64x8xf32> to vector<8x8xf32>
    %104 = vector.extract_strided_slice %61 {offsets = [0, 16], sizes = [8, 8], strides = [1, 1]} : vector<16x32xf32> to vector<8x8xf32>
    %cst_64 = arith.constant dense<0.000000e+00> : vector<8x8xf32>
    %105 = tpu.matmul %103, %104, %cst_64 {dimension_numbers = #tpu.dot_dimension_numbers<[1], [0], [0], [1], [0, 0, 1, 1], [], []>} : vector<8x8xf32>, vector<8x8xf32>, vector<8x8xf32> -> vector<8x8xf32>
    %106 = vector.extract_strided_slice %96 {offsets = [24, 0], sizes = [8, 8], strides = [1, 1]} : vector<64x8xf32> to vector<8x8xf32>
    %107 = vector.extract_strided_slice %61 {offsets = [0, 24], sizes = [8, 8], strides = [1, 1]} : vector<16x32xf32> to vector<8x8xf32>
    %cst_65 = arith.constant dense<0.000000e+00> : vector<8x8xf32>
    %108 = tpu.matmul %106, %107, %cst_65 {dimension_numbers = #tpu.dot_dimension_numbers<[1], [0], [0], [1], [0, 0, 1, 1], [], []>} : vector<8x8xf32>, vector<8x8xf32>, vector<8x8xf32> -> vector<8x8xf32>
    %109 = tpu.concatenate %99, %102, %105, %108 in 1 : vector<8x8xf32>, vector<8x8xf32>, vector<8x8xf32>, vector<8x8xf32> -> vector<8x32xf32>
    %110 = vector.extract_strided_slice %96 {offsets = [32, 0], sizes = [8, 8], strides = [1, 1]} : vector<64x8xf32> to vector<8x8xf32>
    %111 = vector.extract_strided_slice %61 {offsets = [8, 0], sizes = [8, 8], strides = [1, 1]} : vector<16x32xf32> to vector<8x8xf32>
    %cst_66 = arith.constant dense<0.000000e+00> : vector<8x8xf32>
    %112 = tpu.matmul %110, %111, %cst_66 {dimension_numbers = #tpu.dot_dimension_numbers<[1], [0], [0], [1], [0, 0, 1, 1], [], []>} : vector<8x8xf32>, vector<8x8xf32>, vector<8x8xf32> -> vector<8x8xf32>
    %113 = vector.extract_strided_slice %96 {offsets = [40, 0], sizes = [8, 8], strides = [1, 1]} : vector<64x8xf32> to vector<8x8xf32>
    %114 = vector.extract_strided_slice %61 {offsets = [8, 8], sizes = [8, 8], strides = [1, 1]} : vector<16x32xf32> to vector<8x8xf32>
    %cst_67 = arith.constant dense<0.000000e+00> : vector<8x8xf32>
    %115 = tpu.matmul %113, %114, %cst_67 {dimension_numbers = #tpu.dot_dimension_numbers<[1], [0], [0], [1], [0, 0, 1, 1], [], []>} : vector<8x8xf32>, vector<8x8xf32>, vector<8x8xf32> -> vector<8x8xf32>
    %116 = vector.extract_strided_slice %96 {offsets = [48, 0], sizes = [8, 8], strides = [1, 1]} : vector<64x8xf32> to vector<8x8xf32>
    %117 = vector.extract_strided_slice %61 {offsets = [8, 16], sizes = [8, 8], strides = [1, 1]} : vector<16x32xf32> to vector<8x8xf32>
    %cst_68 = arith.constant dense<0.000000e+00> : vector<8x8xf32>
    %118 = tpu.matmul %116, %117, %cst_68 {dimension_numbers = #tpu.dot_dimension_numbers<[1], [0], [0], [1], [0, 0, 1, 1], [], []>} : vector<8x8xf32>, vector<8x8xf32>, vector<8x8xf32> -> vector<8x8xf32>
    %119 = vector.extract_strided_slice %96 {offsets = [56, 0], sizes = [8, 8], strides = [1, 1]} : vector<64x8xf32> to vector<8x8xf32>
    %120 = vector.extract_strided_slice %61 {offsets = [8, 24], sizes = [8, 8], strides = [1, 1]} : vector<16x32xf32> to vector<8x8xf32>
    %cst_69 = arith.constant dense<0.000000e+00> : vector<8x8xf32>
    %121 = tpu.matmul %119, %120, %cst_69 {dimension_numbers = #tpu.dot_dimension_numbers<[1], [0], [0], [1], [0, 0, 1, 1], [], []>} : vector<8x8xf32>, vector<8x8xf32>, vector<8x8xf32> -> vector<8x8xf32>
    %122 = tpu.concatenate %112, %115, %118, %121 in 1 : vector<8x8xf32>, vector<8x8xf32>, vector<8x8xf32>, vector<8x8xf32> -> vector<8x32xf32>
    %123 = tpu.concatenate %109, %122 in 0 : vector<8x32xf32>, vector<8x32xf32> -> vector<16x32xf32>
    %cst_70 = arith.constant dense<0.000000e+00> : vector<16x32xf32>
    %124 = tpu.matmul %123, %35, %cst_70 {dimension_numbers = #tpu.dot_dimension_numbers<[1], [0], [0], [1], [0, 0, 1, 1], [], []>} : vector<16x32xf32>, vector<32x32xf32>, vector<16x32xf32> -> vector<16x32xf32>
    %125 = vector.broadcast %47 : vector<1x32xf32> to vector<16x32xf32>
    %126 = arith.addf %124, %125 : vector<16x32xf32>
    %127 = arith.addf %22, %126 : vector<16x32xf32>
    %cst_71 = arith.constant dense<0.000000e+00> : vector<16xf32>
    %128 = vector.multi_reduction <add>, %127, %cst_71 [1] : vector<16x32xf32> to vector<16xf32>
    %129 = vector.shape_cast %128 : vector<16xf32> to vector<16x1xf32>
    %cst_72 = arith.constant 3.200000e+01 : f32
    %130 = vector.broadcast %cst_72 : f32 to vector<16x1xf32>
    %131 = arith.divf %129, %130 : vector<16x1xf32>
    %132 = vector.broadcast %131 : vector<16x1xf32> to vector<16x32xf32>
    %133 = arith.subf %127, %132 : vector<16x32xf32>
    %134 = arith.mulf %133, %133 : vector<16x32xf32>
    %cst_73 = arith.constant dense<0.000000e+00> : vector<16xf32>
    %135 = vector.multi_reduction <add>, %134, %cst_73 [1] : vector<16x32xf32> to vector<16xf32>
    %136 = vector.shape_cast %135 : vector<16xf32> to vector<16x1xf32>
    %cst_74 = arith.constant 3.200000e+01 : f32
    %137 = vector.broadcast %cst_74 : f32 to vector<16x1xf32>
    %138 = arith.divf %136, %137 : vector<16x1xf32>
    %139 = vector.broadcast %131 : vector<16x1xf32> to vector<16x32xf32>
    %140 = arith.subf %127, %139 : vector<16x32xf32>
    %cst_75 = arith.constant 9.99999974E-6 : f32
    %141 = vector.broadcast %cst_75 : f32 to vector<16x1xf32>
    %142 = arith.addf %138, %141 : vector<16x1xf32>
    %143 = math.rsqrt %142 : vector<16x1xf32>
    %144 = vector.broadcast %143 : vector<16x1xf32> to vector<16x32xf32>
    %145 = arith.mulf %140, %144 : vector<16x32xf32>
    %146 = vector.broadcast %48 : vector<1x32xf32> to vector<16x32xf32>
    %147 = arith.mulf %145, %146 : vector<16x32xf32>
    %148 = vector.broadcast %49 : vector<1x32xf32> to vector<16x32xf32>
    %149 = arith.addf %147, %148 : vector<16x32xf32>
    %cst_76 = arith.constant dense<0.000000e+00> : vector<16x128xf32>
    %150 = tpu.matmul %149, %37, %cst_76 {dimension_numbers = #tpu.dot_dimension_numbers<[1], [0], [0], [1], [0, 0, 1, 1], [], []>} : vector<16x32xf32>, vector<32x128xf32>, vector<16x128xf32> -> vector<16x128xf32>
    %151 = vector.broadcast %41 : vector<1x128xf32> to vector<16x128xf32>
    %152 = arith.addf %150, %151 : vector<16x128xf32>
    %cst_77 = arith.constant 5.000000e-01 : f32
    %153 = vector.broadcast %cst_77 : f32 to vector<16x128xf32>
    %154 = arith.mulf %153, %152 : vector<16x128xf32>
    %cst_78 = arith.constant 0.707106769 : f32
    %155 = vector.broadcast %cst_78 : f32 to vector<16x128xf32>
    %156 = arith.mulf %152, %155 : vector<16x128xf32>
    %157 = math.erf %156 : vector<16x128xf32>
    %cst_79 = arith.constant 1.000000e+00 : f32
    %158 = vector.broadcast %cst_79 : f32 to vector<16x128xf32>
    %159 = arith.addf %158, %157 : vector<16x128xf32>
    %160 = arith.mulf %154, %159 : vector<16x128xf32>
    %cst_80 = arith.constant dense<0.000000e+00> : vector<16x32xf32>
    %161 = tpu.matmul %160, %39, %cst_80 {dimension_numbers = #tpu.dot_dimension_numbers<[1], [0], [0], [1], [0, 0, 1, 1], [], []>} : vector<16x128xf32>, vector<128x32xf32>, vector<16x32xf32> -> vector<16x32xf32>
    %162 = vector.broadcast %50 : vector<1x32xf32> to vector<16x32xf32>
    %163 = arith.addf %161, %162 : vector<16x32xf32>
    %164 = arith.addf %149, %163 : vector<16x32xf32>
    %cst_81 = arith.constant dense<0.000000e+00> : vector<16xf32>
    %165 = vector.multi_reduction <add>, %164, %cst_81 [1] : vector<16x32xf32> to vector<16xf32>
    %166 = vector.shape_cast %165 : vector<16xf32> to vector<16x1xf32>
    %cst_82 = arith.constant 3.200000e+01 : f32
    %167 = vector.broadcast %cst_82 : f32 to vector<16x1xf32>
    %168 = arith.divf %166, %167 : vector<16x1xf32>
    %169 = vector.broadcast %168 : vector<16x1xf32> to vector<16x32xf32>
    %170 = arith.subf %164, %169 : vector<16x32xf32>
    %171 = arith.mulf %170, %170 : vector<16x32xf32>
    %cst_83 = arith.constant dense<0.000000e+00> : vector<16xf32>
    %172 = vector.multi_reduction <add>, %171, %cst_83 [1] : vector<16x32xf32> to vector<16xf32>
    %173 = vector.shape_cast %172 : vector<16xf32> to vector<16x1xf32>
    %cst_84 = arith.constant 3.200000e+01 : f32
    %174 = vector.broadcast %cst_84 : f32 to vector<16x1xf32>
    %175 = arith.divf %173, %174 : vector<16x1xf32>
    %176 = vector.broadcast %168 : vector<16x1xf32> to vector<16x32xf32>
    %177 = arith.subf %164, %176 : vector<16x32xf32>
    %cst_85 = arith.constant 9.99999974E-6 : f32
    %178 = vector.broadcast %cst_85 : f32 to vector<16x1xf32>
    %179 = arith.addf %175, %178 : vector<16x1xf32>
    %180 = math.rsqrt %179 : vector<16x1xf32>
    %181 = vector.broadcast %180 : vector<16x1xf32> to vector<16x32xf32>
    %182 = arith.mulf %177, %181 : vector<16x32xf32>
    %183 = vector.broadcast %51 : vector<1x32xf32> to vector<16x32xf32>
    %184 = arith.mulf %182, %183 : vector<16x32xf32>
    %185 = vector.broadcast %52 : vector<1x32xf32> to vector<16x32xf32>
    %186 = arith.addf %184, %185 : vector<16x32xf32>
    %c1_86 = arith.constant 1 : index
    %c0_87 = arith.constant 0 : index
    %c0_88 = arith.constant 0 : index
    %187 = vector.load %arg9[%c1_86, %c0_87, %c0_88] : memref<4x32x32xf32, #tpu.memory_space<vmem>>, vector<1x32x32xf32>
    %188 = vector.shape_cast %187 : vector<1x32x32xf32> to vector<32x32xf32>
    %c1_89 = arith.constant 1 : index
    %c0_90 = arith.constant 0 : index
    %c0_91 = arith.constant 0 : index
    %189 = vector.load %arg10[%c1_89, %c0_90, %c0_91] : memref<4x32x32xf32, #tpu.memory_space<vmem>>, vector<1x32x32xf32>
    %190 = vector.shape_cast %189 : vector<1x32x32xf32> to vector<32x32xf32>
    %c1_92 = arith.constant 1 : index
    %c0_93 = arith.constant 0 : index
    %c0_94 = arith.constant 0 : index
    %191 = vector.load %arg11[%c1_92, %c0_93, %c0_94] : memref<4x32x32xf32, #tpu.memory_space<vmem>>, vector<1x32x32xf32>
    %192 = vector.shape_cast %191 : vector<1x32x32xf32> to vector<32x32xf32>
    %c1_95 = arith.constant 1 : index
    %c0_96 = arith.constant 0 : index
    %c0_97 = arith.constant 0 : index
    %193 = vector.load %arg12[%c1_95, %c0_96, %c0_97] : memref<4x32x32xf32, #tpu.memory_space<vmem>>, vector<1x32x32xf32>
    %194 = vector.shape_cast %193 : vector<1x32x32xf32> to vector<32x32xf32>
    %c1_98 = arith.constant 1 : index
    %c0_99 = arith.constant 0 : index
    %c0_100 = arith.constant 0 : index
    %195 = vector.load %arg13[%c1_98, %c0_99, %c0_100] : memref<4x32x128xf32, #tpu.memory_space<vmem>>, vector<1x32x128xf32>
    %196 = vector.shape_cast %195 : vector<1x32x128xf32> to vector<32x128xf32>
    %c1_101 = arith.constant 1 : index
    %c0_102 = arith.constant 0 : index
    %c0_103 = arith.constant 0 : index
    %197 = vector.load %arg14[%c1_101, %c0_102, %c0_103] : memref<4x128x32xf32, #tpu.memory_space<vmem>>, vector<1x128x32xf32>
    %198 = vector.shape_cast %197 : vector<1x128x32xf32> to vector<128x32xf32>
    %c1_104 = arith.constant 1 : index
    %c0_105 = arith.constant 0 : index
    %c0_106 = arith.constant 0 : index
    %199 = vector.load %arg16[%c1_104, %c0_105, %c0_106] : memref<4x1x128xf32, #tpu.memory_space<vmem>>, vector<1x1x128xf32>
    %200 = vector.shape_cast %199 : vector<1x1x128xf32> to vector<1x128xf32>
    %c1_107 = arith.constant 1 : index
    %c0_108 = arith.constant 0 : index
    %c0_109 = arith.constant 0 : index
    %201 = vector.load %arg15[%c1_107, %c0_108, %c0_109] : memref<4x9x32xf32, #tpu.memory_space<vmem>>, vector<1x9x32xf32>
    %202 = vector.shape_cast %201 : vector<1x9x32xf32> to vector<9x32xf32>
    %203 = vector.extract_strided_slice %202 {offsets = [0, 0], sizes = [1, 32], strides = [1, 1]} : vector<9x32xf32> to vector<1x32xf32>
    %204 = vector.extract_strided_slice %202 {offsets = [1, 0], sizes = [1, 32], strides = [1, 1]} : vector<9x32xf32> to vector<1x32xf32>
    %205 = vector.extract_strided_slice %202 {offsets = [2, 0], sizes = [1, 32], strides = [1, 1]} : vector<9x32xf32> to vector<1x32xf32>
    %206 = vector.extract_strided_slice %202 {offsets = [3, 0], sizes = [1, 32], strides = [1, 1]} : vector<9x32xf32> to vector<1x32xf32>
    %207 = vector.extract_strided_slice %202 {offsets = [4, 0], sizes = [1, 32], strides = [1, 1]} : vector<9x32xf32> to vector<1x32xf32>
    %208 = vector.extract_strided_slice %202 {offsets = [5, 0], sizes = [1, 32], strides = [1, 1]} : vector<9x32xf32> to vector<1x32xf32>
    %209 = vector.extract_strided_slice %202 {offsets = [6, 0], sizes = [1, 32], strides = [1, 1]} : vector<9x32xf32> to vector<1x32xf32>
    %210 = vector.extract_strided_slice %202 {offsets = [7, 0], sizes = [1, 32], strides = [1, 1]} : vector<9x32xf32> to vector<1x32xf32>
    %211 = vector.extract_strided_slice %202 {offsets = [8, 0], sizes = [1, 32], strides = [1, 1]} : vector<9x32xf32> to vector<1x32xf32>
    %cst_110 = arith.constant dense<0.000000e+00> : vector<16x32xf32>
    %212 = tpu.matmul %27, %188, %cst_110 {dimension_numbers = #tpu.dot_dimension_numbers<[1], [0], [0], [1], [0, 0, 1, 1], [], []>} : vector<16x32xf32>, vector<32x32xf32>, vector<16x32xf32> -> vector<16x32xf32>
    %213 = vector.broadcast %203 : vector<1x32xf32> to vector<16x32xf32>
    %214 = arith.addf %212, %213 : vector<16x32xf32>
    %cst_111 = arith.constant dense<0.000000e+00> : vector<16x32xf32>
    %215 = tpu.matmul %186, %190, %cst_111 {dimension_numbers = #tpu.dot_dimension_numbers<[1], [0], [0], [1], [0, 0, 1, 1], [], []>} : vector<16x32xf32>, vector<32x32xf32>, vector<16x32xf32> -> vector<16x32xf32>
    %216 = vector.broadcast %204 : vector<1x32xf32> to vector<16x32xf32>
    %217 = arith.addf %215, %216 : vector<16x32xf32>
    %cst_112 = arith.constant dense<0.000000e+00> : vector<16x32xf32>
    %218 = tpu.matmul %186, %192, %cst_112 {dimension_numbers = #tpu.dot_dimension_numbers<[1], [0], [0], [1], [0, 0, 1, 1], [], []>} : vector<16x32xf32>, vector<32x32xf32>, vector<16x32xf32> -> vector<16x32xf32>
    %219 = vector.broadcast %205 : vector<1x32xf32> to vector<16x32xf32>
    %220 = arith.addf %218, %219 : vector<16x32xf32>
    %221 = vector.extract_strided_slice %214 {offsets = [0, 0], sizes = [8, 8], strides = [1, 1]} : vector<16x32xf32> to vector<8x8xf32>
    %222 = vector.extract_strided_slice %217 {offsets = [0, 0], sizes = [8, 8], strides = [1, 1]} : vector<16x32xf32> to vector<8x8xf32>
    %cst_113 = arith.constant dense<0.000000e+00> : vector<8x8xf32>
    %223 = tpu.matmul %221, %222, %cst_113 {dimension_numbers = #tpu.dot_dimension_numbers<[1], [1], [0], [0], [0, 0, 1, 0], [], []>} : vector<8x8xf32>, vector<8x8xf32>, vector<8x8xf32> -> vector<8x8xf32>
    %224 = vector.extract_strided_slice %214 {offsets = [0, 8], sizes = [8, 8], strides = [1, 1]} : vector<16x32xf32> to vector<8x8xf32>
    %225 = vector.extract_strided_slice %217 {offsets = [0, 8], sizes = [8, 8], strides = [1, 1]} : vector<16x32xf32> to vector<8x8xf32>
    %cst_114 = arith.constant dense<0.000000e+00> : vector<8x8xf32>
    %226 = tpu.matmul %224, %225, %cst_114 {dimension_numbers = #tpu.dot_dimension_numbers<[1], [1], [0], [0], [0, 0, 1, 0], [], []>} : vector<8x8xf32>, vector<8x8xf32>, vector<8x8xf32> -> vector<8x8xf32>
    %227 = vector.extract_strided_slice %214 {offsets = [0, 16], sizes = [8, 8], strides = [1, 1]} : vector<16x32xf32> to vector<8x8xf32>
    %228 = vector.extract_strided_slice %217 {offsets = [0, 16], sizes = [8, 8], strides = [1, 1]} : vector<16x32xf32> to vector<8x8xf32>
    %cst_115 = arith.constant dense<0.000000e+00> : vector<8x8xf32>
    %229 = tpu.matmul %227, %228, %cst_115 {dimension_numbers = #tpu.dot_dimension_numbers<[1], [1], [0], [0], [0, 0, 1, 0], [], []>} : vector<8x8xf32>, vector<8x8xf32>, vector<8x8xf32> -> vector<8x8xf32>
    %230 = vector.extract_strided_slice %214 {offsets = [0, 24], sizes = [8, 8], strides = [1, 1]} : vector<16x32xf32> to vector<8x8xf32>
    %231 = vector.extract_strided_slice %217 {offsets = [0, 24], sizes = [8, 8], strides = [1, 1]} : vector<16x32xf32> to vector<8x8xf32>
    %cst_116 = arith.constant dense<0.000000e+00> : vector<8x8xf32>
    %232 = tpu.matmul %230, %231, %cst_116 {dimension_numbers = #tpu.dot_dimension_numbers<[1], [1], [0], [0], [0, 0, 1, 0], [], []>} : vector<8x8xf32>, vector<8x8xf32>, vector<8x8xf32> -> vector<8x8xf32>
    %233 = vector.extract_strided_slice %214 {offsets = [8, 0], sizes = [8, 8], strides = [1, 1]} : vector<16x32xf32> to vector<8x8xf32>
    %234 = vector.extract_strided_slice %217 {offsets = [8, 0], sizes = [8, 8], strides = [1, 1]} : vector<16x32xf32> to vector<8x8xf32>
    %cst_117 = arith.constant dense<0.000000e+00> : vector<8x8xf32>
    %235 = tpu.matmul %233, %234, %cst_117 {dimension_numbers = #tpu.dot_dimension_numbers<[1], [1], [0], [0], [0, 0, 1, 0], [], []>} : vector<8x8xf32>, vector<8x8xf32>, vector<8x8xf32> -> vector<8x8xf32>
    %236 = vector.extract_strided_slice %214 {offsets = [8, 8], sizes = [8, 8], strides = [1, 1]} : vector<16x32xf32> to vector<8x8xf32>
    %237 = vector.extract_strided_slice %217 {offsets = [8, 8], sizes = [8, 8], strides = [1, 1]} : vector<16x32xf32> to vector<8x8xf32>
    %cst_118 = arith.constant dense<0.000000e+00> : vector<8x8xf32>
    %238 = tpu.matmul %236, %237, %cst_118 {dimension_numbers = #tpu.dot_dimension_numbers<[1], [1], [0], [0], [0, 0, 1, 0], [], []>} : vector<8x8xf32>, vector<8x8xf32>, vector<8x8xf32> -> vector<8x8xf32>
    %239 = vector.extract_strided_slice %214 {offsets = [8, 16], sizes = [8, 8], strides = [1, 1]} : vector<16x32xf32> to vector<8x8xf32>
    %240 = vector.extract_strided_slice %217 {offsets = [8, 16], sizes = [8, 8], strides = [1, 1]} : vector<16x32xf32> to vector<8x8xf32>
    %cst_119 = arith.constant dense<0.000000e+00> : vector<8x8xf32>
    %241 = tpu.matmul %239, %240, %cst_119 {dimension_numbers = #tpu.dot_dimension_numbers<[1], [1], [0], [0], [0, 0, 1, 0], [], []>} : vector<8x8xf32>, vector<8x8xf32>, vector<8x8xf32> -> vector<8x8xf32>
    %242 = vector.extract_strided_slice %214 {offsets = [8, 24], sizes = [8, 8], strides = [1, 1]} : vector<16x32xf32> to vector<8x8xf32>
    %243 = vector.extract_strided_slice %217 {offsets = [8, 24], sizes = [8, 8], strides = [1, 1]} : vector<16x32xf32> to vector<8x8xf32>
    %cst_120 = arith.constant dense<0.000000e+00> : vector<8x8xf32>
    %244 = tpu.matmul %242, %243, %cst_120 {dimension_numbers = #tpu.dot_dimension_numbers<[1], [1], [0], [0], [0, 0, 1, 0], [], []>} : vector<8x8xf32>, vector<8x8xf32>, vector<8x8xf32> -> vector<8x8xf32>
    %245 = tpu.concatenate %223, %226, %229, %232, %235, %238, %241, %244 in 0 : vector<8x8xf32>, vector<8x8xf32>, vector<8x8xf32>, vector<8x8xf32>, vector<8x8xf32>, vector<8x8xf32>, vector<8x8xf32>, vector<8x8xf32> -> vector<64x8xf32>
    %cst_121 = arith.constant dense<0xFF800000> : vector<64xf32>
    %246 = vector.multi_reduction <maximumf>, %245, %cst_121 [1] : vector<64x8xf32> to vector<64xf32>
    %247 = vector.shape_cast %246 : vector<64xf32> to vector<64x1xf32>
    %248 = vector.broadcast %247 : vector<64x1xf32> to vector<64x8xf32>
    %249 = arith.subf %245, %248 : vector<64x8xf32>
    %250 = math.exp %249 : vector<64x8xf32>
    %cst_122 = arith.constant dense<0.000000e+00> : vector<64xf32>
    %251 = vector.multi_reduction <add>, %250, %cst_122 [1] : vector<64x8xf32> to vector<64xf32>
    %252 = vector.shape_cast %251 : vector<64xf32> to vector<64x1xf32>
    %253 = tpu.reciprocal %252 : vector<64x1xf32> -> vector<64x1xf32>
    %254 = vector.broadcast %253 : vector<64x1xf32> to vector<64x8xf32>
    %255 = arith.mulf %250, %254 : vector<64x8xf32>
    %256 = vector.extract_strided_slice %255 {offsets = [0, 0], sizes = [8, 8], strides = [1, 1]} : vector<64x8xf32> to vector<8x8xf32>
    %257 = vector.extract_strided_slice %220 {offsets = [0, 0], sizes = [8, 8], strides = [1, 1]} : vector<16x32xf32> to vector<8x8xf32>
    %cst_123 = arith.constant dense<0.000000e+00> : vector<8x8xf32>
    %258 = tpu.matmul %256, %257, %cst_123 {dimension_numbers = #tpu.dot_dimension_numbers<[1], [0], [0], [1], [0, 0, 1, 1], [], []>} : vector<8x8xf32>, vector<8x8xf32>, vector<8x8xf32> -> vector<8x8xf32>
    %259 = vector.extract_strided_slice %255 {offsets = [8, 0], sizes = [8, 8], strides = [1, 1]} : vector<64x8xf32> to vector<8x8xf32>
    %260 = vector.extract_strided_slice %220 {offsets = [0, 8], sizes = [8, 8], strides = [1, 1]} : vector<16x32xf32> to vector<8x8xf32>
    %cst_124 = arith.constant dense<0.000000e+00> : vector<8x8xf32>
    %261 = tpu.matmul %259, %260, %cst_124 {dimension_numbers = #tpu.dot_dimension_numbers<[1], [0], [0], [1], [0, 0, 1, 1], [], []>} : vector<8x8xf32>, vector<8x8xf32>, vector<8x8xf32> -> vector<8x8xf32>
    %262 = vector.extract_strided_slice %255 {offsets = [16, 0], sizes = [8, 8], strides = [1, 1]} : vector<64x8xf32> to vector<8x8xf32>
    %263 = vector.extract_strided_slice %220 {offsets = [0, 16], sizes = [8, 8], strides = [1, 1]} : vector<16x32xf32> to vector<8x8xf32>
    %cst_125 = arith.constant dense<0.000000e+00> : vector<8x8xf32>
    %264 = tpu.matmul %262, %263, %cst_125 {dimension_numbers = #tpu.dot_dimension_numbers<[1], [0], [0], [1], [0, 0, 1, 1], [], []>} : vector<8x8xf32>, vector<8x8xf32>, vector<8x8xf32> -> vector<8x8xf32>
    %265 = vector.extract_strided_slice %255 {offsets = [24, 0], sizes = [8, 8], strides = [1, 1]} : vector<64x8xf32> to vector<8x8xf32>
    %266 = vector.extract_strided_slice %220 {offsets = [0, 24], sizes = [8, 8], strides = [1, 1]} : vector<16x32xf32> to vector<8x8xf32>
    %cst_126 = arith.constant dense<0.000000e+00> : vector<8x8xf32>
    %267 = tpu.matmul %265, %266, %cst_126 {dimension_numbers = #tpu.dot_dimension_numbers<[1], [0], [0], [1], [0, 0, 1, 1], [], []>} : vector<8x8xf32>, vector<8x8xf32>, vector<8x8xf32> -> vector<8x8xf32>
    %268 = tpu.concatenate %258, %261, %264, %267 in 1 : vector<8x8xf32>, vector<8x8xf32>, vector<8x8xf32>, vector<8x8xf32> -> vector<8x32xf32>
    %269 = vector.extract_strided_slice %255 {offsets = [32, 0], sizes = [8, 8], strides = [1, 1]} : vector<64x8xf32> to vector<8x8xf32>
    %270 = vector.extract_strided_slice %220 {offsets = [8, 0], sizes = [8, 8], strides = [1, 1]} : vector<16x32xf32> to vector<8x8xf32>
    %cst_127 = arith.constant dense<0.000000e+00> : vector<8x8xf32>
    %271 = tpu.matmul %269, %270, %cst_127 {dimension_numbers = #tpu.dot_dimension_numbers<[1], [0], [0], [1], [0, 0, 1, 1], [], []>} : vector<8x8xf32>, vector<8x8xf32>, vector<8x8xf32> -> vector<8x8xf32>
    %272 = vector.extract_strided_slice %255 {offsets = [40, 0], sizes = [8, 8], strides = [1, 1]} : vector<64x8xf32> to vector<8x8xf32>
    %273 = vector.extract_strided_slice %220 {offsets = [8, 8], sizes = [8, 8], strides = [1, 1]} : vector<16x32xf32> to vector<8x8xf32>
    %cst_128 = arith.constant dense<0.000000e+00> : vector<8x8xf32>
    %274 = tpu.matmul %272, %273, %cst_128 {dimension_numbers = #tpu.dot_dimension_numbers<[1], [0], [0], [1], [0, 0, 1, 1], [], []>} : vector<8x8xf32>, vector<8x8xf32>, vector<8x8xf32> -> vector<8x8xf32>
    %275 = vector.extract_strided_slice %255 {offsets = [48, 0], sizes = [8, 8], strides = [1, 1]} : vector<64x8xf32> to vector<8x8xf32>
    %276 = vector.extract_strided_slice %220 {offsets = [8, 16], sizes = [8, 8], strides = [1, 1]} : vector<16x32xf32> to vector<8x8xf32>
    %cst_129 = arith.constant dense<0.000000e+00> : vector<8x8xf32>
    %277 = tpu.matmul %275, %276, %cst_129 {dimension_numbers = #tpu.dot_dimension_numbers<[1], [0], [0], [1], [0, 0, 1, 1], [], []>} : vector<8x8xf32>, vector<8x8xf32>, vector<8x8xf32> -> vector<8x8xf32>
    %278 = vector.extract_strided_slice %255 {offsets = [56, 0], sizes = [8, 8], strides = [1, 1]} : vector<64x8xf32> to vector<8x8xf32>
    %279 = vector.extract_strided_slice %220 {offsets = [8, 24], sizes = [8, 8], strides = [1, 1]} : vector<16x32xf32> to vector<8x8xf32>
    %cst_130 = arith.constant dense<0.000000e+00> : vector<8x8xf32>
    %280 = tpu.matmul %278, %279, %cst_130 {dimension_numbers = #tpu.dot_dimension_numbers<[1], [0], [0], [1], [0, 0, 1, 1], [], []>} : vector<8x8xf32>, vector<8x8xf32>, vector<8x8xf32> -> vector<8x8xf32>
    %281 = tpu.concatenate %271, %274, %277, %280 in 1 : vector<8x8xf32>, vector<8x8xf32>, vector<8x8xf32>, vector<8x8xf32> -> vector<8x32xf32>
    %282 = tpu.concatenate %268, %281 in 0 : vector<8x32xf32>, vector<8x32xf32> -> vector<16x32xf32>
    %cst_131 = arith.constant dense<0.000000e+00> : vector<16x32xf32>
    %283 = tpu.matmul %282, %194, %cst_131 {dimension_numbers = #tpu.dot_dimension_numbers<[1], [0], [0], [1], [0, 0, 1, 1], [], []>} : vector<16x32xf32>, vector<32x32xf32>, vector<16x32xf32> -> vector<16x32xf32>
    %284 = vector.broadcast %206 : vector<1x32xf32> to vector<16x32xf32>
    %285 = arith.addf %283, %284 : vector<16x32xf32>
    %286 = arith.addf %27, %285 : vector<16x32xf32>
    %cst_132 = arith.constant dense<0.000000e+00> : vector<16xf32>
    %287 = vector.multi_reduction <add>, %286, %cst_132 [1] : vector<16x32xf32> to vector<16xf32>
    %288 = vector.shape_cast %287 : vector<16xf32> to vector<16x1xf32>
    %cst_133 = arith.constant 3.200000e+01 : f32
    %289 = vector.broadcast %cst_133 : f32 to vector<16x1xf32>
    %290 = arith.divf %288, %289 : vector<16x1xf32>
    %291 = vector.broadcast %290 : vector<16x1xf32> to vector<16x32xf32>
    %292 = arith.subf %286, %291 : vector<16x32xf32>
    %293 = arith.mulf %292, %292 : vector<16x32xf32>
    %cst_134 = arith.constant dense<0.000000e+00> : vector<16xf32>
    %294 = vector.multi_reduction <add>, %293, %cst_134 [1] : vector<16x32xf32> to vector<16xf32>
    %295 = vector.shape_cast %294 : vector<16xf32> to vector<16x1xf32>
    %cst_135 = arith.constant 3.200000e+01 : f32
    %296 = vector.broadcast %cst_135 : f32 to vector<16x1xf32>
    %297 = arith.divf %295, %296 : vector<16x1xf32>
    %298 = vector.broadcast %290 : vector<16x1xf32> to vector<16x32xf32>
    %299 = arith.subf %286, %298 : vector<16x32xf32>
    %cst_136 = arith.constant 9.99999974E-6 : f32
    %300 = vector.broadcast %cst_136 : f32 to vector<16x1xf32>
    %301 = arith.addf %297, %300 : vector<16x1xf32>
    %302 = math.rsqrt %301 : vector<16x1xf32>
    %303 = vector.broadcast %302 : vector<16x1xf32> to vector<16x32xf32>
    %304 = arith.mulf %299, %303 : vector<16x32xf32>
    %305 = vector.broadcast %207 : vector<1x32xf32> to vector<16x32xf32>
    %306 = arith.mulf %304, %305 : vector<16x32xf32>
    %307 = vector.broadcast %208 : vector<1x32xf32> to vector<16x32xf32>
    %308 = arith.addf %306, %307 : vector<16x32xf32>
    %cst_137 = arith.constant dense<0.000000e+00> : vector<16x128xf32>
    %309 = tpu.matmul %308, %196, %cst_137 {dimension_numbers = #tpu.dot_dimension_numbers<[1], [0], [0], [1], [0, 0, 1, 1], [], []>} : vector<16x32xf32>, vector<32x128xf32>, vector<16x128xf32> -> vector<16x128xf32>
    %310 = vector.broadcast %200 : vector<1x128xf32> to vector<16x128xf32>
    %311 = arith.addf %309, %310 : vector<16x128xf32>
    %cst_138 = arith.constant 5.000000e-01 : f32
    %312 = vector.broadcast %cst_138 : f32 to vector<16x128xf32>
    %313 = arith.mulf %312, %311 : vector<16x128xf32>
    %cst_139 = arith.constant 0.707106769 : f32
    %314 = vector.broadcast %cst_139 : f32 to vector<16x128xf32>
    %315 = arith.mulf %311, %314 : vector<16x128xf32>
    %316 = math.erf %315 : vector<16x128xf32>
    %cst_140 = arith.constant 1.000000e+00 : f32
    %317 = vector.broadcast %cst_140 : f32 to vector<16x128xf32>
    %318 = arith.addf %317, %316 : vector<16x128xf32>
    %319 = arith.mulf %313, %318 : vector<16x128xf32>
    %cst_141 = arith.constant dense<0.000000e+00> : vector<16x32xf32>
    %320 = tpu.matmul %319, %198, %cst_141 {dimension_numbers = #tpu.dot_dimension_numbers<[1], [0], [0], [1], [0, 0, 1, 1], [], []>} : vector<16x128xf32>, vector<128x32xf32>, vector<16x32xf32> -> vector<16x32xf32>
    %321 = vector.broadcast %209 : vector<1x32xf32> to vector<16x32xf32>
    %322 = arith.addf %320, %321 : vector<16x32xf32>
    %323 = arith.addf %308, %322 : vector<16x32xf32>
    %cst_142 = arith.constant dense<0.000000e+00> : vector<16xf32>
    %324 = vector.multi_reduction <add>, %323, %cst_142 [1] : vector<16x32xf32> to vector<16xf32>
    %325 = vector.shape_cast %324 : vector<16xf32> to vector<16x1xf32>
    %cst_143 = arith.constant 3.200000e+01 : f32
    %326 = vector.broadcast %cst_143 : f32 to vector<16x1xf32>
    %327 = arith.divf %325, %326 : vector<16x1xf32>
    %328 = vector.broadcast %327 : vector<16x1xf32> to vector<16x32xf32>
    %329 = arith.subf %323, %328 : vector<16x32xf32>
    %330 = arith.mulf %329, %329 : vector<16x32xf32>
    %cst_144 = arith.constant dense<0.000000e+00> : vector<16xf32>
    %331 = vector.multi_reduction <add>, %330, %cst_144 [1] : vector<16x32xf32> to vector<16xf32>
    %332 = vector.shape_cast %331 : vector<16xf32> to vector<16x1xf32>
    %cst_145 = arith.constant 3.200000e+01 : f32
    %333 = vector.broadcast %cst_145 : f32 to vector<16x1xf32>
    %334 = arith.divf %332, %333 : vector<16x1xf32>
    %335 = vector.broadcast %327 : vector<16x1xf32> to vector<16x32xf32>
    %336 = arith.subf %323, %335 : vector<16x32xf32>
    %cst_146 = arith.constant 9.99999974E-6 : f32
    %337 = vector.broadcast %cst_146 : f32 to vector<16x1xf32>
    %338 = arith.addf %334, %337 : vector<16x1xf32>
    %339 = math.rsqrt %338 : vector<16x1xf32>
    %340 = vector.broadcast %339 : vector<16x1xf32> to vector<16x32xf32>
    %341 = arith.mulf %336, %340 : vector<16x32xf32>
    %342 = vector.broadcast %210 : vector<1x32xf32> to vector<16x32xf32>
    %343 = arith.mulf %341, %342 : vector<16x32xf32>
    %344 = vector.broadcast %211 : vector<1x32xf32> to vector<16x32xf32>
    %345 = arith.addf %343, %344 : vector<16x32xf32>
    %c2 = arith.constant 2 : index
    %c0_147 = arith.constant 0 : index
    %c0_148 = arith.constant 0 : index
    %346 = vector.load %arg9[%c2, %c0_147, %c0_148] : memref<4x32x32xf32, #tpu.memory_space<vmem>>, vector<1x32x32xf32>
    %347 = vector.shape_cast %346 : vector<1x32x32xf32> to vector<32x32xf32>
    %c2_149 = arith.constant 2 : index
    %c0_150 = arith.constant 0 : index
    %c0_151 = arith.constant 0 : index
    %348 = vector.load %arg10[%c2_149, %c0_150, %c0_151] : memref<4x32x32xf32, #tpu.memory_space<vmem>>, vector<1x32x32xf32>
    %349 = vector.shape_cast %348 : vector<1x32x32xf32> to vector<32x32xf32>
    %c2_152 = arith.constant 2 : index
    %c0_153 = arith.constant 0 : index
    %c0_154 = arith.constant 0 : index
    %350 = vector.load %arg11[%c2_152, %c0_153, %c0_154] : memref<4x32x32xf32, #tpu.memory_space<vmem>>, vector<1x32x32xf32>
    %351 = vector.shape_cast %350 : vector<1x32x32xf32> to vector<32x32xf32>
    %c2_155 = arith.constant 2 : index
    %c0_156 = arith.constant 0 : index
    %c0_157 = arith.constant 0 : index
    %352 = vector.load %arg12[%c2_155, %c0_156, %c0_157] : memref<4x32x32xf32, #tpu.memory_space<vmem>>, vector<1x32x32xf32>
    %353 = vector.shape_cast %352 : vector<1x32x32xf32> to vector<32x32xf32>
    %c2_158 = arith.constant 2 : index
    %c0_159 = arith.constant 0 : index
    %c0_160 = arith.constant 0 : index
    %354 = vector.load %arg13[%c2_158, %c0_159, %c0_160] : memref<4x32x128xf32, #tpu.memory_space<vmem>>, vector<1x32x128xf32>
    %355 = vector.shape_cast %354 : vector<1x32x128xf32> to vector<32x128xf32>
    %c2_161 = arith.constant 2 : index
    %c0_162 = arith.constant 0 : index
    %c0_163 = arith.constant 0 : index
    %356 = vector.load %arg14[%c2_161, %c0_162, %c0_163] : memref<4x128x32xf32, #tpu.memory_space<vmem>>, vector<1x128x32xf32>
    %357 = vector.shape_cast %356 : vector<1x128x32xf32> to vector<128x32xf32>
    %c2_164 = arith.constant 2 : index
    %c0_165 = arith.constant 0 : index
    %c0_166 = arith.constant 0 : index
    %358 = vector.load %arg16[%c2_164, %c0_165, %c0_166] : memref<4x1x128xf32, #tpu.memory_space<vmem>>, vector<1x1x128xf32>
    %359 = vector.shape_cast %358 : vector<1x1x128xf32> to vector<1x128xf32>
    %c2_167 = arith.constant 2 : index
    %c0_168 = arith.constant 0 : index
    %c0_169 = arith.constant 0 : index
    %360 = vector.load %arg15[%c2_167, %c0_168, %c0_169] : memref<4x9x32xf32, #tpu.memory_space<vmem>>, vector<1x9x32xf32>
    %361 = vector.shape_cast %360 : vector<1x9x32xf32> to vector<9x32xf32>
    %362 = vector.extract_strided_slice %361 {offsets = [0, 0], sizes = [1, 32], strides = [1, 1]} : vector<9x32xf32> to vector<1x32xf32>
    %363 = vector.extract_strided_slice %361 {offsets = [1, 0], sizes = [1, 32], strides = [1, 1]} : vector<9x32xf32> to vector<1x32xf32>
    %364 = vector.extract_strided_slice %361 {offsets = [2, 0], sizes = [1, 32], strides = [1, 1]} : vector<9x32xf32> to vector<1x32xf32>
    %365 = vector.extract_strided_slice %361 {offsets = [3, 0], sizes = [1, 32], strides = [1, 1]} : vector<9x32xf32> to vector<1x32xf32>
    %366 = vector.extract_strided_slice %361 {offsets = [4, 0], sizes = [1, 32], strides = [1, 1]} : vector<9x32xf32> to vector<1x32xf32>
    %367 = vector.extract_strided_slice %361 {offsets = [5, 0], sizes = [1, 32], strides = [1, 1]} : vector<9x32xf32> to vector<1x32xf32>
    %368 = vector.extract_strided_slice %361 {offsets = [6, 0], sizes = [1, 32], strides = [1, 1]} : vector<9x32xf32> to vector<1x32xf32>
    %369 = vector.extract_strided_slice %361 {offsets = [7, 0], sizes = [1, 32], strides = [1, 1]} : vector<9x32xf32> to vector<1x32xf32>
    %370 = vector.extract_strided_slice %361 {offsets = [8, 0], sizes = [1, 32], strides = [1, 1]} : vector<9x32xf32> to vector<1x32xf32>
    %cst_170 = arith.constant dense<0.000000e+00> : vector<16x32xf32>
    %371 = tpu.matmul %186, %347, %cst_170 {dimension_numbers = #tpu.dot_dimension_numbers<[1], [0], [0], [1], [0, 0, 1, 1], [], []>} : vector<16x32xf32>, vector<32x32xf32>, vector<16x32xf32> -> vector<16x32xf32>
    %372 = vector.broadcast %362 : vector<1x32xf32> to vector<16x32xf32>
    %373 = arith.addf %371, %372 : vector<16x32xf32>
    %cst_171 = arith.constant dense<0.000000e+00> : vector<16x32xf32>
    %374 = tpu.matmul %345, %349, %cst_171 {dimension_numbers = #tpu.dot_dimension_numbers<[1], [0], [0], [1], [0, 0, 1, 1], [], []>} : vector<16x32xf32>, vector<32x32xf32>, vector<16x32xf32> -> vector<16x32xf32>
    %375 = vector.broadcast %363 : vector<1x32xf32> to vector<16x32xf32>
    %376 = arith.addf %374, %375 : vector<16x32xf32>
    %cst_172 = arith.constant dense<0.000000e+00> : vector<16x32xf32>
    %377 = tpu.matmul %345, %351, %cst_172 {dimension_numbers = #tpu.dot_dimension_numbers<[1], [0], [0], [1], [0, 0, 1, 1], [], []>} : vector<16x32xf32>, vector<32x32xf32>, vector<16x32xf32> -> vector<16x32xf32>
    %378 = vector.broadcast %364 : vector<1x32xf32> to vector<16x32xf32>
    %379 = arith.addf %377, %378 : vector<16x32xf32>
    %380 = vector.extract_strided_slice %373 {offsets = [0, 0], sizes = [8, 8], strides = [1, 1]} : vector<16x32xf32> to vector<8x8xf32>
    %381 = vector.extract_strided_slice %376 {offsets = [0, 0], sizes = [8, 8], strides = [1, 1]} : vector<16x32xf32> to vector<8x8xf32>
    %cst_173 = arith.constant dense<0.000000e+00> : vector<8x8xf32>
    %382 = tpu.matmul %380, %381, %cst_173 {dimension_numbers = #tpu.dot_dimension_numbers<[1], [1], [0], [0], [0, 0, 1, 0], [], []>} : vector<8x8xf32>, vector<8x8xf32>, vector<8x8xf32> -> vector<8x8xf32>
    %383 = vector.extract_strided_slice %373 {offsets = [0, 8], sizes = [8, 8], strides = [1, 1]} : vector<16x32xf32> to vector<8x8xf32>
    %384 = vector.extract_strided_slice %376 {offsets = [0, 8], sizes = [8, 8], strides = [1, 1]} : vector<16x32xf32> to vector<8x8xf32>
    %cst_174 = arith.constant dense<0.000000e+00> : vector<8x8xf32>
    %385 = tpu.matmul %383, %384, %cst_174 {dimension_numbers = #tpu.dot_dimension_numbers<[1], [1], [0], [0], [0, 0, 1, 0], [], []>} : vector<8x8xf32>, vector<8x8xf32>, vector<8x8xf32> -> vector<8x8xf32>
    %386 = vector.extract_strided_slice %373 {offsets = [0, 16], sizes = [8, 8], strides = [1, 1]} : vector<16x32xf32> to vector<8x8xf32>
    %387 = vector.extract_strided_slice %376 {offsets = [0, 16], sizes = [8, 8], strides = [1, 1]} : vector<16x32xf32> to vector<8x8xf32>
    %cst_175 = arith.constant dense<0.000000e+00> : vector<8x8xf32>
    %388 = tpu.matmul %386, %387, %cst_175 {dimension_numbers = #tpu.dot_dimension_numbers<[1], [1], [0], [0], [0, 0, 1, 0], [], []>} : vector<8x8xf32>, vector<8x8xf32>, vector<8x8xf32> -> vector<8x8xf32>
    %389 = vector.extract_strided_slice %373 {offsets = [0, 24], sizes = [8, 8], strides = [1, 1]} : vector<16x32xf32> to vector<8x8xf32>
    %390 = vector.extract_strided_slice %376 {offsets = [0, 24], sizes = [8, 8], strides = [1, 1]} : vector<16x32xf32> to vector<8x8xf32>
    %cst_176 = arith.constant dense<0.000000e+00> : vector<8x8xf32>
    %391 = tpu.matmul %389, %390, %cst_176 {dimension_numbers = #tpu.dot_dimension_numbers<[1], [1], [0], [0], [0, 0, 1, 0], [], []>} : vector<8x8xf32>, vector<8x8xf32>, vector<8x8xf32> -> vector<8x8xf32>
    %392 = vector.extract_strided_slice %373 {offsets = [8, 0], sizes = [8, 8], strides = [1, 1]} : vector<16x32xf32> to vector<8x8xf32>
    %393 = vector.extract_strided_slice %376 {offsets = [8, 0], sizes = [8, 8], strides = [1, 1]} : vector<16x32xf32> to vector<8x8xf32>
    %cst_177 = arith.constant dense<0.000000e+00> : vector<8x8xf32>
    %394 = tpu.matmul %392, %393, %cst_177 {dimension_numbers = #tpu.dot_dimension_numbers<[1], [1], [0], [0], [0, 0, 1, 0], [], []>} : vector<8x8xf32>, vector<8x8xf32>, vector<8x8xf32> -> vector<8x8xf32>
    %395 = vector.extract_strided_slice %373 {offsets = [8, 8], sizes = [8, 8], strides = [1, 1]} : vector<16x32xf32> to vector<8x8xf32>
    %396 = vector.extract_strided_slice %376 {offsets = [8, 8], sizes = [8, 8], strides = [1, 1]} : vector<16x32xf32> to vector<8x8xf32>
    %cst_178 = arith.constant dense<0.000000e+00> : vector<8x8xf32>
    %397 = tpu.matmul %395, %396, %cst_178 {dimension_numbers = #tpu.dot_dimension_numbers<[1], [1], [0], [0], [0, 0, 1, 0], [], []>} : vector<8x8xf32>, vector<8x8xf32>, vector<8x8xf32> -> vector<8x8xf32>
    %398 = vector.extract_strided_slice %373 {offsets = [8, 16], sizes = [8, 8], strides = [1, 1]} : vector<16x32xf32> to vector<8x8xf32>
    %399 = vector.extract_strided_slice %376 {offsets = [8, 16], sizes = [8, 8], strides = [1, 1]} : vector<16x32xf32> to vector<8x8xf32>
    %cst_179 = arith.constant dense<0.000000e+00> : vector<8x8xf32>
    %400 = tpu.matmul %398, %399, %cst_179 {dimension_numbers = #tpu.dot_dimension_numbers<[1], [1], [0], [0], [0, 0, 1, 0], [], []>} : vector<8x8xf32>, vector<8x8xf32>, vector<8x8xf32> -> vector<8x8xf32>
    %401 = vector.extract_strided_slice %373 {offsets = [8, 24], sizes = [8, 8], strides = [1, 1]} : vector<16x32xf32> to vector<8x8xf32>
    %402 = vector.extract_strided_slice %376 {offsets = [8, 24], sizes = [8, 8], strides = [1, 1]} : vector<16x32xf32> to vector<8x8xf32>
    %cst_180 = arith.constant dense<0.000000e+00> : vector<8x8xf32>
    %403 = tpu.matmul %401, %402, %cst_180 {dimension_numbers = #tpu.dot_dimension_numbers<[1], [1], [0], [0], [0, 0, 1, 0], [], []>} : vector<8x8xf32>, vector<8x8xf32>, vector<8x8xf32> -> vector<8x8xf32>
    %404 = tpu.concatenate %382, %385, %388, %391, %394, %397, %400, %403 in 0 : vector<8x8xf32>, vector<8x8xf32>, vector<8x8xf32>, vector<8x8xf32>, vector<8x8xf32>, vector<8x8xf32>, vector<8x8xf32>, vector<8x8xf32> -> vector<64x8xf32>
    %cst_181 = arith.constant dense<0xFF800000> : vector<64xf32>
    %405 = vector.multi_reduction <maximumf>, %404, %cst_181 [1] : vector<64x8xf32> to vector<64xf32>
    %406 = vector.shape_cast %405 : vector<64xf32> to vector<64x1xf32>
    %407 = vector.broadcast %406 : vector<64x1xf32> to vector<64x8xf32>
    %408 = arith.subf %404, %407 : vector<64x8xf32>
    %409 = math.exp %408 : vector<64x8xf32>
    %cst_182 = arith.constant dense<0.000000e+00> : vector<64xf32>
    %410 = vector.multi_reduction <add>, %409, %cst_182 [1] : vector<64x8xf32> to vector<64xf32>
    %411 = vector.shape_cast %410 : vector<64xf32> to vector<64x1xf32>
    %412 = tpu.reciprocal %411 : vector<64x1xf32> -> vector<64x1xf32>
    %413 = vector.broadcast %412 : vector<64x1xf32> to vector<64x8xf32>
    %414 = arith.mulf %409, %413 : vector<64x8xf32>
    %415 = vector.extract_strided_slice %414 {offsets = [0, 0], sizes = [8, 8], strides = [1, 1]} : vector<64x8xf32> to vector<8x8xf32>
    %416 = vector.extract_strided_slice %379 {offsets = [0, 0], sizes = [8, 8], strides = [1, 1]} : vector<16x32xf32> to vector<8x8xf32>
    %cst_183 = arith.constant dense<0.000000e+00> : vector<8x8xf32>
    %417 = tpu.matmul %415, %416, %cst_183 {dimension_numbers = #tpu.dot_dimension_numbers<[1], [0], [0], [1], [0, 0, 1, 1], [], []>} : vector<8x8xf32>, vector<8x8xf32>, vector<8x8xf32> -> vector<8x8xf32>
    %418 = vector.extract_strided_slice %414 {offsets = [8, 0], sizes = [8, 8], strides = [1, 1]} : vector<64x8xf32> to vector<8x8xf32>
    %419 = vector.extract_strided_slice %379 {offsets = [0, 8], sizes = [8, 8], strides = [1, 1]} : vector<16x32xf32> to vector<8x8xf32>
    %cst_184 = arith.constant dense<0.000000e+00> : vector<8x8xf32>
    %420 = tpu.matmul %418, %419, %cst_184 {dimension_numbers = #tpu.dot_dimension_numbers<[1], [0], [0], [1], [0, 0, 1, 1], [], []>} : vector<8x8xf32>, vector<8x8xf32>, vector<8x8xf32> -> vector<8x8xf32>
    %421 = vector.extract_strided_slice %414 {offsets = [16, 0], sizes = [8, 8], strides = [1, 1]} : vector<64x8xf32> to vector<8x8xf32>
    %422 = vector.extract_strided_slice %379 {offsets = [0, 16], sizes = [8, 8], strides = [1, 1]} : vector<16x32xf32> to vector<8x8xf32>
    %cst_185 = arith.constant dense<0.000000e+00> : vector<8x8xf32>
    %423 = tpu.matmul %421, %422, %cst_185 {dimension_numbers = #tpu.dot_dimension_numbers<[1], [0], [0], [1], [0, 0, 1, 1], [], []>} : vector<8x8xf32>, vector<8x8xf32>, vector<8x8xf32> -> vector<8x8xf32>
    %424 = vector.extract_strided_slice %414 {offsets = [24, 0], sizes = [8, 8], strides = [1, 1]} : vector<64x8xf32> to vector<8x8xf32>
    %425 = vector.extract_strided_slice %379 {offsets = [0, 24], sizes = [8, 8], strides = [1, 1]} : vector<16x32xf32> to vector<8x8xf32>
    %cst_186 = arith.constant dense<0.000000e+00> : vector<8x8xf32>
    %426 = tpu.matmul %424, %425, %cst_186 {dimension_numbers = #tpu.dot_dimension_numbers<[1], [0], [0], [1], [0, 0, 1, 1], [], []>} : vector<8x8xf32>, vector<8x8xf32>, vector<8x8xf32> -> vector<8x8xf32>
    %427 = tpu.concatenate %417, %420, %423, %426 in 1 : vector<8x8xf32>, vector<8x8xf32>, vector<8x8xf32>, vector<8x8xf32> -> vector<8x32xf32>
    %428 = vector.extract_strided_slice %414 {offsets = [32, 0], sizes = [8, 8], strides = [1, 1]} : vector<64x8xf32> to vector<8x8xf32>
    %429 = vector.extract_strided_slice %379 {offsets = [8, 0], sizes = [8, 8], strides = [1, 1]} : vector<16x32xf32> to vector<8x8xf32>
    %cst_187 = arith.constant dense<0.000000e+00> : vector<8x8xf32>
    %430 = tpu.matmul %428, %429, %cst_187 {dimension_numbers = #tpu.dot_dimension_numbers<[1], [0], [0], [1], [0, 0, 1, 1], [], []>} : vector<8x8xf32>, vector<8x8xf32>, vector<8x8xf32> -> vector<8x8xf32>
    %431 = vector.extract_strided_slice %414 {offsets = [40, 0], sizes = [8, 8], strides = [1, 1]} : vector<64x8xf32> to vector<8x8xf32>
    %432 = vector.extract_strided_slice %379 {offsets = [8, 8], sizes = [8, 8], strides = [1, 1]} : vector<16x32xf32> to vector<8x8xf32>
    %cst_188 = arith.constant dense<0.000000e+00> : vector<8x8xf32>
    %433 = tpu.matmul %431, %432, %cst_188 {dimension_numbers = #tpu.dot_dimension_numbers<[1], [0], [0], [1], [0, 0, 1, 1], [], []>} : vector<8x8xf32>, vector<8x8xf32>, vector<8x8xf32> -> vector<8x8xf32>
    %434 = vector.extract_strided_slice %414 {offsets = [48, 0], sizes = [8, 8], strides = [1, 1]} : vector<64x8xf32> to vector<8x8xf32>
    %435 = vector.extract_strided_slice %379 {offsets = [8, 16], sizes = [8, 8], strides = [1, 1]} : vector<16x32xf32> to vector<8x8xf32>
    %cst_189 = arith.constant dense<0.000000e+00> : vector<8x8xf32>
    %436 = tpu.matmul %434, %435, %cst_189 {dimension_numbers = #tpu.dot_dimension_numbers<[1], [0], [0], [1], [0, 0, 1, 1], [], []>} : vector<8x8xf32>, vector<8x8xf32>, vector<8x8xf32> -> vector<8x8xf32>
    %437 = vector.extract_strided_slice %414 {offsets = [56, 0], sizes = [8, 8], strides = [1, 1]} : vector<64x8xf32> to vector<8x8xf32>
    %438 = vector.extract_strided_slice %379 {offsets = [8, 24], sizes = [8, 8], strides = [1, 1]} : vector<16x32xf32> to vector<8x8xf32>
    %cst_190 = arith.constant dense<0.000000e+00> : vector<8x8xf32>
    %439 = tpu.matmul %437, %438, %cst_190 {dimension_numbers = #tpu.dot_dimension_numbers<[1], [0], [0], [1], [0, 0, 1, 1], [], []>} : vector<8x8xf32>, vector<8x8xf32>, vector<8x8xf32> -> vector<8x8xf32>
    %440 = tpu.concatenate %430, %433, %436, %439 in 1 : vector<8x8xf32>, vector<8x8xf32>, vector<8x8xf32>, vector<8x8xf32> -> vector<8x32xf32>
    %441 = tpu.concatenate %427, %440 in 0 : vector<8x32xf32>, vector<8x32xf32> -> vector<16x32xf32>
    %cst_191 = arith.constant dense<0.000000e+00> : vector<16x32xf32>
    %442 = tpu.matmul %441, %353, %cst_191 {dimension_numbers = #tpu.dot_dimension_numbers<[1], [0], [0], [1], [0, 0, 1, 1], [], []>} : vector<16x32xf32>, vector<32x32xf32>, vector<16x32xf32> -> vector<16x32xf32>
    %443 = vector.broadcast %365 : vector<1x32xf32> to vector<16x32xf32>
    %444 = arith.addf %442, %443 : vector<16x32xf32>
    %445 = arith.addf %186, %444 : vector<16x32xf32>
    %cst_192 = arith.constant dense<0.000000e+00> : vector<16xf32>
    %446 = vector.multi_reduction <add>, %445, %cst_192 [1] : vector<16x32xf32> to vector<16xf32>
    %447 = vector.shape_cast %446 : vector<16xf32> to vector<16x1xf32>
    %cst_193 = arith.constant 3.200000e+01 : f32
    %448 = vector.broadcast %cst_193 : f32 to vector<16x1xf32>
    %449 = arith.divf %447, %448 : vector<16x1xf32>
    %450 = vector.broadcast %449 : vector<16x1xf32> to vector<16x32xf32>
    %451 = arith.subf %445, %450 : vector<16x32xf32>
    %452 = arith.mulf %451, %451 : vector<16x32xf32>
    %cst_194 = arith.constant dense<0.000000e+00> : vector<16xf32>
    %453 = vector.multi_reduction <add>, %452, %cst_194 [1] : vector<16x32xf32> to vector<16xf32>
    %454 = vector.shape_cast %453 : vector<16xf32> to vector<16x1xf32>
    %cst_195 = arith.constant 3.200000e+01 : f32
    %455 = vector.broadcast %cst_195 : f32 to vector<16x1xf32>
    %456 = arith.divf %454, %455 : vector<16x1xf32>
    %457 = vector.broadcast %449 : vector<16x1xf32> to vector<16x32xf32>
    %458 = arith.subf %445, %457 : vector<16x32xf32>
    %cst_196 = arith.constant 9.99999974E-6 : f32
    %459 = vector.broadcast %cst_196 : f32 to vector<16x1xf32>
    %460 = arith.addf %456, %459 : vector<16x1xf32>
    %461 = math.rsqrt %460 : vector<16x1xf32>
    %462 = vector.broadcast %461 : vector<16x1xf32> to vector<16x32xf32>
    %463 = arith.mulf %458, %462 : vector<16x32xf32>
    %464 = vector.broadcast %366 : vector<1x32xf32> to vector<16x32xf32>
    %465 = arith.mulf %463, %464 : vector<16x32xf32>
    %466 = vector.broadcast %367 : vector<1x32xf32> to vector<16x32xf32>
    %467 = arith.addf %465, %466 : vector<16x32xf32>
    %cst_197 = arith.constant dense<0.000000e+00> : vector<16x128xf32>
    %468 = tpu.matmul %467, %355, %cst_197 {dimension_numbers = #tpu.dot_dimension_numbers<[1], [0], [0], [1], [0, 0, 1, 1], [], []>} : vector<16x32xf32>, vector<32x128xf32>, vector<16x128xf32> -> vector<16x128xf32>
    %469 = vector.broadcast %359 : vector<1x128xf32> to vector<16x128xf32>
    %470 = arith.addf %468, %469 : vector<16x128xf32>
    %cst_198 = arith.constant 5.000000e-01 : f32
    %471 = vector.broadcast %cst_198 : f32 to vector<16x128xf32>
    %472 = arith.mulf %471, %470 : vector<16x128xf32>
    %cst_199 = arith.constant 0.707106769 : f32
    %473 = vector.broadcast %cst_199 : f32 to vector<16x128xf32>
    %474 = arith.mulf %470, %473 : vector<16x128xf32>
    %475 = math.erf %474 : vector<16x128xf32>
    %cst_200 = arith.constant 1.000000e+00 : f32
    %476 = vector.broadcast %cst_200 : f32 to vector<16x128xf32>
    %477 = arith.addf %476, %475 : vector<16x128xf32>
    %478 = arith.mulf %472, %477 : vector<16x128xf32>
    %cst_201 = arith.constant dense<0.000000e+00> : vector<16x32xf32>
    %479 = tpu.matmul %478, %357, %cst_201 {dimension_numbers = #tpu.dot_dimension_numbers<[1], [0], [0], [1], [0, 0, 1, 1], [], []>} : vector<16x128xf32>, vector<128x32xf32>, vector<16x32xf32> -> vector<16x32xf32>
    %480 = vector.broadcast %368 : vector<1x32xf32> to vector<16x32xf32>
    %481 = arith.addf %479, %480 : vector<16x32xf32>
    %482 = arith.addf %467, %481 : vector<16x32xf32>
    %cst_202 = arith.constant dense<0.000000e+00> : vector<16xf32>
    %483 = vector.multi_reduction <add>, %482, %cst_202 [1] : vector<16x32xf32> to vector<16xf32>
    %484 = vector.shape_cast %483 : vector<16xf32> to vector<16x1xf32>
    %cst_203 = arith.constant 3.200000e+01 : f32
    %485 = vector.broadcast %cst_203 : f32 to vector<16x1xf32>
    %486 = arith.divf %484, %485 : vector<16x1xf32>
    %487 = vector.broadcast %486 : vector<16x1xf32> to vector<16x32xf32>
    %488 = arith.subf %482, %487 : vector<16x32xf32>
    %489 = arith.mulf %488, %488 : vector<16x32xf32>
    %cst_204 = arith.constant dense<0.000000e+00> : vector<16xf32>
    %490 = vector.multi_reduction <add>, %489, %cst_204 [1] : vector<16x32xf32> to vector<16xf32>
    %491 = vector.shape_cast %490 : vector<16xf32> to vector<16x1xf32>
    %cst_205 = arith.constant 3.200000e+01 : f32
    %492 = vector.broadcast %cst_205 : f32 to vector<16x1xf32>
    %493 = arith.divf %491, %492 : vector<16x1xf32>
    %494 = vector.broadcast %486 : vector<16x1xf32> to vector<16x32xf32>
    %495 = arith.subf %482, %494 : vector<16x32xf32>
    %cst_206 = arith.constant 9.99999974E-6 : f32
    %496 = vector.broadcast %cst_206 : f32 to vector<16x1xf32>
    %497 = arith.addf %493, %496 : vector<16x1xf32>
    %498 = math.rsqrt %497 : vector<16x1xf32>
    %499 = vector.broadcast %498 : vector<16x1xf32> to vector<16x32xf32>
    %500 = arith.mulf %495, %499 : vector<16x32xf32>
    %501 = vector.broadcast %369 : vector<1x32xf32> to vector<16x32xf32>
    %502 = arith.mulf %500, %501 : vector<16x32xf32>
    %503 = vector.broadcast %370 : vector<1x32xf32> to vector<16x32xf32>
    %504 = arith.addf %502, %503 : vector<16x32xf32>
    %c0_207 = arith.constant 0 : index
    %c0_208 = arith.constant 0 : index
    %505 = vector.load %arg17[%c0_207, %c0_208] : memref<1x32xf32, #tpu.memory_space<vmem>>, vector<1x32xf32>
    %c0_209 = arith.constant 0 : index
    %c0_210 = arith.constant 0 : index
    %506 = vector.load %arg18[%c0_209, %c0_210] : memref<1x32xf32, #tpu.memory_space<vmem>>, vector<1x32xf32>
    %cst_211 = arith.constant dense<0.000000e+00> : vector<16xf32>
    %507 = vector.multi_reduction <add>, %504, %cst_211 [1] : vector<16x32xf32> to vector<16xf32>
    %508 = vector.shape_cast %507 : vector<16xf32> to vector<16x1xf32>
    %cst_212 = arith.constant 3.200000e+01 : f32
    %509 = vector.broadcast %cst_212 : f32 to vector<16x1xf32>
    %510 = arith.divf %508, %509 : vector<16x1xf32>
    %511 = vector.broadcast %510 : vector<16x1xf32> to vector<16x32xf32>
    %512 = arith.subf %504, %511 : vector<16x32xf32>
    %513 = arith.mulf %512, %512 : vector<16x32xf32>
    %cst_213 = arith.constant dense<0.000000e+00> : vector<16xf32>
    %514 = vector.multi_reduction <add>, %513, %cst_213 [1] : vector<16x32xf32> to vector<16xf32>
    %515 = vector.shape_cast %514 : vector<16xf32> to vector<16x1xf32>
    %cst_214 = arith.constant 3.200000e+01 : f32
    %516 = vector.broadcast %cst_214 : f32 to vector<16x1xf32>
    %517 = arith.divf %515, %516 : vector<16x1xf32>
    %518 = vector.broadcast %510 : vector<16x1xf32> to vector<16x32xf32>
    %519 = arith.subf %504, %518 : vector<16x32xf32>
    %cst_215 = arith.constant 9.99999974E-6 : f32
    %520 = vector.broadcast %cst_215 : f32 to vector<16x1xf32>
    %521 = arith.addf %517, %520 : vector<16x1xf32>
    %522 = math.rsqrt %521 : vector<16x1xf32>
    %523 = vector.broadcast %522 : vector<16x1xf32> to vector<16x32xf32>
    %524 = arith.mulf %519, %523 : vector<16x32xf32>
    %525 = vector.broadcast %505 : vector<1x32xf32> to vector<16x32xf32>
    %526 = arith.mulf %524, %525 : vector<16x32xf32>
    %527 = vector.broadcast %506 : vector<1x32xf32> to vector<16x32xf32>
    %528 = arith.addf %526, %527 : vector<16x32xf32>
    %529 = vector.extract_strided_slice %528 {offsets = [0, 0], sizes = [8, 32], strides = [1, 1]} : vector<16x32xf32> to vector<8x32xf32>
    %c0_216 = arith.constant 0 : index
    %c0_217 = arith.constant 0 : index
    %c0_218 = arith.constant 0 : index
    %530 = vector.load %arg19[%c0_216, %c0_217, %c0_218] : memref<2x8x32xf32, #tpu.memory_space<vmem>>, vector<1x8x32xf32>
    %531 = vector.shape_cast %530 : vector<1x8x32xf32> to vector<8x32xf32>
    %532 = vector.shape_cast %529 : vector<8x32xf32> to vector<1x8x32xf32>
    tpu.vector_store %arg19[%c0_216, %c0_217, %c0_218], %532 {strides = array<i32>} : memref<2x8x32xf32, #tpu.memory_space<vmem>>, vector<1x8x32xf32>,
    %533 = vector.extract_strided_slice %528 {offsets = [8, 0], sizes = [8, 32], strides = [1, 1]} : vector<16x32xf32> to vector<8x32xf32>
    %c1_219 = arith.constant 1 : index
    %c0_220 = arith.constant 0 : index
    %c0_221 = arith.constant 0 : index
    %534 = vector.load %arg19[%c1_219, %c0_220, %c0_221] : memref<2x8x32xf32, #tpu.memory_space<vmem>>, vector<1x8x32xf32>
    %535 = vector.shape_cast %534 : vector<1x8x32xf32> to vector<8x32xf32>
    %536 = vector.shape_cast %533 : vector<8x32xf32> to vector<1x8x32xf32>
    tpu.vector_store %arg19[%c1_219, %c0_220, %c0_221], %536 {strides = array<i32>} : memref<2x8x32xf32, #tpu.memory_space<vmem>>, vector<1x8x32xf32>,
    return
  }
  func.func @transform_0(%arg0: i32) -> (i32, i32, i32) {
    %c0_i32 = arith.constant 0 : i32
    %c0_i32_0 = arith.constant 0 : i32
    %c0_i32_1 = arith.constant 0 : i32
    return %arg0, %c0_i32, %c0_i32_0 : i32, i32, i32
  }
  func.func @transform_1(%arg0: i32) -> (i32, i32, i32) {
    %c0_i32 = arith.constant 0 : i32
    %c0_i32_0 = arith.constant 0 : i32
    %c0_i32_1 = arith.constant 0 : i32
    return %arg0, %c0_i32, %c0_i32_0 : i32, i32, i32
  }
  func.func @transform_2(%arg0: i32) -> (i32, i32, i32) {
    %c0_i32 = arith.constant 0 : i32
    %c0_i32_0 = arith.constant 0 : i32
    %c0_i32_1 = arith.constant 0 : i32
    %c0_i32_2 = arith.constant 0 : i32
    return %c0_i32, %c0_i32_0, %c0_i32_1 : i32, i32, i32
  }
  func.func @transform_3(%arg0: i32) -> (i32, i32, i32) {
    %c0_i32 = arith.constant 0 : i32
    %c0_i32_0 = arith.constant 0 : i32
    %c0_i32_1 = arith.constant 0 : i32
    %c0_i32_2 = arith.constant 0 : i32
    return %c0_i32, %c0_i32_0, %c0_i32_1 : i32, i32, i32
  }
  func.func @transform_4(%arg0: i32) -> (i32, i32) {
    %c0_i32 = arith.constant 0 : i32
    %c0_i32_0 = arith.constant 0 : i32
    %c0_i32_1 = arith.constant 0 : i32
    return %c0_i32, %c0_i32_0 : i32, i32
  }
  func.func @transform_5(%arg0: i32) -> (i32, i32) {
    %c0_i32 = arith.constant 0 : i32
    %c0_i32_0 = arith.constant 0 : i32
    %c0_i32_1 = arith.constant 0 : i32
    return %c0_i32, %c0_i32_0 : i32, i32
  }
  func.func @transform_6(%arg0: i32) -> (i32, i32) {
    %c0_i32 = arith.constant 0 : i32
    %c0_i32_0 = arith.constant 0 : i32
    %c0_i32_1 = arith.constant 0 : i32
    return %c0_i32, %c0_i32_0 : i32, i32
  }
  func.func @transform_7(%arg0: i32) -> (i32, i32) {
    %c0_i32 = arith.constant 0 : i32
    %c0_i32_0 = arith.constant 0 : i32
    %c0_i32_1 = arith.constant 0 : i32
    return %c0_i32, %c0_i32_0 : i32, i32
  }
  func.func @transform_8(%arg0: i32) -> (i32, i32, i32) {
    %c0_i32 = arith.constant 0 : i32
    %c0_i32_0 = arith.constant 0 : i32
    %c0_i32_1 = arith.constant 0 : i32
    %c0_i32_2 = arith.constant 0 : i32
    return %c0_i32, %c0_i32_0, %c0_i32_1 : i32, i32, i32
  }
  func.func @transform_9(%arg0: i32) -> (i32, i32, i32) {
    %c0_i32 = arith.constant 0 : i32
    %c0_i32_0 = arith.constant 0 : i32
    %c0_i32_1 = arith.constant 0 : i32
    %c0_i32_2 = arith.constant 0 : i32
    return %c0_i32, %c0_i32_0, %c0_i32_1 : i32, i32, i32
  }
  func.func @transform_10(%arg0: i32) -> (i32, i32, i32) {
    %c0_i32 = arith.constant 0 : i32
    %c0_i32_0 = arith.constant 0 : i32
    %c0_i32_1 = arith.constant 0 : i32
    %c0_i32_2 = arith.constant 0 : i32
    return %c0_i32, %c0_i32_0, %c0_i32_1 : i32, i32, i32
  }
  func.func @transform_11(%arg0: i32) -> (i32, i32, i32) {
    %c0_i32 = arith.constant 0 : i32
    %c0_i32_0 = arith.constant 0 : i32
    %c0_i32_1 = arith.constant 0 : i32
    %c0_i32_2 = arith.constant 0 : i32
    return %c0_i32, %c0_i32_0, %c0_i32_1 : i32, i32, i32
  }
  func.func @transform_12(%arg0: i32) -> (i32, i32, i32) {
    %c0_i32 = arith.constant 0 : i32
    %c0_i32_0 = arith.constant 0 : i32
    %c0_i32_1 = arith.constant 0 : i32
    %c0_i32_2 = arith.constant 0 : i32
    return %c0_i32, %c0_i32_0, %c0_i32_1 : i32, i32, i32
  }
  func.func @transform_13(%arg0: i32) -> (i32, i32, i32) {
    %c0_i32 = arith.constant 0 : i32
    %c0_i32_0 = arith.constant 0 : i32
    %c0_i32_1 = arith.constant 0 : i32
    %c0_i32_2 = arith.constant 0 : i32
    return %c0_i32, %c0_i32_0, %c0_i32_1 : i32, i32, i32
  }
  func.func @transform_14(%arg0: i32) -> (i32, i32, i32) {
    %c0_i32 = arith.constant 0 : i32
    %c0_i32_0 = arith.constant 0 : i32
    %c0_i32_1 = arith.constant 0 : i32
    %c0_i32_2 = arith.constant 0 : i32
    return %c0_i32, %c0_i32_0, %c0_i32_1 : i32, i32, i32
  }
  func.func @transform_15(%arg0: i32) -> (i32, i32, i32) {
    %c0_i32 = arith.constant 0 : i32
    %c0_i32_0 = arith.constant 0 : i32
    %c0_i32_1 = arith.constant 0 : i32
    %c0_i32_2 = arith.constant 0 : i32
    return %c0_i32, %c0_i32_0, %c0_i32_1 : i32, i32, i32
  }
  func.func @transform_16(%arg0: i32) -> (i32, i32) {
    %c0_i32 = arith.constant 0 : i32
    %c0_i32_0 = arith.constant 0 : i32
    %c0_i32_1 = arith.constant 0 : i32
    return %c0_i32, %c0_i32_0 : i32, i32
  }
  func.func @transform_17(%arg0: i32) -> (i32, i32) {
    %c0_i32 = arith.constant 0 : i32
    %c0_i32_0 = arith.constant 0 : i32
    %c0_i32_1 = arith.constant 0 : i32
    return %c0_i32, %c0_i32_0 : i32, i32
  }
  func.func @transform_18(%arg0: i32) -> (i32, i32, i32) {
    %c0_i32 = arith.constant 0 : i32
    %c0_i32_0 = arith.constant 0 : i32
    %c0_i32_1 = arith.constant 0 : i32
    return %arg0, %c0_i32, %c0_i32_0 : i32, i32, i32
  }
}

</mosaic_0001>

<bundles_post_ra>
// kernel: tpu_custom_call.1
= control target key start
LH: loop header
LB: loop body
LE: loop exit
PB: predicated region body
PF: predicated region fallthrough
CT: control target
= control target key end

     0   :  { %s5007_s0 = inlined_call_operand.vmem [shape: f32[2,8,16], index: 0, kind: input, shape index: {}]   ;;  %s5008_s1 = inlined_call_operand.vmem [shape: f32[2,8,16], index: 1, kind: input, shape index: {}]   ;;  %s5009_s2 = inlined_call_operand.vmem [shape: f32[1,8,16], index: 2, kind: input, shape index: {}]   ;;  %s5010_s3 = inlined_call_operand.vmem [shape: f32[1,8,16], index: 3, kind: input, shape index: {}]   ;;  %s5011_s4 = inlined_call_operand.vmem [shape: f32[16,32], index: 4, kind: input, shape index: {}]   ;;  %s5012_s5 = inlined_call_operand.vmem [shape: f32[1,32], index: 5, kind: input, shape index: {}]   ;;  %s5013_s6 = inlined_call_operand.vmem [shape: f32[16,32], index: 6, kind: input, shape index: {}]   ;;  %s5014_s7 = inlined_call_operand.vmem [shape: f32[1,32], index: 7, kind: input, shape index: {}]   ;;  %s5015_s8 = inlined_call_operand.vmem [shape: f32[4,32,32], index: 8, kind: input, shape index: {}]   ;;  %s5016_s9 = inlined_call_operand.vmem [shape: f32[4,32,32], index: 9, kind: input, shape index: {}]   ;;  %s5017_s10 = inlined_call_operand.vmem [shape: f32[4,32,32], index: 10, kind: input, shape index: {}]   ;;  %s5018_s11 = inlined_call_operand.vmem [shape: f32[4,32,32], index: 11, kind: input, shape index: {}]   ;;  %s5019_s12 = inlined_call_operand.vmem [shape: f32[4,32,128], index: 12, kind: input, shape index: {}]   ;;  %s5020_s13 = inlined_call_operand.vmem [shape: f32[4,128,32], index: 13, kind: input, shape index: {}]   ;;  %s5021_s14 = inlined_call_operand.vmem [shape: f32[4,9,32], index: 14, kind: input, shape index: {}]   ;;  %s5022_s15 = inlined_call_operand.vmem [shape: f32[4,1,128], index: 15, kind: input, shape index: {}]   ;;  %s5023_s16 = inlined_call_operand.vmem [shape: f32[1,32], index: 16, kind: input, shape index: {}]   ;;  %s5024_s17 = inlined_call_operand.vmem [shape: f32[1,32], index: 17, kind: input, shape index: {}]   ;;  %s5025_s18 = inlined_call_operand.hbm [shape: f32[2,8,32], index: 18, kind: output, shape index: {}]  }
   0x1   :  { %5028 = sst [smem:[#allocation5_spill]] %s5007_s0 }
   0x2   :  { %5029 = sst [smem:[#allocation6_spill]] %s5008_s1 }
   0x3   :  { %5030 = sst [smem:[#allocation7_spill]] %s5009_s2 }
   0x4   :  { %v73_v0 = vld [vmem:[%s5011_s4 + $0x8] sm:$0xff]  ;;  %v72_v1 = vld [vmem:[%s5011_s4] sm:$0xff]  ;;  %s5031_s1 = sld [smem:[#allocation7_spill]]  ;;  %vm78_vm0 = vcmask 130048   ;;  %v146_v11 = vld [vmem:[%s5015_s8 + $0x18] sm:$0xff] }
   0x5   :  { %99 = vmatpush.msra.mxu0 %v73_v0  ;;  %s5032_s22 = sld [smem:[#allocation5_spill]]  ;;  %v109_v4 = vld [vmem:[%s5013_s6 + $0x8] sm:$0xff]  ;;  %v108_v5 = vld [vmem:[%s5013_s6] sm:$0xff]  ;;  %v145_v13 = vld [vmem:[%s5015_s8 + $0x10] sm:$0xff]  ;;  %202 = vmatpush.msra.mxu3 %v146_v11 }
   0x6   :  { %134 = vmatpush.msra.mxu1 %v109_v4  ;;  %v66_v7 = vld [vmem:[%s5010_s3] sm:$0xff]  ;;  %s5033_s29 = sld [smem:[#allocation6_spill]] }
   0x7   :  { %100 = vmatpush.msra.mxu0 %v72_v1  ;;  %203 = vmatpush.msra.mxu3 %v145_v13 }
   0x8   :  { %135 = vmatpush.msra.mxu1 %v108_v5 }
   0xa   :  { %v60_v2 = vld [vmem:[%s5031_s1] sm:$0xff] }
   0xb   :  { %v61_v3 = vld [vmem:[%s5032_s22] sm:$0xff]  ;;  %v3375_v9 = vld [vmem:[%s5032_s22 + $0x8] sm:$0xff] }
   0xc   :  { %v62_v6 = vadd.f32 %v61_v3, %v60_v2  ;;  %v67_v8 = vld [vmem:[%s5033_s29] sm:$0xff]  ;;  %v3376_v12 = vld [vmem:[%s5033_s29 + $0x8] sm:$0xff] }
   0xd   :  { %v68_v10 = vadd.f32 %v67_v8, %v66_v7 }
   0xe   :  { %3377 = vmatmul.msk.f32.vlgmr.msra.gmra.mxu0 %vm78_vm0, %v62_v6 }
   0xf   :  { %3379 = vmatmul.msk.f32.vlgmr.msra.gmra.mxu1 %vm78_vm0, %v68_v10 }
  0x10   :  { %23 = vsyncpa [#allocation3], 0  ;;  %v65_v14 = vadd.f32 %v3375_v9, %v60_v2  ;;  %v71_v15 = vadd.f32 %v3376_v12, %v66_v7  ;;  %v144_v16 = vld [vmem:[%s5015_s8 + $0x8] sm:$0xff]  ;;  %v143_v17 = vld [vmem:[%s5015_s8] sm:$0xff]  ;;  %vm183_vm1 = vcmask 261120   ;;  %s3768_s26 = smov 120  }
  0x11   :  { %204 = vmatpush.msra.mxu3 %v144_v16  ;;  %v154_v18 = vld [vmem:[%s5017_s10 + $0x18] sm:$0xff]  ;;  %v153_v19 = vld [vmem:[%s5017_s10 + $0x10] sm:$0xff]  ;;  %v152_v20 = vld [vmem:[%s5017_s10 + $0x8] sm:$0xff]  ;;  %s3769_s27 = smov 112   ;;  %vm267_vm2 = vcmask 64512   ;;  %s3770_s28 = smov 104  }
  0x12   :  { %256 = vmatpush.msrb.mxu0 %v154_v18  ;;  %v151_v21 = vld [vmem:[%s5017_s10] sm:$0xff]  ;;  %v150_v22 = vld [vmem:[%s5016_s9 + $0x18] sm:$0xff]  ;;  %v149_v23 = vld [vmem:[%s5016_s9 + $0x10] sm:$0xff]  ;;  %s3771_s21 = smov 24   ;;  %s3772_s22 = smov 16  }
  0x13   :  { %205 = vmatpush.msra.mxu3 %v143_v17  ;;  %v148_v24 = vld [vmem:[%s5016_s9 + $0x8] sm:$0xff]  ;;  %v147_v25 = vld [vmem:[%s5016_s9] sm:$0xff]  ;;  %s3773_s2 = smov 8   ;;  %s3363_s0 = sshll.u32 %s5025_s18, 4  ;;  %s3364_s0 = int_to_ptr.hbm [resolvable:$true] %s3363_s0 }
  0x14   :  { %257 = vmatpush.msrb.mxu0 %v153_v19  ;;  %v3591_v26 = vld [vmem:[%s5012_s5] ss:$0 sm:$0xff] }
  0x15   :  { %232 = vmatpush.msrb.mxu3 %v150_v22  ;;  %v3592_v27 = vld [vmem:[%s5014_s7] ss:$0 sm:$0xff] }
  0x16   :  { %3378 = vmatmul.msk.f32.gmra.mxu0 %vm78_vm0, %v65_v14  ;;  %v3971_v36 = vld [vmem:[%s5021_s14] sm:$0xff] }
  0x17   :  { %3380 = vmatmul.msk.f32.gmra.mxu1 %vm78_vm0, %v71_v15  ;;  %258 = vmatpush.msrb.mxu0 %v152_v20  ;;  %v182_v37 = vperm.slane %v3971_v36, 0  ;;  %v213_v41 = vperm.slane %v3971_v36, 1  ;;  %v243_v52 = vperm.slane %v3971_v36, 2 }
  0x18   :  { %233 = vmatpush.msrb.mxu3 %v149_v23 }
  0x19   :  { %259 = vmatpush.msrb.mxu0 %v151_v21 }
  0x1a   :  { %234 = vmatpush.msrb.mxu3 %v148_v24 }
  0x1c   :  { %235 = vmatpush.msrb.mxu3 %v147_v25 }
  0x8b   :  { %v102_v28 = vpop.f32.mrf.mxu0 }
  0x8c   :  { %v3948_v29 = vadd.f32 %v3591_v26, %v102_v28  ;;  %v137_v30 = vpop.f32.mrf.mxu1 }
  0x8d   :  { %v3950_v31 = vadd.f32 %v3592_v27, %v137_v30 }
  0x8e   :  { %3381 = vmatmul.msk.f32.vlgmr.msra.gmra.mxu3 %vm183_vm1, %v3948_v29 }
  0x8f   :  { %3385 = vmatmul.msk.f32.vlgmr.msrb.gmra.mxu0 %vm183_vm1, %v3950_v31 }
  0x93   :  { %v105_v32 = vpop.f32.mrf.mxu0 }
  0x94   :  { %v3956_v33 = vadd.f32 %v3591_v26, %v105_v32  ;;  %v140_v34 = vpop.f32.mrf.mxu1 }
  0x95   :  { %v3958_v35 = vadd.f32 %v3592_v27, %v140_v34 }
  0x96   :  { %3382 = vmatmul.msk.f32.gmra.mxu3 %vm183_vm1, %v3956_v33 }
  0x97   :  { %3386 = vmatmul.msk.f32.gmra.mxu0 %vm183_vm1, %v3958_v35 }
  0x9e   :  { %3383 = vmatmul.msk.f32.vlgmr.msrb.gmra.mxu3 %vm183_vm1, %v3950_v31 }
  0xa6   :  { %3384 = vmatmul.msk.f32.gmra.mxu3 %vm183_vm1, %v3958_v35 }
 0x10c   :  { %v261_v51 = vpop.f32.mrf.mxu0 }
 0x10d   :  { %v3993_v56 = vadd.f32 %v261_v51, %v243_v52 }
 0x111   :  { %v207_v38 = vpop.f32.mrf.mxu3 }
 0x112   :  { %v208_v39 = vadd.f32 %v207_v38, %v182_v37 }
 0x114   :  { %294 = vrot.lane.b32.xlu1 %v208_v39, %s3768_s26  ;;  %v264_v57 = vpop.f32.mrf.mxu0 }
 0x115   :  { %v4000_v60 = vadd.f32 %v264_v57, %v243_v52 }
 0x117   :  { %v3586_v51 = vpack.i.bf16 %v4000_v60, %v3993_v56 }
 0x119   :  { %v210_v40 = vpop.f32.mrf.mxu3 }
 0x11a   :  { %v211_v46 = vadd.f32 %v210_v40, %v182_v37 }
 0x11c   :  { %322 = vrot.lane.b32.xlu1 %v208_v39, %s3769_s27 }
 0x121   :  { %v237_v42 = vpop.f32.mrf.mxu3 }
 0x122   :  { %v238_v43 = vadd.f32 %v237_v42, %v213_v41 }
 0x124   :  { %296 = vrot.lane.b32.xlu0 %v238_v43, %s3768_s26  ;;  %3387 = vmatpush.xpose.msk.msrb.mxu1 %vm267_vm2, %v238_v43 }
 0x125   :  { %350 = vrot.lane.b32.xlu1 %v208_v39, %s3770_s28 }
 0x127   :  { %3388 = vmatmul.msk.f32.vlgmr.msrb.gmra.mxu1 %vm267_vm2, %v208_v39 }
 0x129   :  { %v240_v44 = vpop.f32.mrf.mxu3 }
 0x12a   :  { %v241_v45 = vadd.f32 %v240_v44, %v213_v41 }
 0x12c   :  { %406 = vrot.lane.b32.xlu2 %v241_v45, %s3768_s26  ;;  %324 = vrot.lane.b32.xlu0 %v238_v43, %s3769_s27 }
 0x12d   :  { %432 = vrot.lane.b32.xlu1 %v211_v46, %s3769_s27 }
 0x134   :  { %352 = vrot.lane.b32.xlu0 %v238_v43, %s3770_s28  ;;  %404 = vrot.lane.b32.xlu2 %v211_v46, %s3768_s26 }
 0x13c   :  { %462 = vrot.lane.b32.xlu0 %v241_v45, %s3770_s28  ;;  %434 = vrot.lane.b32.xlu2 %v241_v45, %s3769_s27 }
 0x144   :  { %460 = vrot.lane.b32.xlu2 %v211_v46, %s3770_s28 }
 0x186   :  { %v407_v47 = vpop.permute.xlu2 %406  ;;  %v295_v48 = vpop.permute.xlu1 %294 }
 0x18e   :  { %v405_v49 = vpop.permute.xlu2 %404  ;;  %v323_v50 = vpop.permute.xlu1 %322 }
 0x196   :  { %v297_v53 = vpop.permute.xlu0 %296  ;;  %v435_v54 = vpop.permute.xlu2 %434 }
 0x197   :  { %v351_v55 = vpop.permute.xlu1 %350  ;;  %3389 = vmatpush.xpose.msk.msra.mxu2 %vm267_vm2, %v297_v53  ;;  %3399 = vmatpush.xpose.msk.msra.mxu0 %vm267_vm2, %v435_v54 }
 0x19a   :  { %3390 = vmatmul.msk.f32.vlgmr.msra.gmra.mxu2 %vm267_vm2, %v295_v48 }
 0x19b   :  { %3395 = vmatpush.xpose.msk.msrb.mxu2 %vm267_vm2, %v241_v45 }
 0x19e   :  { %v325_v58 = vpop.permute.xlu0 %324  ;;  %v461_v63 = vpop.permute.xlu2 %460 }
 0x19f   :  { %698 = vmatpush.msra.mxu2 %v3993_v56  ;;  %v433_v59 = vpop.permute.xlu1 %432  ;;  %3391 = vmatpush.xpose.msk.msra.mxu3 %vm267_vm2, %v325_v58 }
 0x1a0   :  { %3400 = vmatmul.msk.f32.vlgmr.msra.gmra.mxu0 %vm267_vm2, %v433_v59 }
 0x1a2   :  { %3392 = vmatmul.msk.f32.vlgmr.msra.gmra.mxu3 %vm267_vm2, %v323_v50  ;;  %3396 = vmatmul.msk.f32.vlgmr.msrb.gmra.mxu2 %vm267_vm2, %v211_v46 }
 0x1a3   :  { %3397 = vmatpush.xpose.msk.msrb.mxu3 %vm267_vm2, %v407_v47  ;;  %816 = vmatpush.msrb.mxu2 %v4000_v60 }
 0x1a4   :  { %v4011_v2 = vpop.f32.mrf.mxu1 }
 0x1a5   :  { %v488_v15 = vsel %vm267_vm2, %v4011_v2, -inf }
 0x1a6   :  { %v353_v61 = vpop.permute.xlu0 %352 }
 0x1a7   :  { %3393 = vmatpush.xpose.msk.msra.mxu1 %vm267_vm2, %v353_v61 }
 0x1aa   :  { %3394 = vmatmul.msk.f32.vlgmr.msra.gmra.mxu1 %vm267_vm2, %v351_v55  ;;  %3398 = vmatmul.msk.f32.vlgmr.msrb.gmra.mxu3 %vm267_vm2, %v405_v49 }
 0x1ae   :  { %v463_v62 = vpop.permute.xlu0 %462 }
 0x1af   :  { %3401 = vmatpush.xpose.msk.msrb.mxu1 %vm267_vm2, %v463_v62 }
 0x1b2   :  { %3402 = vmatmul.msk.f32.vlgmr.msrb.gmra.mxu1 %vm267_vm2, %v461_v63 }
 0x21d   :  { %v319_v0 = vpop.f32.mrf.mxu2  ;;  %v457_v3 = vpop.f32.mrf.mxu0 }
 0x21e   :  { %v491_v1 = vsel %vm267_vm2, %v319_v0, -inf  ;;  %v506_v6 = vsel %vm267_vm2, %v457_v3, -inf }
 0x21f   :  { %492 = vmax.xlane.f32.xlu0 %v491_v1 }
 0x225   :  { %v347_v4 = vpop.f32.mrf.mxu3  ;;  %v401_v9 = vpop.f32.mrf.mxu2 }
 0x226   :  { %v494_v5 = vsel %vm267_vm2, %v347_v4, -inf  ;;  %v500_v11 = vsel %vm267_vm2, %v401_v9, -inf }
 0x227   :  { %495 = vmax.xlane.f32.xlu1 %v494_v5  ;;  %507 = vmax.xlane.f32.xlu0 %v506_v6  ;;  %v375_v7 = vpop.f32.mrf.mxu1 }
 0x228   :  { %v497_v8 = vsel %vm267_vm2, %v375_v7, -inf }
 0x229   :  { %498 = vmax.xlane.f32.xlu2 %v497_v8 }
 0x22d   :  { %v429_v10 = vpop.f32.mrf.mxu3 }
 0x22e   :  { %v503_v13 = vsel %vm267_vm2, %v429_v10, -inf }
 0x22f   :  { %501 = vmax.xlane.f32.xlu0 %v500_v11  ;;  %v485_v12 = vpop.f32.mrf.mxu1 }
 0x230   :  { %v509_v14 = vsel %vm267_vm2, %v485_v12, -inf }
 0x231   :  { %504 = vmax.xlane.f32.xlu2 %v503_v13  ;;  %510 = vmax.xlane.f32.xlu1 %v509_v14 }
 0x239   :  { %489 = vmax.xlane.f32.xlu2 %v488_v15 }
 0x292   :  { %v493_v16 = vpop.xlane.xlu0 %492 }
 0x293   :  { %v513_v17 = vsub.f32 %v319_v0, %v493_v16 }
 0x295   :  { %v522_v18 = vmul.f32 1.442695, %v513_v17 }
 0x297   :  { %3601 = vpow2.f32 %v522_v18 }
 0x29a   :  { %v496_v19 = vpop.xlane.xlu1 %495  ;;  %v508_v20 = vpop.xlane.xlu0 %507 }
 0x29b   :  { %v514_v21 = vsub.f32 %v347_v4, %v496_v19  ;;  %v518_v26 = vsub.f32 %v457_v3, %v508_v20 }
 0x29c   :  { %v499_v22 = vpop.xlane.xlu2 %498 }
 0x29d   :  { %v4021_v23 = vpop.eup %3601  ;;  %v524_v24 = vmul.f32 1.442695, %v514_v21  ;;  %v515_v25 = vsub.f32 %v375_v7, %v499_v22  ;;  %v532_v30 = vmul.f32 1.442695, %v518_v26 }
 0x29e   :  { %v539_v27 = vsel %vm267_vm2, %v4021_v23, 0.0 }
 0x29f   :  { %v526_v28 = vmul.f32 1.442695, %v515_v25  ;;  %540 = vadd.xlane.f32.xlu1 %v539_v27  ;;  %3603 = vpow2.f32 %v524_v24 }
 0x2a1   :  { %3605 = vpow2.f32 %v526_v28 }
 0x2a2   :  { %3607 = vpow2.f32 %v532_v30  ;;  %v502_v52 = vpop.xlane.xlu0 %501 }
 0x2a3   :  { %v516_v53 = vsub.f32 %v401_v9, %v502_v52 }
 0x2a4   :  { %v505_v32 = vpop.xlane.xlu2 %504  ;;  %v511_v34 = vpop.xlane.xlu1 %510 }
 0x2a5   :  { %v517_v37 = vsub.f32 %v429_v10, %v505_v32  ;;  %v519_v38 = vsub.f32 %v485_v12, %v511_v34  ;;  %v4025_v39 = vpop.eup %3603  ;;  %v528_v55 = vmul.f32 1.442695, %v516_v53 }
 0x2a6   :  { %v542_v43 = vsel %vm267_vm2, %v4025_v39, 0.0 }
 0x2a7   :  { %v4027_v40 = vpop.eup %3605  ;;  %v530_v41 = vmul.f32 1.442695, %v517_v37  ;;  %v534_v42 = vmul.f32 1.442695, %v519_v38  ;;  %543 = vadd.xlane.f32.xlu2 %v542_v43 }
 0x2a8   :  { %v545_v44 = vsel %vm267_vm2, %v4027_v40, 0.0  ;;  %v4033_v45 = vpop.eup %3607 }
 0x2a9   :  { %3609 = vpow2.f32 %v530_v41  ;;  %546 = vadd.xlane.f32.xlu0 %v545_v44  ;;  %v554_v47 = vsel %vm267_vm2, %v4033_v45, 0.0 }
 0x2aa   :  { %3611 = vpow2.f32 %v534_v42 }
 0x2ab   :  { %3613 = vpow2.f32 %v528_v55 }
 0x2ac   :  { %v490_v54 = vpop.xlane.xlu2 %489 }
 0x2ad   :  { %v512_v57 = vsub.f32 %v4011_v2, %v490_v54 }
 0x2af   :  { %v4035_v46 = vpop.eup %3609  ;;  %555 = vadd.xlane.f32.xlu2 %v554_v47  ;;  %v520_v58 = vmul.f32 1.442695, %v512_v57 }
 0x2b0   :  { %v4039_v48 = vpop.eup %3611  ;;  %v551_v49 = vsel %vm267_vm2, %v4035_v46, 0.0 }
 0x2b1   :  { %552 = vadd.xlane.f32.xlu1 %v551_v49  ;;  %v557_v50 = vsel %vm267_vm2, %v4039_v48, 0.0  ;;  %3615 = vpow2.f32 %v520_v58  ;;  %v4051_v59 = vpop.eup %3613 }
 0x2b2   :  { %558 = vadd.xlane.f32.xlu0 %v557_v50  ;;  %v548_v56 = vsel %vm267_vm2, %v4051_v59, 0.0 }
 0x2b7   :  { %v4055_v60 = vpop.eup %3615 }
 0x2b8   :  { %v536_v61 = vsel %vm267_vm2, %v4055_v60, 0.0 }
 0x2c6   :  { %3587 = vrot.lane.b32.xlu0 %v3586_v51, %s3770_s28 }
 0x2c7   :  { %3582 = vrot.lane.b32.xlu2 %v3586_v51, %s3769_s27 }
 0x2ca   :  { %3577 = vrot.lane.b32.xlu1 %v3586_v51, %s3768_s26 }
 0x2f0   :  { %549 = vadd.xlane.f32.xlu0 %v548_v56 }
 0x2f4   :  { %537 = vadd.xlane.f32.xlu1 %v536_v61 }
 0x312   :  { %v4059_v62 = vpop.xlane.xlu1 %540 }
 0x313   :  { %3617 = vrcp.f32 %v4059_v62  ;;  %v585_v56 = vand.u32 2147483648, %v4059_v62  ;;  %vm579_vm15 = vweird.f32 %v4059_v62 }
 0x319   :  { %v4065_v1 = vpop.eup %3617 }
 0x31a   :  { %v544_v63 = vpop.xlane.xlu2 %543  ;;  %v575_v10 = vmul.f32 %v4065_v1, %v4059_v62  ;;  %vm580_vm12 = vweird.f32 %v4065_v1 }
 0x31b   :  { %3619 = vrcp.f32 %v544_v63  ;;  %v599_v11 = vand.u32 2147483648, %v544_v63  ;;  %v597_v13 = vand.u32 2147483647, %v544_v63  ;;  %vm593_vm4 = vweird.f32 %v544_v63 }
 0x31c   :  { %v4062_v0 = vpop.xlane.xlu0 %546  ;;  %v576_v18 = vsub.f32 1.0, %v575_v10 }
 0x31d   :  { %3621 = vrcp.f32 %v4062_v0  ;;  %v600_v17 = vor.u32 1.1754944e-38, %v599_v11  ;;  %vm598_vm6 = vcmp.eq.f32.partialorder %v597_v13, 8.507059e+37  ;;  %v613_v49 = vand.u32 2147483648, %v4062_v0 }
 0x31e   :  { %v577_v38 = vmul.f32 %v4065_v1, %v576_v18  ;;  %vm607_vm10 = vweird.f32 %v4062_v0 }
 0x31f   :  { %v614_v61 = vor.u32 1.1754944e-38, %v613_v49 }
 0x320   :  { %v578_v52 = vadd.f32 %v4065_v1, %v577_v38 }
 0x321   :  { %v3620_v2 = vpop.eup %3619 }
 0x322   :  { %v589_v4 = vmul.f32 %v3620_v2, %v544_v63  ;;  %v556_v5 = vpop.xlane.xlu2 %555  ;;  %vm594_vm3 = vweird.f32 %v3620_v2 }
 0x323   :  { %v4067_v3 = vpop.eup %3621  ;;  %3623 = vrcp.f32 %v556_v5  ;;  %vm595_vm5 = vmor %vm593_vm4, %vm594_vm3  ;;  %v655_v30 = vand.u32 2147483648, %v556_v5  ;;  %v653_v42 = vand.u32 2147483647, %v556_v5  ;;  %vm649_vm9 = vweird.f32 %v556_v5 }
 0x324   :  { %v603_v6 = vmul.f32 %v4067_v3, %v4062_v0  ;;  %v4071_v7 = vpop.xlane.xlu1 %552  ;;  %v590_v8 = vsub.f32 1.0, %v589_v4  ;;  %vm608_vm8 = vweird.f32 %v4067_v3  ;;  %vm4106_vm4 = vmor %vm579_vm15, %vm580_vm12 }
 0x325   :  { %v4073_v9 = vpop.xlane.xlu0 %558  ;;  %v656_v51 = vor.u32 1.1754944e-38, %v655_v30  ;;  %vm609_vm13 = vmor %vm607_vm10, %vm608_vm8  ;;  %vm654_vm14 = vcmp.eq.f32.partialorder %v653_v42, 8.507059e+37  ;;  %v641_v18 = vand.u32 2147483648, %v4071_v7 }
 0x326   :  { %3625 = vrcp.f32 %v4073_v9  ;;  %v591_v12 = vmul.f32 %v3620_v2, %v590_v8  ;;  %v604_v14 = vsub.f32 1.0, %v603_v6  ;;  %v586_v8 = vor.u32 1.1754944e-38, %v585_v56 }
 0x327   :  { %3627 = vrcp.f32 %v4071_v7  ;;  %v642_v30 = vor.u32 1.1754944e-38, %v641_v18 }
 0x328   :  { %v592_v15 = vadd.f32 %v3620_v2, %v591_v12  ;;  %v605_v25 = vmul.f32 %v4067_v3, %v604_v14  ;;  %v667_v12 = vand.u32 2147483647, %v4073_v9 }
 0x329   :  { %v3624_v16 = vpop.eup %3623 }
 0x32a   :  { %v596_v19 = vsel %vm595_vm5, %v3620_v2, %v592_v15  ;;  %v645_v20 = vmul.f32 %v3624_v16, %v556_v5  ;;  %v3583_v21 = vpop.permute.xlu2 %3582  ;;  %vm650_vm7 = vweird.f32 %v3624_v16  ;;  %v606_v43 = vadd.f32 %v4067_v3, %v605_v25  ;;  %v3420_v15 = vld [vmem:[%s5015_s8 + $0x38] sm:$0xff] }
 0x32b   :  { %v601_v24 = vsel %vm598_vm6, %v600_v17, %v596_v19  ;;  %v3585_v32 = vunpack.i.h.bf16 %v3583_v21  ;;  %v3584_v34 = vunpack.i.l.bf16 %v3583_v21  ;;  %vm651_vm11 = vmor %vm649_vm9, %vm650_vm7  ;;  %vm663_vm7 = vweird.f32 %v4073_v9  ;;  %v3419_v21 = vld [vmem:[%s5015_s8 + $0x30] sm:$0xff] }
 0x32c   :  { %v4079_v22 = vpop.eup %3625  ;;  %v646_v27 = vsub.f32 1.0, %v645_v20  ;;  %v674_v37 = vmul.f32 %v4025_v39, %v601_v24  ;;  %v611_v39 = vand.u32 2147483647, %v4062_v0  ;;  %v610_v54 = vsel %vm609_vm13, %v4067_v3, %v606_v43 }
 0x32d   :  { %v4082_v26 = vpop.eup %3627  ;;  %v659_v28 = vmul.f32 %v4079_v22, %v4073_v9  ;;  %751 = vmatpush.msrb.mxu0 %v3584_v34  ;;  %v583_v0 = vand.u32 2147483647, %v4059_v62  ;;  %v582_v3 = vsel %vm4106_vm4, %v4065_v1, %v578_v52  ;;  %vm664_vm5 = vweird.f32 %v4079_v22 }
 0x32e   :  { %v647_v41 = vmul.f32 %v3624_v16, %v646_v27  ;;  %v631_v47 = vmul.f32 %v4082_v26, %v4071_v7  ;;  %3405 = vmatmul.msk.f32.vlgmr.msrb.gmra.mxu0 %vm267_vm2, %v674_v37  ;;  %vm612_vm3 = vcmp.eq.f32.partialorder %v611_v39, 8.507059e+37  ;;  %v669_v62 = vand.u32 2147483648, %v4073_v9  ;;  %vm4121_vm8 = vmor %vm663_vm7, %vm664_vm5  ;;  %v3418_v27 = vld [vmem:[%s5015_s8 + $0x28] sm:$0xff] }
 0x32f   :  { %v660_v44 = vsub.f32 1.0, %v659_v28  ;;  %869 = vmatpush.msra.mxu0 %v3585_v32  ;;  %v615_v4 = vsel %vm612_vm3, %v614_v61, %v610_v54  ;;  %vm584_vm6 = vcmp.eq.f32.partialorder %v583_v0, 8.507059e+37  ;;  %vm636_vm9 = vweird.f32 %v4082_v26 }
 0x330   :  { %v648_v50 = vadd.f32 %v3624_v16, %v647_v41  ;;  %v632_v58 = vsub.f32 1.0, %v631_v47  ;;  %v675_v1 = vmul.f32 %v4027_v40, %v615_v4  ;;  %v587_v13 = vsel %vm584_vm6, %v586_v8, %v582_v3  ;;  %v156_v8 = vld [vmem:[%s5018_s11 + $0x8] sm:$0xff] }
 0x331   :  { %v661_v57 = vmul.f32 %v4079_v22, %v660_v44  ;;  %v670_v9 = vor.u32 1.1754944e-38, %v669_v62  ;;  %vm668_vm10 = vcmp.eq.f32.partialorder %v667_v12, 8.507059e+37  ;;  %v673_v24 = vmul.f32 %v4021_v23, %v587_v13  ;;  %v155_v62 = vld [vmem:[%s5018_s11] sm:$0xff] }
 0x332   :  { %v652_v53 = vsel %vm651_vm11, %v3624_v16, %v648_v50  ;;  %vm635_vm11 = vweird.f32 %v4071_v7 }
 0x333   :  { %v657_v55 = vsel %vm654_vm14, %v656_v51, %v652_v53  ;;  %v662_v5 = vadd.f32 %v4079_v22, %v661_v57  ;;  %vm637_vm12 = vmor %vm635_vm11, %vm636_vm9  ;;  %vm796_vm9 = vcmask 195584  }
 0x334   :  { %v678_v63 = vmul.f32 %v4033_v45, %v657_v55  ;;  %v633_v45 = vmul.f32 %v4082_v26, %v632_v58 }
 0x335   :  { %v666_v16 = vsel %vm4121_vm8, %v4079_v22, %v662_v5  ;;  %v639_v22 = vand.u32 2147483647, %v4071_v7  ;;  %v3417_v7 = vld [vmem:[%s5015_s8 + $0x20] sm:$0xff] }
 0x336   :  { %3409 = vmatmul.msk.f32.vlgmr.msra.gmra.mxu0 %vm267_vm2, %v678_v63  ;;  %v634_v17 = vadd.f32 %v4082_v26, %v633_v45  ;;  %v671_v25 = vsel %vm668_vm10, %v670_v9, %v666_v16  ;;  %v158_v45 = vld [vmem:[%s5018_s11 + $0x18] sm:$0xff] }
 0x337   :  { %vm640_vm13 = vcmp.eq.f32.partialorder %v639_v22, 8.507059e+37  ;;  %v679_v23 = vmul.f32 %v4039_v48, %v671_v25 }
 0x338   :  { %v3588_v6 = vpop.permute.xlu0 %3587  ;;  %v638_v28 = vsel %vm637_vm12, %v4082_v26, %v634_v17 }
 0x339   :  { %v3590_v10 = vunpack.i.h.bf16 %v3588_v6  ;;  %v3589_v11 = vunpack.i.l.bf16 %v3588_v6  ;;  %v643_v32 = vsel %vm640_vm13, %v642_v30, %v638_v28  ;;  %v157_v6 = vld [vmem:[%s5018_s11 + $0x10] sm:$0xff] }
 0x33a   :  { %v677_v34 = vmul.f32 %v4035_v46, %v643_v32  ;;  %v4197_v32 = vld [vmem:[%s5021_s14 + $0x10] sm:$0xff] }
 0x33b   :  { %777 = vmatpush.msra.mxu1 %v3589_v11 }
 0x33c   :  { %3406 = vmatmul.msk.f32.vlgmr.msra.gmra.mxu1 %vm267_vm2, %v675_v1  ;;  %v3578_v40 = vpop.permute.xlu1 %3577 }
 0x33d   :  { %895 = vmatpush.msrb.mxu1 %v3590_v10  ;;  %v3580_v19 = vunpack.i.h.bf16 %v3578_v40  ;;  %v3579_v20 = vunpack.i.l.bf16 %v3578_v40 }
 0x33f   :  { %1260 = vmatpush.msra.mxu1 %v3420_v15  ;;  %725 = vmatpush.msra.mxu3 %v3579_v20 }
 0x340   :  { %3404 = vmatmul.msk.f32.vlgmr.msra.gmra.mxu3 %vm267_vm2, %v673_v24 }
 0x341   :  { %1261 = vmatpush.msra.mxu1 %v3419_v21  ;;  %843 = vmatpush.msrb.mxu3 %v3580_v19  ;;  %v915_v21 = vperm.slane %v3971_v36, 3 }
 0x343   :  { %1262 = vmatpush.msra.mxu1 %v3418_v27 }
 0x344   :  { %3410 = vmatmul.msk.f32.vlgmr.msrb.gmra.mxu1 %vm267_vm2, %v679_v23 }
 0x345   :  { %1263 = vmatpush.msra.mxu1 %v3417_v7 }
 0x348   :  { %3408 = vmatmul.msk.f32.vlgmr.msrb.gmra.mxu3 %vm267_vm2, %v677_v34  ;;  %v1247_v34 = vperm.slane %v4197_v32, 0 }
 0x34c   :  { %3456 = vmatmul.msk.f32.vlgmr.msra.gmra.mxu1 %vm183_vm1, %v3950_v31 }
 0x354   :  { %3457 = vmatmul.msk.f32.gmra.mxu1 %vm183_vm1, %v3958_v35 }
 0x363   :  { %v550_v48 = vpop.xlane.xlu0 %549 }
 0x364   :  { %3629 = vrcp.f32 %v550_v48  ;;  %v627_v54 = vand.u32 2147483648, %v550_v48  ;;  %vm621_vm6 = vweird.f32 %v550_v48  ;;  %v625_v57 = vand.u32 2147483647, %v550_v48 }
 0x366   :  { %v628_v61 = vor.u32 1.1754944e-38, %v627_v54  ;;  %vm626_vm8 = vcmp.eq.f32.partialorder %v625_v57, 8.507059e+37  ;;  %v161_v57 = vld [vmem:[%s5019_s12 + $0x10] sm:$0xff] }
 0x367   :  { %v538_v26 = vpop.xlane.xlu1 %537 }
 0x368   :  { %3631 = vrcp.f32 %v538_v26  ;;  %v571_v47 = vand.u32 2147483648, %v538_v26  ;;  %v569_v50 = vand.u32 2147483647, %v538_v26  ;;  %vm565_vm15 = vweird.f32 %v538_v26 }
 0x36a   :  { %v3630_v37 = vpop.eup %3629  ;;  %v572_v51 = vor.u32 1.1754944e-38, %v571_v47  ;;  %vm570_vm5 = vcmp.eq.f32.partialorder %v569_v50, 8.507059e+37 }
 0x36b   :  { %v617_v38 = vmul.f32 %v3630_v37, %v550_v48  ;;  %vm622_vm4 = vweird.f32 %v3630_v37 }
 0x36c   :  { %vm623_vm7 = vmor %vm621_vm6, %vm622_vm4 }
 0x36d   :  { %v618_v42 = vsub.f32 1.0, %v617_v38 }
 0x36e   :  { %v3632_v41 = vpop.eup %3631 }
 0x36f   :  { %v561_v43 = vmul.f32 %v3632_v41, %v538_v26  ;;  %v619_v46 = vmul.f32 %v3630_v37, %v618_v42  ;;  %vm566_vm14 = vweird.f32 %v3632_v41  ;;  %v3774_v26 = vmov 32.0  }
 0x370   :  { %vm567_vm3 = vmor %vm565_vm15, %vm566_vm14  ;;  %3633 = vrcp.f32 %v3774_v26 }
 0x371   :  { %v562_v44 = vsub.f32 1.0, %v561_v43  ;;  %v620_v52 = vadd.f32 %v3630_v37, %v619_v46 }
 0x373   :  { %v563_v49 = vmul.f32 %v3632_v41, %v562_v44  ;;  %v624_v56 = vsel %vm623_vm7, %v3630_v37, %v620_v52 }
 0x374   :  { %v629_v63 = vsel %vm626_vm8, %v628_v61, %v624_v56  ;;  %v159_v56 = vld [vmem:[%s5019_s12] sm:$0xff] }
 0x375   :  { %v564_v39 = vadd.f32 %v3632_v41, %v563_v49  ;;  %v676_v0 = vmul.f32 %v4051_v59, %v629_v63 }
 0x377   :  { %v568_v53 = vsel %vm567_vm3, %v3632_v41, %v564_v39 }
 0x378   :  { %v573_v55 = vsel %vm570_vm5, %v572_v51, %v568_v53 }
 0x379   :  { %v672_v58 = vmul.f32 %v4055_v60, %v573_v55  ;;  %v162_v55 = vld [vmem:[%s5019_s12 + $0x18] sm:$0xff] }
 0x37a   :  { %1025 = vmatpush.msra.mxu3 %v162_v55 }
 0x37b   :  { %3403 = vmatmul.msk.f32.vlgmr.msra.gmra.mxu2 %vm267_vm2, %v672_v58  ;;  %v160_v58 = vld [vmem:[%s5019_s12 + $0x8] sm:$0xff] }
 0x37c   :  { %934 = vmatpush.msra.mxu2 %v158_v45  ;;  %1026 = vmatpush.msra.mxu3 %v161_v57  ;;  %v167_v57 = vld [vmem:[%s5020_s13 + $0x20] sm:$0xff] }
 0x37e   :  { %935 = vmatpush.msra.mxu2 %v157_v6  ;;  %1027 = vmatpush.msra.mxu3 %v160_v58 }
 0x380   :  { %936 = vmatpush.msra.mxu2 %v156_v8  ;;  %1028 = vmatpush.msra.mxu3 %v159_v56 }
 0x382   :  { %937 = vmatpush.msra.mxu2 %v155_v62  ;;  %v998_v62 = vperm.slane %v3971_v36, 4 }
 0x383   :  { %3407 = vmatmul.msk.f32.vlgmr.msrb.gmra.mxu2 %vm267_vm2, %v676_v0 }
 0x3ab   :  { %v753_v4 = vpop.f32.mrf.mxu0 }
 0x3b3   :  { %v871_v59 = vpop.f32.mrf.mxu0 }
 0x3b9   :  { %v779_v2 = vpop.f32.mrf.mxu1 }
 0x3ba   :  { %791 = vrot.lane.b32.xlu2 %v779_v2, %s3771_s21 }
 0x3c1   :  { %v897_v3 = vpop.f32.mrf.mxu1 }
 0x3c2   :  { %787 = vrot.lane.b32.xlu2 %v753_v4, %s3772_s22  ;;  %909 = vrot.lane.b32.xlu1 %v897_v3, %s3771_s21 }
 0x3c3   :  { %v727_v60 = vpop.f32.mrf.mxu3 }
 0x3c9   :  { %v1265_v48 = vpop.f32.mrf.mxu1 }
 0x3ca   :  { %783 = vrot.lane.b32.xlu2 %v727_v60, %s3773_s2 }
 0x3cb   :  { %v845_v5 = vpop.f32.mrf.mxu3 }
 0x3d2   :  { %901 = vrot.lane.b32.xlu2 %v845_v5, %s3773_s2 }
 0x3da   :  { %905 = vrot.lane.b32.xlu2 %v871_v59, %s3772_s22 }
 0x3fe   :  { %v700_v12 = vpop.f32.mrf.mxu2 }
 0x406   :  { %v818_v17 = vpop.f32.mrf.mxu2 }
 0x414   :  { %v792_v10 = vpop.permute.xlu2 %791 }
 0x41c   :  { %v788_v11 = vpop.permute.xlu2 %787 }
 0x424   :  { %v784_v1 = vpop.permute.xlu2 %783 }
 0x425   :  { %v794_v13 = vsel %vm267_vm2, %v700_v12, %v784_v1  ;;  %v1001_v12 = vperm.slane %v3971_v36, 5  ;;  %v178_v36 = vld [vmem:[%s5020_s13 + $0x78] sm:$0xff] }
 0x426   :  { %v795_v14 = vsel %vm78_vm0, %v794_v13, %v788_v11  ;;  %1125 = vmatpush.msrb.mxu0 %v178_v36 }
 0x427   :  { %v797_v15 = vsel %vm796_vm9, %v795_v14, %v792_v10 }
 0x428   :  { %3411 = vmatmul.msk.f32.vlgmr.msra.gmra.mxu2 %vm183_vm1, %v797_v15 }
 0x42c   :  { %v902_v16 = vpop.permute.xlu2 %901 }
 0x42d   :  { %v912_v40 = vsel %vm267_vm2, %v818_v17, %v902_v16 }
 0x434   :  { %v910_v9 = vpop.permute.xlu1 %909  ;;  %v906_v18 = vpop.permute.xlu2 %905 }
 0x435   :  { %v913_v19 = vsel %vm78_vm0, %v912_v40, %v906_v18 }
 0x436   :  { %v914_v20 = vsel %vm796_vm9, %v913_v19, %v910_v9 }
 0x437   :  { %3412 = vmatmul.msk.f32.gmra.mxu2 %vm183_vm1, %v914_v20 }
 0x4ab   :  { %v939_v22 = vpop.f32.mrf.mxu2 }
 0x4ac   :  { %v940_v24 = vadd.f32 %v939_v22, %v915_v21  ;;  %v177_v22 = vld [vmem:[%s5020_s13 + $0x70] sm:$0xff] }
 0x4ad   :  { %1126 = vmatpush.msrb.mxu0 %v177_v22 }
 0x4ae   :  { %v945_v25 = vadd.f32 %v940_v24, %v3948_v29  ;;  %v4202_v29 = vadd.f32 %v1265_v48, %v1247_v34  ;;  %v3593_v24 = vld [vmem:[%s5022_s15] ss:$0 sm:$0xff]  ;;  %v173_v48 = vld [vmem:[%s5020_s13 + $0x50] sm:$0xff] }
 0x4b0   :  { %v947_v27 = vsel %vm183_vm1, %v945_v25, 0.0 }
 0x4b1   :  { %948 = vadd.xlane.f32.xlu0 %v947_v27 }
 0x4ba   :  { %v942_v28 = vpop.f32.mrf.mxu2 }
 0x4bb   :  { %v943_v30 = vadd.f32 %v942_v28, %v915_v21  ;;  %v175_v28 = vld [vmem:[%s5020_s13 + $0x60] sm:$0xff] }
 0x4bd   :  { %v946_v23 = vadd.f32 %v943_v30, %v3956_v33  ;;  %v3634_v33 = vpop.eup %3633 }
 0x4be   :  { %v954_v37 = vmul.f32 32.0, %v3634_v33  ;;  %vm958_vm10 = vweird.f32 %v3634_v33 }
 0x4bf   :  { %v950_v7 = vsel %vm183_vm1, %v946_v23, 0.0 }
 0x4c0   :  { %951 = vadd.xlane.f32.xlu2 %v950_v7  ;;  %v955_v38 = vsub.f32 1.0, %v954_v37 }
 0x4c2   :  { %v956_v41 = vmul.f32 %v3634_v33, %v955_v38  ;;  %v171_v38 = vld [vmem:[%s5020_s13 + $0x40] sm:$0xff] }
 0x4c4   :  { %v957_v42 = vadd.f32 %v3634_v33, %v956_v41 }
 0x4c6   :  { %v4206_v43 = vsel %vm958_vm10, %v3634_v33, %v957_v42  ;;  %v172_v33 = vld [vmem:[%s5020_s13 + $0x48] sm:$0xff] }
 0x4d8   :  { %1407 = vrot.lane.b32.xlu2 %v4202_v29, %s3770_s28 }
 0x524   :  { %v949_v44 = vpop.xlane.xlu0 %948 }
 0x525   :  { %v960_v47 = vmul.f32 %v4206_v43, %v949_v44  ;;  %v170_v44 = vld [vmem:[%s5020_s13 + $0x38] sm:$0xff] }
 0x527   :  { %v962_v46 = vsub.f32 %v945_v25, %v960_v47  ;;  %v176_v25 = vld [vmem:[%s5020_s13 + $0x68] sm:$0xff] }
 0x528   :  { %1127 = vmatpush.msrb.mxu0 %v176_v25 }
 0x529   :  { %v964_v49 = vmul.f32 %v962_v46, %v962_v46 }
 0x52a   :  { %1128 = vmatpush.msrb.mxu0 %v175_v28 }
 0x52b   :  { %v966_v50 = vsel %vm183_vm1, %v964_v49, 0.0  ;;  %v169_v49 = vld [vmem:[%s5020_s13 + $0x30] sm:$0xff] }
 0x52c   :  { %967 = vadd.xlane.f32.xlu0 %v966_v50 }
 0x533   :  { %v952_v39 = vpop.xlane.xlu2 %951 }
 0x534   :  { %v961_v51 = vmul.f32 %v4206_v43, %v952_v39 }
 0x536   :  { %v963_v52 = vsub.f32 %v946_v23, %v961_v51  ;;  %v174_v23 = vld [vmem:[%s5020_s13 + $0x58] sm:$0xff]  ;;  %v168_v51 = vld [vmem:[%s5020_s13 + $0x28] sm:$0xff] }
 0x537   :  { %1129 = vmatpush.msrb.mxu0 %v174_v23 }
 0x538   :  { %v965_v53 = vmul.f32 %v963_v52, %v963_v52 }
 0x539   :  { %1130 = vmatpush.msrb.mxu0 %v173_v48 }
 0x53a   :  { %v969_v54 = vsel %vm183_vm1, %v965_v53, 0.0 }
 0x53b   :  { %970 = vadd.xlane.f32.xlu0 %v969_v54  ;;  %1131 = vmatpush.msrb.mxu0 %v172_v33 }
 0x53d   :  { %1132 = vmatpush.msrb.mxu0 %v171_v38 }
 0x53f   :  { %1133 = vmatpush.msrb.mxu0 %v170_v44 }
 0x541   :  { %1134 = vmatpush.msrb.mxu0 %v169_v49 }
 0x543   :  { %1135 = vmatpush.msrb.mxu0 %v168_v51 }
 0x545   :  { %1136 = vmatpush.msrb.mxu0 %v167_v57 }
 0x59f   :  { %v968_v61 = vpop.xlane.xlu0 %967 }
 0x5a0   :  { %v972_v63 = vmul.f32 %v968_v61, %v4206_v43  ;;  %v166_v61 = vld [vmem:[%s5020_s13 + $0x18] sm:$0xff] }
 0x5a1   :  { %1137 = vmatpush.msrb.mxu0 %v166_v61 }
 0x5a2   :  { %v974_v0 = vadd.f32 1e-05, %v972_v63 }
 0x5a4   :  { %3635 = vrsqrt.f32 %v974_v0  ;;  %vm982_vm12 = vweird.f32 %v974_v0 }
 0x5aa   :  { %v3636_v2 = vpop.eup %3635 }
 0x5ab   :  { %v977_v4 = vmul.f32 %v3636_v2, %v974_v0  ;;  %vm983_vm11 = vweird.f32 %v3636_v2 }
 0x5ac   :  { %vm984_vm13 = vmor %vm982_vm12, %vm983_vm11 }
 0x5ad   :  { %v978_v3 = vmul.f32 %v3636_v2, %v977_v4  ;;  %v165_v4 = vld [vmem:[%s5020_s13 + $0x10] sm:$0xff] }
 0x5ae   :  { %v971_v60 = vpop.xlane.xlu0 %970  ;;  %1138 = vmatpush.msrb.mxu0 %v165_v4 }
 0x5af   :  { %v979_v5 = vmul.f32 0.5, %v978_v3  ;;  %v973_v59 = vmul.f32 %v971_v60, %v4206_v43  ;;  %v164_v3 = vld [vmem:[%s5020_s13 + $0x8] sm:$0xff] }
 0x5b0   :  { %1139 = vmatpush.msrb.mxu0 %v164_v3 }
 0x5b1   :  { %v980_v45 = vsub.f32 1.5, %v979_v5  ;;  %v975_v6 = vadd.f32 1e-05, %v973_v59  ;;  %v163_v59 = vld [vmem:[%s5020_s13] sm:$0xff] }
 0x5b2   :  { %1140 = vmatpush.msrb.mxu0 %v163_v59 }
 0x5b3   :  { %v981_v8 = vmul.f32 %v3636_v2, %v980_v45  ;;  %3637 = vrsqrt.f32 %v975_v6  ;;  %vm992_vm15 = vweird.f32 %v975_v6 }
 0x5b5   :  { %v985_v10 = vsel %vm984_vm13, %v3636_v2, %v981_v8 }
 0x5b6   :  { %v996_v11 = vmul.f32 %v985_v10, %v962_v46 }
 0x5b8   :  { %v999_v1 = vmul.f32 %v998_v62, %v996_v11 }
 0x5b9   :  { %v3638_v13 = vpop.eup %3637 }
 0x5ba   :  { %v987_v14 = vmul.f32 %v3638_v13, %v975_v6  ;;  %v4228_v15 = vadd.f32 %v1001_v12, %v999_v1  ;;  %vm993_vm14 = vweird.f32 %v3638_v13 }
 0x5bb   :  { %vm994_vm3 = vmor %vm992_vm15, %vm993_vm14 }
 0x5bc   :  { %v988_v16 = vmul.f32 %v3638_v13, %v987_v14  ;;  %3413 = vmatmul.msk.f32.vlgmr.msra.gmra.mxu3 %vm183_vm1, %v4228_v15 }
 0x5be   :  { %v989_v17 = vmul.f32 0.5, %v988_v16 }
 0x5c0   :  { %v990_v40 = vsub.f32 1.5, %v989_v17 }
 0x5c2   :  { %v991_v9 = vmul.f32 %v3638_v13, %v990_v40 }
 0x5c4   :  { %v995_v18 = vsel %vm994_vm3, %v3638_v13, %v991_v9 }
 0x5c5   :  { %v997_v19 = vmul.f32 %v995_v18, %v963_v52 }
 0x5c7   :  { %v1000_v20 = vmul.f32 %v998_v62, %v997_v19 }
 0x5c9   :  { %v4232_v21 = vadd.f32 %v1001_v12, %v1000_v20 }
 0x5cb   :  { %3414 = vmatmul.msk.f32.gmra.mxu3 %vm183_vm1, %v4232_v21 }
 0x63f   :  { %v1030_v27 = vpop.f32.mrf.mxu3 }
 0x640   :  { %v4251_v30 = vadd.f32 %v3593_v24, %v1030_v27 }
 0x642   :  { %v4257_v7 = vmul.f32 0.70710677, %v4251_v30 }
 0x644   :  { %v1040_v26 = vmul.f32 %v4257_v7, %v4257_v7 }
 0x646   :  { %v1041_v37 = vmin.f32 %v1040_v26, 16.0 }
 0x648   :  { %v1042_v41 = vmul.f32 2.1237322e-06, %v1041_v37  ;;  %v1053_v42 = vmul.f32 3.8918573e-05, %v1041_v37 }
 0x64a   :  { %v1043_v47 = vadd.f32 0.00028619796, %v1042_v41  ;;  %v1054_v46 = vadd.f32 0.001143296, %v1053_v42 }
 0x64c   :  { %v1044_v50 = vmul.f32 %v1043_v47, %v1041_v37  ;;  %v1055_v39 = vmul.f32 %v1054_v46, %v1041_v37 }
 0x64e   :  { %v1045_v52 = vadd.f32 0.0036580483, %v1044_v50  ;;  %v1056_v53 = vadd.f32 0.014752088, %v1055_v39  ;;  %v1033_v54 = vpop.f32.mrf.mxu3 }
 0x64f   :  { %v4279_v55 = vadd.f32 %v3593_v24, %v1033_v54  ;;  %v1036_v54 = vmul.f32 0.5, %v4251_v30 }
 0x650   :  { %v1057_v58 = vmul.f32 %v1056_v53, %v1041_v37  ;;  %v1046_v63 = vmul.f32 %v1045_v52, %v1041_v37 }
 0x651   :  { %v4285_v56 = vmul.f32 0.70710677, %v4279_v55 }
 0x652   :  { %v1058_v0 = vadd.f32 0.112945676, %v1057_v58  ;;  %v1047_v45 = vadd.f32 0.05243302, %v1046_v63 }
 0x653   :  { %v1080_v2 = vmul.f32 %v4285_v56, %v4285_v56 }
 0x654   :  { %v1059_v60 = vmul.f32 %v1058_v0, %v1041_v37  ;;  %v1048_v1 = vmul.f32 %v1047_v45, %v1041_v37 }
 0x655   :  { %v1081_v5 = vmin.f32 %v1080_v2, 16.0 }
 0x656   :  { %v1060_v6 = vadd.f32 0.4994258, %v1059_v60  ;;  %v1049_v40 = vadd.f32 0.18741608, %v1048_v1 }
 0x657   :  { %v1082_v8 = vmul.f32 2.1237322e-06, %v1081_v5  ;;  %v1093_v62 = vmul.f32 3.8918573e-05, %v1081_v5 }
 0x658   :  { %v1061_v10 = vmul.f32 %v1060_v6, %v1041_v37  ;;  %v1050_v36 = vmul.f32 %v1049_v40, %v1041_v37 }
 0x659   :  { %v1083_v11 = vadd.f32 0.00028619796, %v1082_v8  ;;  %v1094_v12 = vadd.f32 0.001143296, %v1093_v62  ;;  %v1037_v62 = vmul.f32 0.5, %v4279_v55 }
 0x65a   :  { %v1062_v13 = vadd.f32 1.0, %v1061_v10  ;;  %v1051_v23 = vadd.f32 1.1283791, %v1050_v36 }
 0x65b   :  { %v1084_v14 = vmul.f32 %v1083_v11, %v1081_v5  ;;  %v1095_v16 = vmul.f32 %v1094_v12, %v1081_v5  ;;  %v4308_v12 = vld [vmem:[%s5021_s14] sm:$0xff] }
 0x65c   :  { %3639 = vrcp.f32 %v1062_v13  ;;  %v1074_v48 = vand.u32 2147483648, %v1062_v13  ;;  %v1072_v38 = vand.u32 2147483647, %v1062_v13  ;;  %vm1068_vm5 = vweird.f32 %v1062_v13 }
 0x65d   :  { %v1096_v17 = vadd.f32 0.014752088, %v1095_v16  ;;  %v1085_v9 = vadd.f32 0.0036580483, %v1084_v14  ;;  %v1052_v37 = vmul.f32 %v1051_v23, %v4257_v7  ;;  %v1124_v1 = vperm.slane %v4308_v12, 6 }
 0x65e   :  { %v1075_v47 = vor.u32 1.1754944e-38, %v1074_v48  ;;  %vm1073_vm7 = vcmp.eq.f32.partialorder %v1072_v38, 8.507059e+37  ;;  %v3428_v48 = vld [vmem:[%s5017_s10 + $0x38] sm:$0xff]  ;;  %v3422_v38 = vld [vmem:[%s5016_s9 + $0x28] sm:$0xff] }
 0x65f   :  { %v1097_v18 = vmul.f32 %v1096_v17, %v1081_v5  ;;  %v1086_v22 = vmul.f32 %v1085_v9, %v1081_v5  ;;  %1314 = vmatpush.msrb.mxu3 %v3428_v48 }
 0x661   :  { %v1098_v19 = vadd.f32 0.112945676, %v1097_v18  ;;  %v1087_v26 = vadd.f32 0.05243302, %v1086_v22  ;;  %v1268_v18 = vpop.f32.mrf.mxu1 }
 0x662   :  { %v3640_v20 = vpop.eup %3639 }
 0x663   :  { %v1064_v24 = vmul.f32 %v3640_v20, %v1062_v13  ;;  %v1099_v25 = vmul.f32 %v1098_v19, %v1081_v5  ;;  %vm1069_vm4 = vweird.f32 %v3640_v20  ;;  %v1088_v46 = vmul.f32 %v1087_v26, %v1081_v5  ;;  %v3423_v26 = vld [vmem:[%s5016_s9 + $0x30] sm:$0xff] }
 0x664   :  { %vm1070_vm6 = vmor %vm1068_vm5, %vm1069_vm4  ;;  %v4319_v19 = vadd.f32 %v1268_v18, %v1247_v34  ;;  %v3424_v34 = vld [vmem:[%s5016_s9 + $0x38] sm:$0xff]  ;;  %v1301_v18 = vperm.slane %v4197_v32, 2 }
 0x665   :  { %v1065_v27 = vsub.f32 1.0, %v1064_v24  ;;  %v1100_v28 = vadd.f32 0.4994258, %v1099_v25  ;;  %v1089_v51 = vadd.f32 0.18741608, %v1088_v46  ;;  %1290 = vmatpush.msrb.mxu2 %v3424_v34 }
 0x667   :  { %v1066_v33 = vmul.f32 %v3640_v20, %v1065_v27  ;;  %v1101_v41 = vmul.f32 %v1100_v28, %v1081_v5  ;;  %v1090_v58 = vmul.f32 %v1089_v51, %v1081_v5  ;;  %1291 = vmatpush.msrb.mxu2 %v3423_v26 }
 0x669   :  { %v1067_v42 = vadd.f32 %v3640_v20, %v1066_v33  ;;  %v1102_v44 = vadd.f32 1.0, %v1101_v41  ;;  %v1091_v4 = vadd.f32 1.1283791, %v1090_v58  ;;  %v3427_v33 = vld [vmem:[%s5017_s10 + $0x30] sm:$0xff]  ;;  %v3426_v41 = vld [vmem:[%s5017_s10 + $0x28] sm:$0xff]  ;;  %1292 = vmatpush.msrb.mxu2 %v3422_v38 }
 0x66a   :  { %1315 = vmatpush.msrb.mxu3 %v3427_v33 }
 0x66b   :  { %v1071_v49 = vsel %vm1070_vm6, %v3640_v20, %v1067_v42  ;;  %3641 = vrcp.f32 %v1102_v44  ;;  %v1114_v2 = vand.u32 2147483648, %v1102_v44  ;;  %v1112_v7 = vand.u32 2147483647, %v1102_v44  ;;  %v3421_v42 = vld [vmem:[%s5016_s9 + $0x20] sm:$0xff] }
 0x66c   :  { %v1076_v50 = vsel %vm1073_vm7, %v1075_v47, %v1071_v49  ;;  %vm1108_vm10 = vweird.f32 %v1102_v44  ;;  %v1092_v45 = vmul.f32 %v1091_v4, %v4285_v56  ;;  %1316 = vmatpush.msrb.mxu3 %v3426_v41  ;;  %1293 = vmatpush.msrb.mxu2 %v3421_v42 }
 0x66d   :  { %v1077_v39 = vmul.f32 %v1076_v50, %v1052_v37  ;;  %v1115_v59 = vor.u32 1.1754944e-38, %v1114_v2  ;;  %vm1113_vm12 = vcmp.eq.f32.partialorder %v1112_v7, 8.507059e+37  ;;  %v3594_v2 = vld [vmem:[%s5021_s14 + $0x8] ss:$0 sm:$0xff] }
 0x66f   :  { %v3415_v52 = vclamps-f32 %v1077_v39, 1.0 }
 0x671   :  { %v3642_v53 = vpop.eup %3641  ;;  %v1120_v57 = vadd.f32 1.0, %v3415_v52 }
 0x672   :  { %v1104_v61 = vmul.f32 %v3642_v53, %v1102_v44  ;;  %vm1109_vm8 = vweird.f32 %v3642_v53  ;;  %v3425_v44 = vld [vmem:[%s5017_s10 + $0x20] sm:$0xff] }
 0x673   :  { %v1122_v63 = vmul.f32 %v1120_v57, %v1036_v54  ;;  %vm1110_vm11 = vmor %vm1108_vm10, %vm1109_vm8  ;;  %1317 = vmatpush.msrb.mxu3 %v3425_v44 }
 0x674   :  { %v1105_v0 = vsub.f32 1.0, %v1104_v61  ;;  %v1194_v61 = vperm.slane %v4308_v12, 7 }
 0x675   :  { %1141 = vmatmul.f32.vlgmr.msrb.gmra.mxu0 %v1122_v63 }
 0x676   :  { %v1106_v3 = vmul.f32 %v3642_v53, %v1105_v0 }
 0x678   :  { %v1107_v60 = vadd.f32 %v3642_v53, %v1106_v3 }
 0x67a   :  { %v1111_v6 = vsel %vm1110_vm11, %v3642_v53, %v1107_v60 }
 0x67b   :  { %v1116_v30 = vsel %vm1113_vm12, %v1115_v59, %v1111_v6 }
 0x67c   :  { %v1117_v8 = vmul.f32 %v1116_v30, %v1092_v45 }
 0x67e   :  { %v3416_v5 = vclamps-f32 %v1117_v8, 1.0 }
 0x680   :  { %v1121_v10 = vadd.f32 1.0, %v3416_v5 }
 0x682   :  { %v1123_v11 = vmul.f32 %v1121_v10, %v1037_v62 }
 0x684   :  { %1144 = vmatmul.f32.gmra.mxu0 %v1123_v11  ;;  %v1271_v11 = vperm.slane %v4197_v32, 1 }
 0x6f2   :  { %v1142_v13 = vpop.f32.mrf.mxu0 }
 0x6f3   :  { %v1143_v14 = vadd.f32 %v1142_v13, %v1124_v1 }
 0x6f5   :  { %v1148_v56 = vadd.f32 %v1143_v14, %v4228_v15 }
 0x6f7   :  { %v1150_v16 = vsel %vm183_vm1, %v1148_v56, 0.0 }
 0x6f8   :  { %1151 = vadd.xlane.f32.xlu1 %v1150_v16 }
 0x701   :  { %v1145_v17 = vpop.f32.mrf.mxu0 }
 0x702   :  { %v1146_v40 = vadd.f32 %v1145_v17, %v1124_v1 }
 0x704   :  { %v1149_v55 = vadd.f32 %v1146_v40, %v4232_v21 }
 0x706   :  { %v1153_v9 = vsel %vm183_vm1, %v1149_v55, 0.0 }
 0x707   :  { %1154 = vadd.xlane.f32.xlu0 %v1153_v9 }
 0x711   :  { %1379 = vrot.lane.b32.xlu1 %v4202_v29, %s3769_s27 }
 0x719   :  { %1489 = vrot.lane.b32.xlu1 %v4319_v19, %s3769_s27 }
 0x76b   :  { %v1152_v15 = vpop.xlane.xlu1 %1151 }
 0x76c   :  { %v1156_v20 = vmul.f32 %v1152_v15, %v4206_v43 }
 0x76e   :  { %v1158_v36 = vsub.f32 %v1148_v56, %v1156_v20  ;;  %v1408_v56 = vpop.permute.xlu2 %1407 }
 0x770   :  { %v1160_v22 = vmul.f32 %v1158_v36, %v1158_v36 }
 0x772   :  { %v1162_v21 = vsel %vm183_vm1, %v1160_v22, 0.0 }
 0x773   :  { %1163 = vadd.xlane.f32.xlu0 %v1162_v21 }
 0x77a   :  { %v1155_v24 = vpop.xlane.xlu0 %1154 }
 0x77b   :  { %v1157_v25 = vmul.f32 %v1155_v24, %v4206_v43 }
 0x77d   :  { %v1159_v27 = vsub.f32 %v1149_v55, %v1157_v25 }
 0x77f   :  { %v1161_v28 = vmul.f32 %v1159_v27, %v1159_v27 }
 0x781   :  { %v1165_v23 = vsel %vm183_vm1, %v1161_v28, 0.0 }
 0x782   :  { %1166 = vadd.xlane.f32.xlu0 %v1165_v23 }
 0x796   :  { %1351 = vrot.lane.b32.xlu0 %v4202_v29, %s3768_s26 }
 0x7e6   :  { %v1164_v47 = vpop.xlane.xlu0 %1163 }
 0x7e7   :  { %v1168_v46 = vmul.f32 %v1164_v47, %v4206_v43 }
 0x7e9   :  { %v1170_v37 = vadd.f32 1e-05, %v1168_v46 }
 0x7eb   :  { %3643 = vrsqrt.f32 %v1170_v37  ;;  %vm1178_vm14 = vweird.f32 %v1170_v37 }
 0x7f1   :  { %v3644_v49 = vpop.eup %3643 }
 0x7f2   :  { %v1173_v50 = vmul.f32 %v3644_v49, %v1170_v37  ;;  %vm1179_vm13 = vweird.f32 %v3644_v49 }
 0x7f3   :  { %vm1180_vm15 = vmor %vm1178_vm14, %vm1179_vm13 }
 0x7f4   :  { %v1174_v39 = vmul.f32 %v3644_v49, %v1173_v50 }
 0x7f5   :  { %v1167_v51 = vpop.xlane.xlu0 %1166 }
 0x7f6   :  { %v1175_v52 = vmul.f32 0.5, %v1174_v39  ;;  %v1169_v53 = vmul.f32 %v1167_v51, %v4206_v43 }
 0x7f8   :  { %v1176_v54 = vsub.f32 1.5, %v1175_v52  ;;  %v1171_v57 = vadd.f32 1e-05, %v1169_v53 }
 0x7fa   :  { %v1177_v58 = vmul.f32 %v3644_v49, %v1176_v54  ;;  %3645 = vrsqrt.f32 %v1171_v57  ;;  %vm1188_vm4 = vweird.f32 %v1171_v57 }
 0x7fc   :  { %v1181_v63 = vsel %vm1180_vm15, %v3644_v49, %v1177_v58 }
 0x7fd   :  { %v1192_v0 = vmul.f32 %v1181_v63, %v1158_v36 }
 0x7ff   :  { %v1195_v4 = vmul.f32 %v1194_v61, %v1192_v0 }
 0x800   :  { %v3646_v3 = vpop.eup %3645 }
 0x801   :  { %v1183_v7 = vmul.f32 %v3646_v3, %v1171_v57  ;;  %v4359_v60 = vadd.f32 %v3594_v2, %v1195_v4  ;;  %vm1189_vm3 = vweird.f32 %v3646_v3 }
 0x802   :  { %vm1190_vm5 = vmor %vm1188_vm4, %vm1189_vm3 }
 0x803   :  { %v1184_v59 = vmul.f32 %v3646_v3, %v1183_v7  ;;  %3458 = vmatmul.msk.f32.vlgmr.msrb.gmra.mxu2 %vm183_vm1, %v4359_v60  ;;  %3460 = vmatmul.msk.f32.vlgmr.msrb.gmra.mxu3 %vm183_vm1, %v4359_v60 }
 0x805   :  { %v1185_v45 = vmul.f32 0.5, %v1184_v59 }
 0x807   :  { %v1186_v6 = vsub.f32 1.5, %v1185_v45 }
 0x808   :  { %v1352_v40 = vpop.permute.xlu0 %1351 }
 0x809   :  { %v1187_v30 = vmul.f32 %v3646_v3, %v1186_v6 }
 0x80b   :  { %v1191_v8 = vsel %vm1190_vm5, %v3646_v3, %v1187_v30 }
 0x80c   :  { %v1193_v5 = vmul.f32 %v1191_v8, %v1159_v27 }
 0x80e   :  { %v1196_v62 = vmul.f32 %v1194_v61, %v1193_v5 }
 0x810   :  { %v4365_v10 = vadd.f32 %v3594_v2, %v1196_v62 }
 0x812   :  { %3459 = vmatmul.msk.f32.gmra.mxu2 %vm183_vm1, %v4365_v10  ;;  %3461 = vmatmul.msk.f32.gmra.mxu3 %vm183_vm1, %v4365_v10 }
 0x886   :  { %v1295_v12 = vpop.f32.mrf.mxu2  ;;  %v1319_v20 = vpop.f32.mrf.mxu3 }
 0x887   :  { %v1296_v1 = vadd.f32 %v1295_v12, %v1271_v11  ;;  %v4395_v21 = vadd.f32 %v1319_v20, %v1301_v18 }
 0x889   :  { %1409 = vrot.lane.b32.xlu0 %v1296_v1, %s3770_s28  ;;  %1381 = vrot.lane.b32.xlu2 %v1296_v1, %s3769_s27 }
 0x88a   :  { %3462 = vmatpush.xpose.msk.msrb.mxu1 %vm267_vm2, %v1296_v1 }
 0x88d   :  { %3463 = vmatmul.msk.f32.vlgmr.msrb.gmra.mxu1 %vm267_vm2, %v4202_v29  ;;  %v1380_v29 = vpop.permute.xlu1 %1379 }
 0x891   :  { %1353 = vrot.lane.b32.xlu0 %v1296_v1, %s3768_s26 }
 0x895   :  { %v1298_v13 = vpop.f32.mrf.mxu2  ;;  %v1490_v22 = vpop.permute.xlu1 %1489 }
 0x896   :  { %v1299_v14 = vadd.f32 %v1298_v13, %v1271_v11  ;;  %v1322_v24 = vpop.f32.mrf.mxu3 }
 0x897   :  { %v4401_v25 = vadd.f32 %v1322_v24, %v1301_v18 }
 0x898   :  { %1463 = vrot.lane.b32.xlu2 %v1299_v14, %s3768_s26 }
 0x899   :  { %1461 = vrot.lane.b32.xlu0 %v4319_v19, %s3768_s26 }
 0x8a0   :  { %1491 = vrot.lane.b32.xlu2 %v1299_v14, %s3769_s27 }
 0x8a1   :  { %1517 = vrot.lane.b32.xlu0 %v4319_v19, %s3770_s28 }
 0x8a8   :  { %1519 = vrot.lane.b32.xlu2 %v1299_v14, %s3770_s28 }
 0x8e3   :  { %v1382_v16 = vpop.permute.xlu2 %1381 }
 0x8e4   :  { %3466 = vmatpush.xpose.msk.msra.mxu2 %vm267_vm2, %v1382_v16 }
 0x8e7   :  { %3467 = vmatmul.msk.f32.vlgmr.msra.gmra.mxu2 %vm267_vm2, %v1380_v29 }
 0x8f2   :  { %v1464_v17 = vpop.permute.xlu2 %1463 }
 0x8f3   :  { %3472 = vmatpush.xpose.msk.msrb.mxu2 %vm267_vm2, %v1464_v17 }
 0x8fa   :  { %v1492_v55 = vpop.permute.xlu2 %1491 }
 0x8fb   :  { %v1410_v9 = vpop.permute.xlu0 %1409 }
 0x8fc   :  { %3468 = vmatpush.xpose.msk.msra.mxu3 %vm267_vm2, %v1410_v9 }
 0x8ff   :  { %3469 = vmatmul.msk.f32.vlgmr.msra.gmra.mxu3 %vm267_vm2, %v1408_v56 }
 0x900   :  { %3474 = vmatpush.xpose.msk.msrb.mxu3 %vm267_vm2, %v1492_v55 }
 0x902   :  { %v1520_v15 = vpop.permute.xlu2 %1519 }
 0x903   :  { %3476 = vmatpush.xpose.msk.msra.mxu0 %vm267_vm2, %v1520_v15  ;;  %v1354_v36 = vpop.permute.xlu0 %1353 }
 0x904   :  { %3464 = vmatpush.xpose.msk.msra.mxu1 %vm267_vm2, %v1354_v36 }
 0x907   :  { %3465 = vmatmul.msk.f32.vlgmr.msra.gmra.mxu1 %vm267_vm2, %v1352_v40  ;;  %3475 = vmatmul.msk.f32.vlgmr.msrb.gmra.mxu3 %vm267_vm2, %v1490_v22 }
 0x908   :  { %3470 = vmatpush.xpose.msk.msrb.mxu1 %vm267_vm2, %v1299_v14 }
 0x90a   :  { %v4408_v34 = vpop.f32.mrf.mxu1 }
 0x90b   :  { %v1462_v32 = vpop.permute.xlu0 %1461  ;;  %v1545_v49 = vsel %vm267_vm2, %v4408_v34, -inf }
 0x90c   :  { %1755 = vmatpush.msra.mxu1 %v4395_v21  ;;  %3473 = vmatmul.msk.f32.vlgmr.msrb.gmra.mxu2 %vm267_vm2, %v1462_v32 }
 0x90f   :  { %3471 = vmatmul.msk.f32.vlgmr.msrb.gmra.mxu1 %vm267_vm2, %v4319_v19 }
 0x910   :  { %1872 = vmatpush.msrb.mxu1 %v4401_v25 }
 0x913   :  { %v1518_v27 = vpop.permute.xlu0 %1517 }
 0x914   :  { %3477 = vmatmul.msk.f32.vlgmr.msra.gmra.mxu0 %vm267_vm2, %v1518_v27 }
 0x96a   :  { %v1404_v28 = vpop.f32.mrf.mxu2 }
 0x96b   :  { %v1551_v23 = vsel %vm267_vm2, %v1404_v28, -inf }
 0x96c   :  { %1552 = vmax.xlane.f32.xlu2 %v1551_v23 }
 0x982   :  { %v1432_v48 = vpop.f32.mrf.mxu3 }
 0x983   :  { %v1554_v26 = vsel %vm267_vm2, %v1432_v48, -inf }
 0x984   :  { %1555 = vmax.xlane.f32.xlu0 %v1554_v26  ;;  %v1376_v33 = vpop.f32.mrf.mxu1 }
 0x985   :  { %v1548_v38 = vsel %vm267_vm2, %v1376_v33, -inf }
 0x986   :  { %1549 = vmax.xlane.f32.xlu1 %v1548_v38 }
 0x98a   :  { %v1514_v19 = vpop.f32.mrf.mxu3 }
 0x98b   :  { %v1563_v41 = vsel %vm267_vm2, %v1514_v19, -inf }
 0x98c   :  { %1564 = vmax.xlane.f32.xlu2 %v1563_v41  ;;  %v1458_v37 = vpop.f32.mrf.mxu1 }
 0x98d   :  { %v1557_v50 = vsel %vm267_vm2, %v1458_v37, -inf }
 0x98f   :  { %v1486_v42 = vpop.f32.mrf.mxu2 }
 0x990   :  { %v1560_v44 = vsel %vm267_vm2, %v1486_v42, -inf }
 0x991   :  { %v1542_v47 = vpop.f32.mrf.mxu0  ;;  %1561 = vmax.xlane.f32.xlu1 %v1560_v44 }
 0x992   :  { %v1566_v46 = vsel %vm267_vm2, %v1542_v47, -inf }
 0x993   :  { %1567 = vmax.xlane.f32.xlu0 %v1566_v46 }
 0x999   :  { %1546 = vmax.xlane.f32.xlu1 %v1545_v49 }
 0x99b   :  { %1558 = vmax.xlane.f32.xlu0 %v1557_v50 }
 0x9af   :  { %1761 = vrot.lane.b32.xlu0 %v4395_v21, %s3768_s26 }
 0x9df   :  { %v1553_v39 = vpop.xlane.xlu2 %1552 }
 0x9e0   :  { %v1571_v51 = vsub.f32 %v1404_v28, %v1553_v39 }
 0x9e2   :  { %v1581_v52 = vmul.f32 1.442695, %v1571_v51 }
 0x9e4   :  { %3647 = vpow2.f32 %v1581_v52 }
 0x9ea   :  { %v4420_v53 = vpop.eup %3647 }
 0x9eb   :  { %v1599_v54 = vsel %vm267_vm2, %v4420_v53, 0.0 }
 0x9ec   :  { %1600 = vadd.xlane.f32.xlu1 %v1599_v54 }
 0x9f7   :  { %v1556_v57 = vpop.xlane.xlu0 %1555 }
 0x9f8   :  { %v1572_v63 = vsub.f32 %v1432_v48, %v1556_v57 }
 0x9f9   :  { %v1550_v58 = vpop.xlane.xlu1 %1549 }
 0x9fa   :  { %v1570_v61 = vsub.f32 %v1376_v33, %v1550_v58  ;;  %v1583_v2 = vmul.f32 1.442695, %v1572_v63 }
 0x9fc   :  { %v1579_v0 = vmul.f32 1.442695, %v1570_v61 }
 0x9fe   :  { %3649 = vpow2.f32 %v1579_v0 }
 0x9ff   :  { %v1565_v4 = vpop.xlane.xlu2 %1564  ;;  %3651 = vpow2.f32 %v1583_v2 }
 0xa00   :  { %v1575_v3 = vsub.f32 %v1514_v19, %v1565_v4 }
 0xa02   :  { %v1589_v7 = vmul.f32 1.442695, %v1575_v3 }
 0xa04   :  { %v4424_v59 = vpop.eup %3649  ;;  %3653 = vpow2.f32 %v1589_v7  ;;  %v1562_v45 = vpop.xlane.xlu1 %1561 }
 0xa05   :  { %v1574_v6 = vsub.f32 %v1486_v42, %v1562_v45  ;;  %v1596_v30 = vsel %vm267_vm2, %v4424_v59, 0.0  ;;  %v4428_v11 = vpop.eup %3651 }
 0xa06   :  { %v1568_v8 = vpop.xlane.xlu0 %1567  ;;  %1597 = vadd.xlane.f32.xlu2 %v1596_v30  ;;  %v1602_v14 = vsel %vm267_vm2, %v4428_v11, 0.0 }
 0xa07   :  { %v1587_v5 = vmul.f32 1.442695, %v1574_v6  ;;  %v1576_v62 = vsub.f32 %v1542_v47, %v1568_v8 }
 0xa09   :  { %3655 = vpow2.f32 %v1587_v5  ;;  %v1591_v12 = vmul.f32 1.442695, %v1576_v62 }
 0xa0a   :  { %v4430_v1 = vpop.eup %3653 }
 0xa0b   :  { %v1611_v13 = vsel %vm267_vm2, %v4430_v1, 0.0  ;;  %3657 = vpow2.f32 %v1591_v12 }
 0xa0c   :  { %1612 = vadd.xlane.f32.xlu1 %v1611_v13  ;;  %v1547_v9 = vpop.xlane.xlu1 %1546 }
 0xa0d   :  { %v1569_v18 = vsub.f32 %v4408_v34, %v1547_v9 }
 0xa0e   :  { %1603 = vadd.xlane.f32.xlu2 %v1602_v14  ;;  %v1559_v40 = vpop.xlane.xlu0 %1558 }
 0xa0f   :  { %v4436_v56 = vpop.eup %3655  ;;  %v1577_v15 = vmul.f32 1.442695, %v1569_v18  ;;  %v1573_v20 = vsub.f32 %v1458_v37, %v1559_v40 }
 0xa10   :  { %v1608_v16 = vsel %vm267_vm2, %v4436_v56, 0.0 }
 0xa11   :  { %1609 = vadd.xlane.f32.xlu0 %v1608_v16  ;;  %v4440_v29 = vpop.eup %3657  ;;  %3659 = vpow2.f32 %v1577_v15  ;;  %v1585_v36 = vmul.f32 1.442695, %v1573_v20 }
 0xa12   :  { %v1614_v17 = vsel %vm267_vm2, %v4440_v29, 0.0 }
 0xa13   :  { %3661 = vpow2.f32 %v1585_v36 }
 0xa16   :  { %1615 = vadd.xlane.f32.xlu2 %v1614_v17 }
 0xa17   :  { %v4455_v22 = vpop.eup %3659 }
 0xa18   :  { %v1593_v24 = vsel %vm267_vm2, %v4455_v22, 0.0 }
 0xa19   :  { %v4459_v32 = vpop.eup %3661 }
 0xa21   :  { %v1762_v55 = vpop.permute.xlu0 %1761 }
 0xa22   :  { %1782 = vmatpush.msra.mxu2 %v1762_v55 }
 0xa25   :  { %1787 = vrot.lane.b32.xlu1 %v4395_v21, %s3769_s27  ;;  %1878 = vrot.lane.b32.xlu0 %v4401_v25, %s3768_s26 }
 0xa2d   :  { %1904 = vrot.lane.b32.xlu0 %v4401_v25, %s3769_s27 }
 0xa2e   :  { %1813 = vrot.lane.b32.xlu2 %v4395_v21, %s3770_s28  ;;  %v1605_v21 = vsel %vm267_vm2, %v4459_v32, 0.0 }
 0xa36   :  { %1930 = vrot.lane.b32.xlu2 %v4401_v25, %s3770_s28 }
 0xa4f   :  { %1594 = vadd.xlane.f32.xlu1 %v1593_v24 }
 0xa57   :  { %1606 = vadd.xlane.f32.xlu0 %v1605_v21 }
 0xa5f   :  { %v1601_v25 = vpop.xlane.xlu1 %1600 }
 0xa60   :  { %3663 = vrcp.f32 %v1601_v25  ;;  %v1654_v58 = vand.u32 2147483647, %v1601_v25  ;;  %v1656_v61 = vand.u32 2147483648, %v1601_v25  ;;  %vm1650_vm12 = vweird.f32 %v1601_v25 }
 0xa62   :  { %vm4489_vm15 = vcmp.eq.f32.partialorder %v1654_v58, 8.507059e+37  ;;  %v1657_v12 = vor.u32 1.1754944e-38, %v1656_v61  ;;  %v3494_v61 = vld [vmem:[%s5015_s8 + $0x50] sm:$0xff] }
 0xa66   :  { %v4463_v28 = vpop.eup %3663 }
 0xa67   :  { %v1646_v23 = vmul.f32 %v4463_v28, %v1601_v25  ;;  %vm1651_vm11 = vweird.f32 %v4463_v28 }
 0xa68   :  { %vm4485_vm14 = vmor %vm1650_vm12, %vm1651_vm11 }
 0xa69   :  { %v1647_v38 = vsub.f32 1.0, %v1646_v23 }
 0xa6b   :  { %v1648_v37 = vmul.f32 %v4463_v28, %v1647_v38 }
 0xa6d   :  { %v1649_v2 = vadd.f32 %v4463_v28, %v1648_v37 }
 0xa6f   :  { %v1653_v13 = vsel %vm4485_vm14, %v4463_v28, %v1649_v2 }
 0xa70   :  { %v1658_v24 = vsel %vm4489_vm15, %v1657_v12, %v1653_v13 }
 0xa79   :  { %v1598_v27 = vpop.xlane.xlu2 %1597 }
 0xa7a   :  { %3665 = vrcp.f32 %v1598_v27  ;;  %v1642_v41 = vand.u32 2147483648, %v1598_v27  ;;  %v1640_v47 = vand.u32 2147483647, %v1598_v27  ;;  %vm1636_vm7 = vweird.f32 %v1598_v27 }
 0xa7c   :  { %v1643_v39 = vor.u32 1.1754944e-38, %v1642_v41  ;;  %vm1641_vm10 = vcmp.eq.f32.partialorder %v1640_v47, 8.507059e+37 }
 0xa7f   :  { %v4466_v34 = vpop.xlane.xlu1 %1612 }
 0xa80   :  { %v3666_v48 = vpop.eup %3665  ;;  %3667 = vrcp.f32 %v4466_v34  ;;  %v1710_v47 = vand.u32 2147483647, %v4466_v34 }
 0xa81   :  { %v1632_v26 = vmul.f32 %v3666_v48, %v1598_v27  ;;  %v1604_v33 = vpop.xlane.xlu2 %1603  ;;  %vm1637_vm6 = vweird.f32 %v3666_v48 }
 0xa82   :  { %3669 = vrcp.f32 %v1604_v33  ;;  %vm1638_vm8 = vmor %vm1636_vm7, %vm1637_vm6  ;;  %v1670_v7 = vand.u32 2147483648, %v1604_v33  ;;  %v1668_v8 = vand.u32 2147483647, %v1604_v33  ;;  %vm1664_vm3 = vweird.f32 %v1604_v33 }
 0xa83   :  { %v1633_v19 = vsub.f32 1.0, %v1632_v26 }
 0xa84   :  { %v4469_v42 = vpop.xlane.xlu0 %1609  ;;  %v1671_v40 = vor.u32 1.1754944e-38, %v1670_v7  ;;  %vm1669_vm6 = vcmp.eq.f32.partialorder %v1668_v8, 8.507059e+37 }
 0xa85   :  { %v1634_v44 = vmul.f32 %v3666_v48, %v1633_v19  ;;  %3671 = vrcp.f32 %v4469_v42  ;;  %v1698_v16 = vand.u32 2147483648, %v4469_v42  ;;  %v1696_v9 = vand.u32 2147483647, %v4469_v42 }
 0xa86   :  { %v4472_v46 = vpop.eup %3667  ;;  %vm1692_vm7 = vweird.f32 %v4469_v42 }
 0xa87   :  { %v1635_v49 = vadd.f32 %v3666_v48, %v1634_v44  ;;  %v1702_v52 = vmul.f32 %v4472_v46, %v4466_v34  ;;  %v1699_v27 = vor.u32 1.1754944e-38, %v1698_v16  ;;  %vm1697_vm11 = vcmp.eq.f32.partialorder %v1696_v9, 8.507059e+37 }
 0xa88   :  { %v3670_v50 = vpop.eup %3669 }
 0xa89   :  { %v1639_v51 = vsel %vm1638_vm8, %v3666_v48, %v1635_v49  ;;  %v1660_v54 = vmul.f32 %v3670_v50, %v1604_v33  ;;  %v4477_v57 = vpop.xlane.xlu2 %1615  ;;  %v1703_v6 = vsub.f32 1.0, %v1702_v52  ;;  %vm1665_vm13 = vweird.f32 %v3670_v50 }
 0xa8a   :  { %v1644_v63 = vsel %vm1641_vm10, %v1643_v39, %v1639_v51  ;;  %3673 = vrcp.f32 %v4477_v57  ;;  %vm1666_vm4 = vmor %vm1664_vm3, %vm1665_vm13  ;;  %vm1707_vm8 = vweird.f32 %v4472_v46  ;;  %v1724_v26 = vand.u32 2147483647, %v4477_v57 }
 0xa8b   :  { %v3672_v0 = vpop.eup %3671  ;;  %v1661_v4 = vsub.f32 1.0, %v1660_v54  ;;  %v1730_v3 = vmul.f32 %v4424_v59, %v1644_v63  ;;  %v1704_v18 = vmul.f32 %v4472_v46, %v1703_v6  ;;  %v1726_v33 = vand.u32 2147483648, %v4477_v57 }
 0xa8c   :  { %v1688_v45 = vmul.f32 %v3672_v0, %v4469_v42  ;;  %vm1693_vm5 = vweird.f32 %v3672_v0  ;;  %vm1706_vm13 = vweird.f32 %v4466_v34  ;;  %v1712_v42 = vand.u32 2147483648, %v4466_v34 }
 0xa8d   :  { %v1662_v30 = vmul.f32 %v3670_v50, %v1661_v4  ;;  %3479 = vmatmul.msk.f32.vlgmr.msra.gmra.mxu2 %vm267_vm2, %v1730_v3  ;;  %vm1694_vm10 = vmor %vm1692_vm7, %vm1693_vm5  ;;  %v1705_v38 = vadd.f32 %v4472_v46, %v1704_v18  ;;  %vm1720_vm15 = vweird.f32 %v4477_v57  ;;  %v1731_v39 = vmul.f32 %v4420_v53, %v1658_v24 }
 0xa8e   :  { %v1689_v59 = vsub.f32 1.0, %v1688_v45  ;;  %vm4514_vm14 = vmor %vm1706_vm13, %vm1707_vm8  ;;  %v1727_v51 = vor.u32 1.1754944e-38, %v1726_v33  ;;  %v1713_v53 = vor.u32 1.1754944e-38, %v1712_v42  ;;  %vm1711_vm5 = vcmp.eq.f32.partialorder %v1710_v47, 8.507059e+37  ;;  %v3429_v33 = vld [vmem:[%s5018_s11 + $0x20] sm:$0xff] }
 0xa8f   :  { %v1663_v14 = vadd.f32 %v3670_v50, %v1662_v30  ;;  %v1709_v52 = vsel %vm4514_vm14, %v4472_v46, %v1705_v38  ;;  %v3493_v46 = vld [vmem:[%s5015_s8 + $0x48] sm:$0xff] }
 0xa90   :  { %v3674_v17 = vpop.eup %3673  ;;  %v1690_v55 = vmul.f32 %v3672_v0, %v1689_v59  ;;  %v1714_v63 = vsel %vm1711_vm5, %v1713_v53, %v1709_v52 }
 0xa91   :  { %v1667_v15 = vsel %vm1666_vm4, %v3670_v50, %v1663_v14  ;;  %v1716_v20 = vmul.f32 %v3674_v17, %v4477_v57  ;;  %v1814_v36 = vpop.permute.xlu2 %1813  ;;  %vm1721_vm12 = vweird.f32 %v3674_v17  ;;  %vm1725_vm4 = vcmp.eq.f32.partialorder %v1724_v26, 8.507059e+37  ;;  %v3430_v26 = vld [vmem:[%s5018_s11 + $0x28] sm:$0xff] }
 0xa92   :  { %v1672_v21 = vsel %vm1669_vm6, %v1671_v40, %v1667_v15  ;;  %v1691_v25 = vadd.f32 %v3672_v0, %v1690_v55  ;;  %1834 = vmatpush.msrb.mxu0 %v1814_v36  ;;  %vm1722_vm3 = vmor %vm1720_vm15, %vm1721_vm12  ;;  %v1735_v2 = vmul.f32 %v4430_v1, %v1714_v63 }
 0xa93   :  { %v1717_v28 = vsub.f32 1.0, %v1716_v20  ;;  %v1732_v23 = vmul.f32 %v4428_v11, %v1672_v21 }
 0xa94   :  { %v1695_v48 = vsel %vm1694_vm10, %v3672_v0, %v1691_v25 }
 0xa95   :  { %v1700_v19 = vsel %vm1697_vm11, %v1699_v27, %v1695_v48  ;;  %v1718_v41 = vmul.f32 %v3674_v17, %v1717_v28  ;;  %3481 = vmatmul.msk.f32.vlgmr.msrb.gmra.mxu0 %vm267_vm2, %v1732_v23  ;;  %v3431_v48 = vld [vmem:[%s5018_s11 + $0x30] sm:$0xff] }
 0xa96   :  { %v1734_v44 = vmul.f32 %v4436_v56, %v1700_v19  ;;  %v3495_v56 = vld [vmem:[%s5015_s8 + $0x58] sm:$0xff] }
 0xa97   :  { %v1719_v37 = vadd.f32 %v3674_v17, %v1718_v41  ;;  %v1879_v49 = vpop.permute.xlu0 %1878  ;;  %v1788_v50 = vpop.permute.xlu1 %1787 }
 0xa98   :  { %1808 = vmatpush.msra.mxu3 %v1788_v50  ;;  %1899 = vmatpush.msrb.mxu2 %v1879_v49 }
 0xa99   :  { %v1723_v34 = vsel %vm1722_vm3, %v3674_v17, %v1719_v37  ;;  %v1931_v54 = vpop.permute.xlu2 %1930  ;;  %3480 = vmatmul.msk.f32.vlgmr.msra.gmra.mxu3 %vm267_vm2, %v1731_v39  ;;  %3483 = vmatmul.msk.f32.vlgmr.msrb.gmra.mxu2 %vm267_vm2, %v1734_v44 }
 0xa9a   :  { %v1728_v57 = vsel %vm1725_vm4, %v1727_v51, %v1723_v34  ;;  %1951 = vmatpush.msra.mxu0 %v1931_v54  ;;  %v4579_v34 = vld [vmem:[%s5021_s14 + $0x10] sm:$0xff] }
 0xa9b   :  { %v1736_v58 = vmul.f32 %v4440_v29, %v1728_v57  ;;  %v3492_v29 = vld [vmem:[%s5015_s8 + $0x40] sm:$0xff]  ;;  %v1971_v54 = vperm.slane %v4579_v34, 3 }
 0xa9c   :  { %2309 = vmatpush.msrb.mxu0 %v3495_v56 }
 0xa9d   :  { %3485 = vmatmul.msk.f32.vlgmr.msra.gmra.mxu0 %vm267_vm2, %v1736_v58 }
 0xa9e   :  { %2310 = vmatpush.msrb.mxu0 %v3494_v61 }
 0xa9f   :  { %v1905_v0 = vpop.permute.xlu0 %1904 }
 0xaa0   :  { %1925 = vmatpush.msrb.mxu3 %v1905_v0  ;;  %2311 = vmatpush.msrb.mxu0 %v3493_v46 }
 0xaa1   :  { %3484 = vmatmul.msk.f32.vlgmr.msrb.gmra.mxu3 %vm267_vm2, %v1735_v2 }
 0xaa2   :  { %2312 = vmatpush.msrb.mxu0 %v3492_v29 }
 0xaa5   :  { %3531 = vmatmul.msk.f32.vlgmr.msrb.gmra.mxu0 %vm183_vm1, %v4359_v60 }
 0xaad   :  { %3532 = vmatmul.msk.f32.gmra.mxu0 %vm183_vm1, %v4365_v10 }
 0xac2   :  { %v1595_v4 = vpop.xlane.xlu1 %1594 }
 0xac3   :  { %3675 = vrcp.f32 %v1595_v4  ;;  %v1628_v6 = vand.u32 2147483648, %v1595_v4  ;;  %v1626_v8 = vand.u32 2147483647, %v1595_v4  ;;  %vm1622_vm7 = vweird.f32 %v1595_v4 }
 0xac5   :  { %v1629_v12 = vor.u32 1.1754944e-38, %v1628_v6  ;;  %vm1627_vm10 = vcmp.eq.f32.partialorder %v1626_v8, 8.507059e+37 }
 0xac9   :  { %v3676_v3 = vpop.eup %3675 }
 0xaca   :  { %v1618_v7 = vmul.f32 %v3676_v3, %v1595_v4  ;;  %v1607_v1 = vpop.xlane.xlu0 %1606  ;;  %vm1623_vm6 = vweird.f32 %v3676_v3 }
 0xacb   :  { %3677 = vrcp.f32 %v1607_v1  ;;  %vm1624_vm8 = vmor %vm1622_vm7, %vm1623_vm6  ;;  %v1684_v40 = vand.u32 2147483648, %v1607_v1  ;;  %v1682_v9 = vand.u32 2147483647, %v1607_v1  ;;  %vm1678_vm12 = vweird.f32 %v1607_v1 }
 0xacc   :  { %v1619_v45 = vsub.f32 1.0, %v1618_v7 }
 0xacd   :  { %v1685_v15 = vor.u32 1.1754944e-38, %v1684_v40  ;;  %vm1683_vm14 = vcmp.eq.f32.partialorder %v1682_v9, 8.507059e+37 }
 0xace   :  { %v1620_v30 = vmul.f32 %v3676_v3, %v1619_v45 }
 0xad0   :  { %v1621_v5 = vadd.f32 %v3676_v3, %v1620_v30 }
 0xad1   :  { %v3678_v62 = vpop.eup %3677 }
 0xad2   :  { %v1625_v59 = vsel %vm1624_vm8, %v3676_v3, %v1621_v5  ;;  %v1674_v13 = vmul.f32 %v3678_v62, %v1607_v1  ;;  %vm1679_vm11 = vweird.f32 %v3678_v62  ;;  %v3435_v5 = vld [vmem:[%s5019_s12 + $0x30] sm:$0xff] }
 0xad3   :  { %v1630_v14 = vsel %vm1627_vm10, %v1629_v12, %v1625_v59  ;;  %vm1680_vm13 = vmor %vm1678_vm12, %vm1679_vm11  ;;  %v3433_v12 = vld [vmem:[%s5019_s12 + $0x20] sm:$0xff] }
 0xad4   :  { %v1675_v16 = vsub.f32 1.0, %v1674_v13  ;;  %v1729_v17 = vmul.f32 %v4455_v22, %v1630_v14 }
 0xad6   :  { %v1676_v55 = vmul.f32 %v3678_v62, %v1675_v16  ;;  %3478 = vmatmul.msk.f32.vlgmr.msra.gmra.mxu1 %vm267_vm2, %v1729_v17 }
 0xad8   :  { %v1677_v18 = vadd.f32 %v3678_v62, %v1676_v55 }
 0xada   :  { %v1681_v20 = vsel %vm1680_vm13, %v3678_v62, %v1677_v18  ;;  %v3434_v62 = vld [vmem:[%s5019_s12 + $0x28] sm:$0xff] }
 0xadb   :  { %v1686_v36 = vsel %vm1683_vm14, %v1685_v15, %v1681_v20 }
 0xadc   :  { %v1733_v24 = vmul.f32 %v4459_v32, %v1686_v36  ;;  %v3432_v32 = vld [vmem:[%s5018_s11 + $0x38] sm:$0xff] }
 0xadd   :  { %1990 = vmatpush.msra.mxu1 %v3432_v32 }
 0xade   :  { %3482 = vmatmul.msk.f32.vlgmr.msrb.gmra.mxu1 %vm267_vm2, %v1733_v24  ;;  %v2047_v24 = vperm.slane %v4579_v34, 4 }
 0xadf   :  { %1991 = vmatpush.msra.mxu1 %v3431_v48 }
 0xae1   :  { %1992 = vmatpush.msra.mxu1 %v3430_v26 }
 0xae3   :  { %1993 = vmatpush.msra.mxu1 %v3429_v33 }
 0xb10   :  { %v1784_v21 = vpop.f32.mrf.mxu2 }
 0xb11   :  { %1840 = vrot.lane.b32.xlu2 %v1784_v21, %s3773_s2 }
 0xb12   :  { %v1836_v22 = vpop.f32.mrf.mxu0 }
 0xb19   :  { %1848 = vrot.lane.b32.xlu2 %v1836_v22, %s3771_s21 }
 0xb1a   :  { %v1953_v25 = vpop.f32.mrf.mxu0 }
 0xb1b   :  { %1965 = vrot.lane.b32.xlu1 %v1953_v25, %s3771_s21  ;;  %v2050_v25 = vperm.slane %v4579_v34, 5 }
 0xb1c   :  { %v1810_v27 = vpop.f32.mrf.mxu3  ;;  %v1901_v28 = vpop.f32.mrf.mxu2 }
 0xb21   :  { %1844 = vrot.lane.b32.xlu2 %v1810_v27, %s3772_s22 }
 0xb24   :  { %v1927_v23 = vpop.f32.mrf.mxu3 }
 0xb29   :  { %1957 = vrot.lane.b32.xlu2 %v1901_v28, %s3773_s2 }
 0xb31   :  { %1961 = vrot.lane.b32.xlu2 %v1927_v23, %s3772_s22 }
 0xb53   :  { %v1757_v41 = vpop.f32.mrf.mxu1 }
 0xb5b   :  { %v1874_v49 = vpop.f32.mrf.mxu1 }
 0xb6b   :  { %v1841_v38 = vpop.permute.xlu2 %1840 }
 0xb6c   :  { %v1851_v42 = vsel %vm267_vm2, %v1757_v41, %v1841_v38 }
 0xb73   :  { %v1849_v19 = vpop.permute.xlu2 %1848 }
 0xb7b   :  { %v1845_v44 = vpop.permute.xlu2 %1844 }
 0xb7c   :  { %v1852_v11 = vsel %vm78_vm0, %v1851_v42, %v1845_v44 }
 0xb7d   :  { %v1853_v47 = vsel %vm796_vm9, %v1852_v11, %v1849_v19  ;;  %v3452_v11 = vld [vmem:[%s5020_s13 + $0xf8] sm:$0xff] }
 0xb7e   :  { %3486 = vmatmul.msk.f32.vlgmr.msra.gmra.mxu1 %vm183_vm1, %v1853_v47  ;;  %2174 = vmatpush.msra.mxu3 %v3452_v11  ;;  %v3451_v47 = vld [vmem:[%s5020_s13 + $0xf0] sm:$0xff] }
 0xb80   :  { %2175 = vmatpush.msra.mxu3 %v3451_v47 }
 0xb83   :  { %v1958_v37 = vpop.permute.xlu2 %1957 }
 0xb84   :  { %v1968_v50 = vsel %vm267_vm2, %v1874_v49, %v1958_v37  ;;  %v3595_v37 = vld [vmem:[%s5022_s15 + $0x1] ss:$0 sm:$0xff]  ;;  %v3450_v49 = vld [vmem:[%s5020_s13 + $0xe8] sm:$0xff] }
 0xb85   :  { %2176 = vmatpush.msra.mxu3 %v3450_v49 }
 0xb8b   :  { %v1962_v39 = vpop.permute.xlu2 %1961 }
 0xb8c   :  { %v1969_v51 = vsel %vm78_vm0, %v1968_v50, %v1962_v39  ;;  %v3449_v39 = vld [vmem:[%s5020_s13 + $0xe0] sm:$0xff] }
 0xb8d   :  { %v1966_v56 = vpop.permute.xlu1 %1965  ;;  %2177 = vmatpush.msra.mxu3 %v3449_v39 }
 0xb8e   :  { %v1970_v52 = vsel %vm796_vm9, %v1969_v51, %v1966_v56  ;;  %v3448_v56 = vld [vmem:[%s5020_s13 + $0xd8] sm:$0xff] }
 0xb8f   :  { %3487 = vmatmul.msk.f32.gmra.mxu1 %vm183_vm1, %v1970_v52  ;;  %2178 = vmatpush.msra.mxu3 %v3448_v56 }
 0xbfb   :  { %v1995_v53 = vpop.f32.mrf.mxu1 }
 0xbfc   :  { %v1996_v57 = vadd.f32 %v1995_v53, %v1971_v54 }
 0xbfe   :  { %v2001_v58 = vadd.f32 %v1996_v57, %v3950_v31  ;;  %v3446_v57 = vld [vmem:[%s5020_s13 + $0xc8] sm:$0xff] }
 0xc00   :  { %v2003_v61 = vsel %vm183_vm1, %v2001_v58, 0.0 }
 0xc01   :  { %2004 = vadd.xlane.f32.xlu2 %v2003_v61  ;;  %v3445_v61 = vld [vmem:[%s5020_s13 + $0xc0] sm:$0xff] }
 0xc0c   :  { %v1998_v63 = vpop.f32.mrf.mxu1 }
 0xc0d   :  { %v1999_v46 = vadd.f32 %v1998_v63, %v1971_v54  ;;  %v3447_v54 = vld [vmem:[%s5020_s13 + $0xd0] sm:$0xff] }
 0xc0e   :  { %2179 = vmatpush.msra.mxu3 %v3447_v54 }
 0xc0f   :  { %v2002_v0 = vadd.f32 %v1999_v46, %v3958_v35  ;;  %v3436_v35 = vld [vmem:[%s5019_s12 + $0x38] sm:$0xff] }
 0xc10   :  { %2074 = vmatpush.msra.mxu2 %v3436_v35  ;;  %2180 = vmatpush.msra.mxu3 %v3446_v57 }
 0xc11   :  { %v2006_v2 = vsel %vm183_vm1, %v2002_v0, 0.0 }
 0xc12   :  { %2007 = vadd.xlane.f32.xlu0 %v2006_v2  ;;  %2075 = vmatpush.msra.mxu2 %v3435_v5  ;;  %v3440_v5 = vld [vmem:[%s5020_s13 + $0x98] sm:$0xff] }
 0xc13   :  { %2181 = vmatpush.msra.mxu3 %v3445_v61 }
 0xc14   :  { %2076 = vmatpush.msra.mxu2 %v3434_v62 }
 0xc16   :  { %2077 = vmatpush.msra.mxu2 %v3433_v12 }
 0xc74   :  { %v2005_v29 = vpop.xlane.xlu2 %2004 }
 0xc75   :  { %v2009_v4 = vmul.f32 %v2005_v29, %v4206_v43 }
 0xc77   :  { %v2011_v3 = vsub.f32 %v2001_v58, %v2009_v4  ;;  %v3443_v4 = vld [vmem:[%s5020_s13 + $0xb0] sm:$0xff] }
 0xc79   :  { %v2013_v7 = vmul.f32 %v2011_v3, %v2011_v3 }
 0xc7b   :  { %v2015_v1 = vsel %vm183_vm1, %v2013_v7, 0.0 }
 0xc7c   :  { %2016 = vadd.xlane.f32.xlu0 %v2015_v1  ;;  %v3442_v1 = vld [vmem:[%s5020_s13 + $0xa8] sm:$0xff] }
 0xc85   :  { %v2008_v45 = vpop.xlane.xlu0 %2007 }
 0xc86   :  { %v2010_v31 = vmul.f32 %v2008_v45, %v4206_v43 }
 0xc88   :  { %v2012_v6 = vsub.f32 %v2002_v0, %v2010_v31  ;;  %v3444_v0 = vld [vmem:[%s5020_s13 + $0xb8] sm:$0xff] }
 0xc89   :  { %2182 = vmatpush.msra.mxu3 %v3444_v0 }
 0xc8a   :  { %v2014_v30 = vmul.f32 %v2012_v6, %v2012_v6 }
 0xc8b   :  { %2183 = vmatpush.msra.mxu3 %v3443_v4 }
 0xc8c   :  { %v2018_v8 = vsel %vm183_vm1, %v2014_v30, 0.0 }
 0xc8d   :  { %2019 = vadd.xlane.f32.xlu0 %v2018_v8  ;;  %2184 = vmatpush.msra.mxu3 %v3442_v1 }
 0xcef   :  { %v2017_v59 = vpop.xlane.xlu0 %2016 }
 0xcf0   :  { %v2021_v13 = vmul.f32 %v2017_v59, %v4206_v43 }
 0xcf2   :  { %v2023_v14 = vadd.f32 1e-05, %v2021_v13  ;;  %v3439_v13 = vld [vmem:[%s5020_s13 + $0x90] sm:$0xff] }
 0xcf4   :  { %3679 = vrsqrt.f32 %v2023_v14  ;;  %vm2031_vm3 = vweird.f32 %v2023_v14 }
 0xcfa   :  { %v3680_v16 = vpop.eup %3679 }
 0xcfb   :  { %v2026_v17 = vmul.f32 %v3680_v16, %v2023_v14  ;;  %vm2032_vm15 = vweird.f32 %v3680_v16  ;;  %v3438_v14 = vld [vmem:[%s5020_s13 + $0x88] sm:$0xff] }
 0xcfc   :  { %vm2033_vm4 = vmor %vm2031_vm3, %vm2032_vm15 }
 0xcfd   :  { %v2027_v40 = vmul.f32 %v3680_v16, %v2026_v17 }
 0xcff   :  { %v2028_v55 = vmul.f32 0.5, %v2027_v40  ;;  %v3437_v40 = vld [vmem:[%s5020_s13 + $0x80] sm:$0xff] }
 0xd00   :  { %v2020_v9 = vpop.xlane.xlu0 %2019 }
 0xd01   :  { %v2029_v18 = vsub.f32 1.5, %v2028_v55  ;;  %v2022_v15 = vmul.f32 %v2020_v9, %v4206_v43 }
 0xd03   :  { %v2030_v20 = vmul.f32 %v3680_v16, %v2029_v18  ;;  %v2024_v36 = vadd.f32 1e-05, %v2022_v15 }
 0xd05   :  { %v2034_v21 = vsel %vm2033_vm4, %v3680_v16, %v2030_v20  ;;  %3681 = vrsqrt.f32 %v2024_v36  ;;  %vm2041_vm6 = vweird.f32 %v2024_v36 }
 0xd06   :  { %v2045_v22 = vmul.f32 %v2034_v21, %v2011_v3 }
 0xd08   :  { %v2048_v27 = vmul.f32 %v2047_v24, %v2045_v22 }
 0xd0a   :  { %v4606_v28 = vadd.f32 %v2050_v25, %v2048_v27 }
 0xd0b   :  { %v3682_v23 = vpop.eup %3681 }
 0xd0c   :  { %v2036_v32 = vmul.f32 %v3682_v23, %v2024_v36  ;;  %3488 = vmatmul.msk.f32.vlgmr.msra.gmra.mxu2 %vm183_vm1, %v4606_v28  ;;  %vm2042_vm5 = vweird.f32 %v3682_v23 }
 0xd0d   :  { %vm2043_vm7 = vmor %vm2041_vm6, %vm2042_vm5 }
 0xd0e   :  { %v2037_v48 = vmul.f32 %v3682_v23, %v2036_v32 }
 0xd10   :  { %v2038_v26 = vmul.f32 0.5, %v2037_v48 }
 0xd12   :  { %v2039_v33 = vsub.f32 1.5, %v2038_v26 }
 0xd14   :  { %v2040_v38 = vmul.f32 %v3682_v23, %v2039_v33 }
 0xd16   :  { %v2044_v19 = vsel %vm2043_vm7, %v3682_v23, %v2040_v38 }
 0xd17   :  { %v2046_v41 = vmul.f32 %v2044_v19, %v2012_v6  ;;  %v3441_v6 = vld [vmem:[%s5020_s13 + $0xa0] sm:$0xff] }
 0xd18   :  { %2185 = vmatpush.msra.mxu3 %v3441_v6 }
 0xd19   :  { %v2049_v42 = vmul.f32 %v2047_v24, %v2046_v41 }
 0xd1a   :  { %2186 = vmatpush.msra.mxu3 %v3440_v5 }
 0xd1b   :  { %v4610_v44 = vadd.f32 %v2050_v25, %v2049_v42 }
 0xd1c   :  { %2187 = vmatpush.msra.mxu3 %v3439_v13 }
 0xd1d   :  { %3489 = vmatmul.msk.f32.gmra.mxu2 %vm183_vm1, %v4610_v44 }
 0xd1e   :  { %2188 = vmatpush.msra.mxu3 %v3438_v14 }
 0xd20   :  { %2189 = vmatpush.msra.mxu3 %v3437_v40 }
 0xd8f   :  { %v2079_v50 = vpop.f32.mrf.mxu2 }
 0xd90   :  { %v4629_v51 = vadd.f32 %v3595_v37, %v2079_v50 }
 0xd92   :  { %v4635_v52 = vmul.f32 0.70710677, %v4629_v51  ;;  %v2085_v1 = vmul.f32 0.5, %v4629_v51 }
 0xd94   :  { %v2089_v53 = vmul.f32 %v4635_v52, %v4635_v52 }
 0xd96   :  { %v2090_v58 = vmin.f32 %v2089_v53, 16.0 }
 0xd98   :  { %v2091_v63 = vmul.f32 2.1237322e-06, %v2090_v58  ;;  %v2102_v46 = vmul.f32 3.8918573e-05, %v2090_v58 }
 0xd9a   :  { %v2092_v2 = vadd.f32 0.00028619796, %v2091_v63  ;;  %v2103_v29 = vadd.f32 0.001143296, %v2102_v46 }
 0xd9c   :  { %v2093_v3 = vmul.f32 %v2092_v2, %v2090_v58  ;;  %v2104_v7 = vmul.f32 %v2103_v29, %v2090_v58 }
 0xd9e   :  { %v2094_v45 = vadd.f32 0.0036580483, %v2093_v3  ;;  %v2105_v31 = vadd.f32 0.014752088, %v2104_v7 }
 0xda0   :  { %v2106_v30 = vmul.f32 %v2105_v31, %v2090_v58  ;;  %v2082_v8 = vpop.f32.mrf.mxu2  ;;  %v2095_v62 = vmul.f32 %v2094_v45, %v2090_v58 }
 0xda1   :  { %v4660_v35 = vadd.f32 %v3595_v37, %v2082_v8 }
 0xda2   :  { %v2107_v12 = vadd.f32 0.112945676, %v2106_v30  ;;  %v2096_v55 = vadd.f32 0.05243302, %v2095_v62 }
 0xda3   :  { %v4666_v59 = vmul.f32 0.70710677, %v4660_v35 }
 0xda4   :  { %v2108_v16 = vmul.f32 %v2107_v12, %v2090_v58  ;;  %v2097_v24 = vmul.f32 %v2096_v55, %v2090_v58 }
 0xda5   :  { %v2129_v17 = vmul.f32 %v4666_v59, %v4666_v59 }
 0xda6   :  { %v2109_v9 = vadd.f32 0.4994258, %v2108_v16  ;;  %v2098_v32 = vadd.f32 0.18741608, %v2097_v24 }
 0xda7   :  { %v2130_v18 = vmin.f32 %v2129_v17, 16.0 }
 0xda8   :  { %v2110_v15 = vmul.f32 %v2109_v9, %v2090_v58  ;;  %v2099_v19 = vmul.f32 %v2098_v32, %v2090_v58 }
 0xda9   :  { %v2131_v20 = vmul.f32 2.1237322e-06, %v2130_v18  ;;  %v2142_v36 = vmul.f32 3.8918573e-05, %v2130_v18 }
 0xdaa   :  { %v2111_v21 = vadd.f32 1.0, %v2110_v15  ;;  %v2100_v49 = vadd.f32 1.1283791, %v2099_v19 }
 0xdab   :  { %v2132_v22 = vadd.f32 0.00028619796, %v2131_v20  ;;  %v2143_v25 = vadd.f32 0.001143296, %v2142_v36  ;;  %v2173_v36 = vperm.slane %v4579_v34, 6 }
 0xdac   :  { %3683 = vrcp.f32 %v2111_v21  ;;  %v2123_v50 = vand.u32 2147483648, %v2111_v21  ;;  %v2121_v56 = vand.u32 2147483647, %v2111_v21  ;;  %vm2117_vm10 = vweird.f32 %v2111_v21 }
 0xdad   :  { %v2133_v27 = vmul.f32 %v2132_v22, %v2130_v18  ;;  %v2144_v23 = vmul.f32 %v2143_v25, %v2130_v18  ;;  %v2101_v46 = vmul.f32 %v2100_v49, %v4635_v52 }
 0xdae   :  { %v2124_v63 = vor.u32 1.1754944e-38, %v2123_v50  ;;  %vm2122_vm12 = vcmp.eq.f32.partialorder %v2121_v56, 8.507059e+37  ;;  %v3499_v50 = vld [vmem:[%s5016_s9 + $0x58] sm:$0xff]  ;;  %v3498_v56 = vld [vmem:[%s5016_s9 + $0x50] sm:$0xff] }
 0xdaf   :  { %v2145_v48 = vadd.f32 0.014752088, %v2144_v23  ;;  %v2134_v26 = vadd.f32 0.0036580483, %v2133_v27  ;;  %2339 = vmatpush.msrb.mxu1 %v3499_v50 }
 0xdb1   :  { %v2146_v33 = vmul.f32 %v2145_v48, %v2130_v18  ;;  %v2135_v11 = vmul.f32 %v2134_v26, %v2130_v18  ;;  %2340 = vmatpush.msrb.mxu1 %v3498_v56 }
 0xdb2   :  { %v3684_v38 = vpop.eup %3683 }
 0xdb3   :  { %v2113_v41 = vmul.f32 %v3684_v38, %v2111_v21  ;;  %v2147_v42 = vadd.f32 0.112945676, %v2146_v33  ;;  %vm2118_vm8 = vweird.f32 %v3684_v38  ;;  %v2136_v53 = vadd.f32 0.05243302, %v2135_v11 }
 0xdb4   :  { %vm2119_vm11 = vmor %vm2117_vm10, %vm2118_vm8 }
 0xdb5   :  { %v2114_v47 = vsub.f32 1.0, %v2113_v41  ;;  %v2148_v37 = vmul.f32 %v2147_v42, %v2130_v18  ;;  %v2137_v29 = vmul.f32 %v2136_v53, %v2130_v18  ;;  %v3497_v53 = vld [vmem:[%s5016_s9 + $0x48] sm:$0xff] }
 0xdb6   :  { %2341 = vmatpush.msrb.mxu1 %v3497_v53 }
 0xdb7   :  { %v2115_v39 = vmul.f32 %v3684_v38, %v2114_v47  ;;  %v2149_v54 = vadd.f32 0.4994258, %v2148_v37  ;;  %v2138_v7 = vadd.f32 0.18741608, %v2137_v29  ;;  %v2314_v37 = vpop.f32.mrf.mxu0 }
 0xdb9   :  { %v2116_v57 = vadd.f32 %v3684_v38, %v2115_v39  ;;  %v2150_v61 = vmul.f32 %v2149_v54, %v2130_v18  ;;  %v2139_v30 = vmul.f32 %v2138_v7, %v2130_v18  ;;  %v2086_v18 = vmul.f32 0.5, %v4660_v35  ;;  %v3503_v39 = vld [vmem:[%s5017_s10 + $0x58] sm:$0xff]  ;;  %v3502_v54 = vld [vmem:[%s5017_s10 + $0x50] sm:$0xff] }
 0xdba   :  { %2363 = vmatpush.msrb.mxu2 %v3503_v39 }
 0xdbb   :  { %v2120_v58 = vsel %vm2119_vm11, %v3684_v38, %v2116_v57  ;;  %v2151_v0 = vadd.f32 1.0, %v2150_v61  ;;  %v2140_v52 = vadd.f32 1.1283791, %v2139_v30  ;;  %v3501_v57 = vld [vmem:[%s5017_s10 + $0x48] sm:$0xff]  ;;  %v3496_v61 = vld [vmem:[%s5016_s9 + $0x40] sm:$0xff]  ;;  %v2243_v30 = vperm.slane %v4579_v34, 7 }
 0xdbc   :  { %v2125_v2 = vsel %vm2122_vm12, %v2124_v63, %v2120_v58  ;;  %2364 = vmatpush.msrb.mxu2 %v3502_v54  ;;  %v3500_v63 = vld [vmem:[%s5017_s10 + $0x40] sm:$0xff]  ;;  %2342 = vmatpush.msrb.mxu1 %v3496_v61 }
 0xdbd   :  { %v2126_v4 = vmul.f32 %v2125_v2, %v2101_v46  ;;  %3685 = vrcp.f32 %v2151_v0  ;;  %v2163_v62 = vand.u32 2147483648, %v2151_v0  ;;  %v2161_v13 = vand.u32 2147483647, %v2151_v0 }
 0xdbe   :  { %vm2157_vm14 = vweird.f32 %v2151_v0  ;;  %v2141_v17 = vmul.f32 %v2140_v52, %v4666_v59  ;;  %2365 = vmatpush.msrb.mxu2 %v3501_v57 }
 0xdbf   :  { %v3490_v3 = vclamps-f32 %v2126_v4, 1.0  ;;  %v2164_v16 = vor.u32 1.1754944e-38, %v2163_v62  ;;  %vm2162_vm3 = vcmp.eq.f32.partialorder %v2161_v13, 8.507059e+37  ;;  %v3596_v62 = vld [vmem:[%s5021_s14 + $0x18] ss:$0 sm:$0xff] }
 0xdc0   :  { %2366 = vmatpush.msrb.mxu2 %v3500_v63 }
 0xdc1   :  { %v2169_v45 = vadd.f32 1.0, %v3490_v3 }
 0xdc3   :  { %v3686_v31 = vpop.eup %3685  ;;  %v2171_v6 = vmul.f32 %v2169_v45, %v2085_v1 }
 0xdc4   :  { %v2153_v8 = vmul.f32 %v3686_v31, %v2151_v0  ;;  %vm2158_vm13 = vweird.f32 %v3686_v31 }
 0xdc5   :  { %2190 = vmatmul.f32.vlgmr.msra.gmra.mxu3 %v2171_v6  ;;  %vm2159_vm15 = vmor %vm2157_vm14, %vm2158_vm13 }
 0xdc6   :  { %v2154_v5 = vsub.f32 1.0, %v2153_v8 }
 0xdc8   :  { %v2155_v12 = vmul.f32 %v3686_v31, %v2154_v5 }
 0xdca   :  { %v2156_v14 = vadd.f32 %v3686_v31, %v2155_v12 }
 0xdcc   :  { %v2160_v40 = vsel %vm2159_vm15, %v3686_v31, %v2156_v14 }
 0xdcd   :  { %v2165_v51 = vsel %vm2162_vm3, %v2164_v16, %v2160_v40 }
 0xdce   :  { %v2166_v55 = vmul.f32 %v2165_v51, %v2141_v17 }
 0xdd0   :  { %v3491_v9 = vclamps-f32 %v2166_v55, 1.0 }
 0xdd2   :  { %v2170_v15 = vadd.f32 1.0, %v3491_v9 }
 0xdd4   :  { %v2172_v20 = vmul.f32 %v2170_v15, %v2086_v18 }
 0xdd6   :  { %2193 = vmatmul.f32.gmra.mxu3 %v2172_v20 }
 0xe48   :  { %v2191_v24 = vpop.f32.mrf.mxu3 }
 0xe49   :  { %v2192_v21 = vadd.f32 %v2191_v24, %v2173_v36  ;;  %v2317_v24 = vpop.f32.mrf.mxu0 }
 0xe4b   :  { %v2197_v22 = vadd.f32 %v2192_v21, %v4606_v28 }
 0xe4d   :  { %v2199_v25 = vsel %vm183_vm1, %v2197_v22, 0.0 }
 0xe4e   :  { %2200 = vadd.xlane.f32.xlu1 %v2199_v25 }
 0xe59   :  { %v2194_v59 = vpop.f32.mrf.mxu3 }
 0xe5a   :  { %v2195_v27 = vadd.f32 %v2194_v59, %v2173_v36 }
 0xe5c   :  { %v2198_v23 = vadd.f32 %v2195_v27, %v4610_v44  ;;  %v4695_v44 = vld [vmem:[%s5021_s14 + $0x20] sm:$0xff] }
 0xe5d   :  { %v2296_v47 = vperm.slane %v4695_v44, 0  ;;  %v2320_v15 = vperm.slane %v4695_v44, 1 }
 0xe5e   :  { %v2202_v32 = vsel %vm183_vm1, %v2198_v23, 0.0 }
 0xe5f   :  { %2203 = vadd.xlane.f32.xlu0 %v2202_v32  ;;  %v4700_v49 = vadd.f32 %v2314_v37, %v2296_v47  ;;  %v2318_v21 = vadd.f32 %v2317_v24, %v2296_v47 }
 0xec1   :  { %v2201_v35 = vpop.xlane.xlu1 %2200 }
 0xec2   :  { %v2205_v48 = vmul.f32 %v2201_v35, %v4206_v43 }
 0xec4   :  { %v2207_v26 = vsub.f32 %v2197_v22, %v2205_v48 }
 0xec6   :  { %v2209_v33 = vmul.f32 %v2207_v26, %v2207_v26 }
 0xec8   :  { %v2211_v38 = vsel %vm183_vm1, %v2209_v33, 0.0  ;;  %v2350_v33 = vperm.slane %v4695_v44, 2 }
 0xec9   :  { %2212 = vadd.xlane.f32.xlu0 %v2211_v38 }
 0xed2   :  { %v2204_v19 = vpop.xlane.xlu0 %2203 }
 0xed3   :  { %v2206_v28 = vmul.f32 %v2204_v19, %v4206_v43 }
 0xed5   :  { %v2208_v41 = vsub.f32 %v2198_v23, %v2206_v28 }
 0xed7   :  { %v2210_v42 = vmul.f32 %v2208_v41, %v2208_v41 }
 0xed9   :  { %v2214_v11 = vsel %vm183_vm1, %v2210_v42, 0.0 }
 0xeda   :  { %2215 = vadd.xlane.f32.xlu0 %v2214_v11 }
 0xeee   :  { %2456 = vrot.lane.b32.xlu0 %v4700_v49, %s3770_s28 }
 0xef6   :  { %2428 = vrot.lane.b32.xlu0 %v4700_v49, %s3769_s27 }
 0xf3c   :  { %v2213_v46 = vpop.xlane.xlu0 %2212 }
 0xf3d   :  { %v2217_v58 = vmul.f32 %v2213_v46, %v4206_v43 }
 0xf3f   :  { %v2219_v0 = vadd.f32 1e-05, %v2217_v58 }
 0xf41   :  { %3687 = vrsqrt.f32 %v2219_v0  ;;  %vm2227_vm5 = vweird.f32 %v2219_v0 }
 0xf47   :  { %v3688_v2 = vpop.eup %3687 }
 0xf48   :  { %v2222_v29 = vmul.f32 %v3688_v2, %v2219_v0  ;;  %vm2228_vm4 = vweird.f32 %v3688_v2 }
 0xf49   :  { %vm2229_vm6 = vmor %vm2227_vm5, %vm2228_vm4 }
 0xf4a   :  { %v2223_v4 = vmul.f32 %v3688_v2, %v2222_v29 }
 0xf4c   :  { %v2224_v3 = vmul.f32 0.5, %v2223_v4 }
 0xf4d   :  { %v2216_v7 = vpop.xlane.xlu0 %2215 }
 0xf4e   :  { %v2225_v1 = vsub.f32 1.5, %v2224_v3  ;;  %v2218_v45 = vmul.f32 %v2216_v7, %v4206_v43 }
 0xf50   :  { %v2226_v31 = vmul.f32 %v3688_v2, %v2225_v1  ;;  %v2220_v6 = vadd.f32 1e-05, %v2218_v45 }
 0xf52   :  { %v2230_v8 = vsel %vm2229_vm6, %v3688_v2, %v2226_v31  ;;  %3689 = vrsqrt.f32 %v2220_v6  ;;  %vm2237_vm8 = vweird.f32 %v2220_v6 }
 0xf53   :  { %v2241_v5 = vmul.f32 %v2230_v8, %v2207_v26 }
 0xf55   :  { %v2244_v52 = vmul.f32 %v2243_v30, %v2241_v5 }
 0xf57   :  { %v2247_v12 = vadd.f32 %v3596_v62, %v2244_v52 }
 0xf58   :  { %v3690_v13 = vpop.eup %3689 }
 0xf59   :  { %v2232_v14 = vmul.f32 %v3690_v13, %v2220_v6  ;;  %3533 = vmatmul.msk.f32.vlgmr.msrb.gmra.mxu1 %vm183_vm1, %v2247_v12  ;;  %3535 = vmatmul.msk.f32.vlgmr.msrb.gmra.mxu2 %vm183_vm1, %v2247_v12  ;;  %vm2238_vm7 = vweird.f32 %v3690_v13 }
 0xf5a   :  { %vm2239_vm10 = vmor %vm2237_vm8, %vm2238_vm7 }
 0xf5b   :  { %v2233_v16 = vmul.f32 %v3690_v13, %v2232_v14 }
 0xf5d   :  { %v2234_v17 = vmul.f32 0.5, %v2233_v16 }
 0xf5f   :  { %v2235_v40 = vsub.f32 1.5, %v2234_v17 }
 0xf60   :  { %v2457_v27 = vpop.permute.xlu0 %2456 }
 0xf61   :  { %v2236_v34 = vmul.f32 %v3690_v13, %v2235_v40 }
 0xf63   :  { %v2240_v51 = vsel %vm2239_vm10, %v3690_v13, %v2236_v34 }
 0xf64   :  { %v2242_v55 = vmul.f32 %v2240_v51, %v2208_v41 }
 0xf66   :  { %v2245_v9 = vmul.f32 %v2243_v30, %v2242_v55 }
 0xf68   :  { %v2248_v18 = vadd.f32 %v3596_v62, %v2245_v9  ;;  %v2429_v23 = vpop.permute.xlu0 %2428 }
 0xf6a   :  { %3534 = vmatmul.msk.f32.gmra.mxu1 %vm183_vm1, %v2248_v18  ;;  %3536 = vmatmul.msk.f32.gmra.mxu2 %vm183_vm1, %v2248_v18 }
 0xfd6   :  { %v2344_v20 = vpop.f32.mrf.mxu1 }
 0xfd7   :  { %v2345_v36 = vadd.f32 %v2344_v20, %v2320_v15 }
 0xfd9   :  { %2402 = vrot.lane.b32.xlu0 %v2345_v36, %s3768_s26  ;;  %2430 = vrot.lane.b32.xlu1 %v2345_v36, %s3769_s27 }
 0xfda   :  { %2458 = vrot.lane.b32.xlu2 %v2345_v36, %s3770_s28  ;;  %3537 = vmatpush.xpose.msk.msra.mxu0 %vm267_vm2, %v2345_v36 }
 0xfdc   :  { %v2368_v38 = vpop.f32.mrf.mxu2 }
 0xfdd   :  { %3538 = vmatmul.msk.f32.vlgmr.msra.gmra.mxu0 %vm267_vm2, %v4700_v49  ;;  %v2369_v19 = vadd.f32 %v2368_v38, %v2350_v33 }
 0xfe1   :  { %2566 = vrot.lane.b32.xlu0 %v2318_v21, %s3770_s28  ;;  %2400 = vrot.lane.b32.xlu1 %v4700_v49, %s3768_s26 }
 0xfe7   :  { %v2347_v22 = vpop.f32.mrf.mxu1 }
 0xfe8   :  { %v2348_v25 = vadd.f32 %v2347_v22, %v2320_v15 }
 0xfe9   :  { %2510 = vrot.lane.b32.xlu0 %v2318_v21, %s3768_s26 }
 0xfea   :  { %2540 = vrot.lane.b32.xlu2 %v2348_v25, %s3769_s27 }
 0xfed   :  { %v2371_v11 = vpop.f32.mrf.mxu2 }
 0xfee   :  { %v4771_v37 = vadd.f32 %v2371_v11, %v2350_v33 }
 0xff2   :  { %2568 = vrot.lane.b32.xlu2 %v2348_v25, %s3770_s28 }
 0xffa   :  { %2538 = vrot.lane.b32.xlu2 %v2318_v21, %s3769_s27 }
0x1002   :  { %2512 = vrot.lane.b32.xlu2 %v2348_v25, %s3768_s26 }
0x1034   :  { %v2459_v59 = vpop.permute.xlu2 %2458 }
0x1035   :  { %3543 = vmatpush.xpose.msk.msra.mxu2 %vm267_vm2, %v2459_v59 }
0x1038   :  { %3544 = vmatmul.msk.f32.vlgmr.msra.gmra.mxu2 %vm267_vm2, %v2457_v27 }
0x1044   :  { %v2541_v32 = vpop.permute.xlu2 %2540 }
0x1045   :  { %3549 = vmatpush.xpose.msk.msrb.mxu2 %vm267_vm2, %v2541_v32 }
0x104b   :  { %v2431_v35 = vpop.permute.xlu1 %2430  ;;  %v2403_v48 = vpop.permute.xlu0 %2402 }
0x104c   :  { %3541 = vmatpush.xpose.msk.msra.mxu1 %vm267_vm2, %v2431_v35  ;;  %v2569_v26 = vpop.permute.xlu2 %2568  ;;  %3539 = vmatpush.xpose.msk.msrb.mxu0 %vm267_vm2, %v2403_v48 }
0x104d   :  { %3551 = vmatpush.xpose.msk.msrb.mxu3 %vm267_vm2, %v2569_v26 }
0x104f   :  { %3542 = vmatmul.msk.f32.vlgmr.msra.gmra.mxu1 %vm267_vm2, %v2429_v23 }
0x1050   :  { %3545 = vmatpush.xpose.msk.msra.mxu0 %vm267_vm2, %v2348_v25 }
0x1053   :  { %v2401_v28 = vpop.permute.xlu1 %2400  ;;  %v2567_v41 = vpop.permute.xlu0 %2566 }
0x1054   :  { %v2539_v42 = vpop.permute.xlu2 %2538  ;;  %3540 = vmatmul.msk.f32.vlgmr.msrb.gmra.mxu0 %vm267_vm2, %v2401_v28  ;;  %3552 = vmatmul.msk.f32.vlgmr.msrb.gmra.mxu3 %vm267_vm2, %v2567_v41 }
0x1055   :  { %2804 = vmatpush.msrb.mxu0 %v2369_v19  ;;  %3550 = vmatmul.msk.f32.vlgmr.msrb.gmra.mxu2 %vm267_vm2, %v2539_v42 }
0x105a   :  { %v4769_v47 = vpop.f32.mrf.mxu0 }
0x105b   :  { %v2594_v49 = vsel %vm267_vm2, %v4769_v47, -inf  ;;  %v2511_v39 = vpop.permute.xlu0 %2510 }
0x105c   :  { %2595 = vmax.xlane.f32.xlu1 %v2594_v49  ;;  %v2513_v50 = vpop.permute.xlu2 %2512  ;;  %3546 = vmatmul.msk.f32.vlgmr.msra.gmra.mxu0 %vm267_vm2, %v2318_v21 }
0x105d   :  { %2921 = vmatpush.msra.mxu0 %v4771_v37  ;;  %3547 = vmatpush.xpose.msk.msrb.mxu1 %vm267_vm2, %v2513_v50 }
0x1060   :  { %3548 = vmatmul.msk.f32.vlgmr.msrb.gmra.mxu1 %vm267_vm2, %v2511_v39 }
0x10bb   :  { %v2481_v56 = vpop.f32.mrf.mxu2 }
0x10bc   :  { %v2603_v54 = vsel %vm267_vm2, %v2481_v56, -inf }
0x10bd   :  { %2604 = vmax.xlane.f32.xlu2 %v2603_v54 }
0x10cc   :  { %v2453_v53 = vpop.f32.mrf.mxu1 }
0x10cd   :  { %v2600_v57 = vsel %vm267_vm2, %v2453_v53, -inf }
0x10ce   :  { %2601 = vmax.xlane.f32.xlu1 %v2600_v57 }
0x10cf   :  { %v2596_v6 = vpop.xlane.xlu1 %2595 }
0x10d0   :  { %v2618_v38 = vsub.f32 %v4769_v47, %v2596_v6 }
0x10d1   :  { %v2425_v61 = vpop.f32.mrf.mxu0 }
0x10d2   :  { %v2597_v63 = vsel %vm267_vm2, %v2425_v61, -inf }
0x10d3   :  { %2598 = vmax.xlane.f32.xlu0 %v2597_v63 }
0x10d7   :  { %v2591_v3 = vpop.f32.mrf.mxu3 }
0x10d8   :  { %v2563_v46 = vpop.f32.mrf.mxu2  ;;  %v2615_v7 = vsel %vm267_vm2, %v2591_v3, -inf }
0x10d9   :  { %v4782_v58 = vpop.f32.mrf.mxu0  ;;  %v2612_v0 = vsel %vm267_vm2, %v2563_v46, -inf }
0x10da   :  { %2613 = vmax.xlane.f32.xlu1 %v2612_v0  ;;  %v2606_v2 = vsel %vm267_vm2, %v4782_v58, -inf }
0x10db   :  { %2607 = vmax.xlane.f32.xlu2 %v2606_v2 }
0x10dd   :  { %v2535_v29 = vpop.f32.mrf.mxu1 }
0x10de   :  { %v2609_v4 = vsel %vm267_vm2, %v2535_v29, -inf }
0x10df   :  { %2610 = vmax.xlane.f32.xlu0 %v2609_v4 }
0x10e3   :  { %2616 = vmax.xlane.f32.xlu2 %v2615_v7 }
0x10f3   :  { %2862 = vrot.lane.b32.xlu1 %v2369_v19, %s3770_s28  ;;  %2836 = vrot.lane.b32.xlu0 %v2369_v19, %s3769_s27 }
0x10fb   :  { %2810 = vrot.lane.b32.xlu2 %v2369_v19, %s3768_s26  ;;  %v2626_v19 = vmul.f32 1.442695, %v2618_v38 }
0x1130   :  { %v2605_v1 = vpop.xlane.xlu2 %2604 }
0x1131   :  { %v2621_v45 = vsub.f32 %v2481_v56, %v2605_v1 }
0x1133   :  { %v2632_v31 = vmul.f32 1.442695, %v2621_v45 }
0x1135   :  { %3691 = vpow2.f32 %v2632_v31 }
0x113b   :  { %v4792_v30 = vpop.eup %3691 }
0x113c   :  { %v2651_v8 = vsel %vm267_vm2, %v4792_v30, 0.0 }
0x113d   :  { %2652 = vadd.xlane.f32.xlu1 %v2651_v8 }
0x1141   :  { %v2602_v5 = vpop.xlane.xlu1 %2601 }
0x1142   :  { %v2620_v62 = vsub.f32 %v2453_v53, %v2602_v5 }
0x1144   :  { %v2630_v52 = vmul.f32 1.442695, %v2620_v62 }
0x1146   :  { %3693 = vpow2.f32 %v2630_v52  ;;  %v2599_v12 = vpop.xlane.xlu0 %2598 }
0x1147   :  { %v2619_v13 = vsub.f32 %v2425_v61, %v2599_v12 }
0x1149   :  { %v2628_v14 = vmul.f32 1.442695, %v2619_v13 }
0x114b   :  { %3695 = vpow2.f32 %v2628_v14 }
0x114c   :  { %v4796_v16 = vpop.eup %3693 }
0x114d   :  { %v2614_v17 = vpop.xlane.xlu1 %2613  ;;  %v2648_v40 = vsel %vm267_vm2, %v4796_v16, 0.0 }
0x114e   :  { %v2624_v34 = vsub.f32 %v2563_v46, %v2614_v17  ;;  %v2608_v51 = vpop.xlane.xlu2 %2607  ;;  %2649 = vadd.xlane.f32.xlu0 %v2648_v40 }
0x114f   :  { %v2622_v41 = vsub.f32 %v4782_v58, %v2608_v51 }
0x1150   :  { %v2638_v55 = vmul.f32 1.442695, %v2624_v34 }
0x1151   :  { %v4800_v9 = vpop.eup %3695  ;;  %v2634_v11 = vmul.f32 1.442695, %v2622_v41 }
0x1152   :  { %3697 = vpow2.f32 %v2638_v55  ;;  %v2611_v18 = vpop.xlane.xlu0 %2610  ;;  %v2645_v15 = vsel %vm267_vm2, %v4800_v9, 0.0 }
0x1153   :  { %v2623_v20 = vsub.f32 %v2535_v29, %v2611_v18  ;;  %2646 = vadd.xlane.f32.xlu2 %v2645_v15 }
0x1155   :  { %v2636_v36 = vmul.f32 1.442695, %v2623_v20 }
0x1156   :  { %v2617_v24 = vpop.xlane.xlu2 %2616 }
0x1157   :  { %3699 = vpow2.f32 %v2636_v36  ;;  %v2625_v21 = vsub.f32 %v2591_v3, %v2617_v24 }
0x1158   :  { %v4804_v22 = vpop.eup %3697 }
0x1159   :  { %v2640_v25 = vmul.f32 1.442695, %v2625_v21  ;;  %v2660_v59 = vsel %vm267_vm2, %v4804_v22, 0.0 }
0x115a   :  { %2661 = vadd.xlane.f32.xlu0 %v2660_v59 }
0x115b   :  { %3701 = vpow2.f32 %v2640_v25 }
0x115c   :  { %3703 = vpow2.f32 %v2626_v19 }
0x115d   :  { %v4808_v27 = vpop.eup %3699  ;;  %3705 = vpow2.f32 %v2634_v11 }
0x115e   :  { %v2811_v23 = vpop.permute.xlu2 %2810  ;;  %v2657_v32 = vsel %vm267_vm2, %v4808_v27, 0.0 }
0x115f   :  { %2831 = vmatpush.msra.mxu1 %v2811_v23  ;;  %2658 = vadd.xlane.f32.xlu2 %v2657_v32 }
0x1161   :  { %v4812_v35 = vpop.eup %3701 }
0x1162   :  { %v2663_v48 = vsel %vm267_vm2, %v4812_v35, 0.0  ;;  %v4823_v28 = vpop.eup %3703 }
0x1163   :  { %2664 = vadd.xlane.f32.xlu1 %v2663_v48  ;;  %v2642_v42 = vsel %vm267_vm2, %v4823_v28, 0.0  ;;  %v4828_v49 = vpop.eup %3705 }
0x1164   :  { %v2654_v50 = vsel %vm267_vm2, %v4828_v49, 0.0 }
0x1165   :  { %v2863_v26 = vpop.permute.xlu1 %2862  ;;  %v2837_v33 = vpop.permute.xlu0 %2836 }
0x1166   :  { %2857 = vmatpush.msra.mxu2 %v2837_v33  ;;  %2883 = vmatpush.msra.mxu3 %v2863_v26 }
0x116e   :  { %2953 = vrot.lane.b32.xlu0 %v4771_v37, %s3769_s27 }
0x1177   :  { %2927 = vrot.lane.b32.xlu2 %v4771_v37, %s3768_s26 }
0x117c   :  { %2979 = vrot.lane.b32.xlu1 %v4771_v37, %s3770_s28 }
0x1198   :  { %2643 = vadd.xlane.f32.xlu0 %v2642_v42 }
0x11a6   :  { %2655 = vadd.xlane.f32.xlu1 %v2654_v50 }
0x11b0   :  { %v2653_v37 = vpop.xlane.xlu1 %2652 }
0x11b1   :  { %3707 = vrcp.f32 %v2653_v37  ;;  %v2719_v54 = vand.u32 2147483648, %v2653_v37  ;;  %v2717_v57 = vand.u32 2147483647, %v2653_v37  ;;  %vm2713_vm12 = vweird.f32 %v2653_v37 }
0x11b3   :  { %v2720_v63 = vor.u32 1.1754944e-38, %v2719_v54  ;;  %vm2718_vm14 = vcmp.eq.f32.partialorder %v2717_v57, 8.507059e+37 }
0x11b7   :  { %v3708_v47 = vpop.eup %3707 }
0x11b8   :  { %v2709_v39 = vmul.f32 %v3708_v47, %v2653_v37  ;;  %vm2714_vm11 = vweird.f32 %v3708_v47 }
0x11b9   :  { %vm2715_vm13 = vmor %vm2713_vm12, %vm2714_vm11 }
0x11ba   :  { %v2710_v56 = vsub.f32 1.0, %v2709_v39 }
0x11bc   :  { %v2711_v53 = vmul.f32 %v3708_v47, %v2710_v56 }
0x11be   :  { %v2712_v61 = vadd.f32 %v3708_v47, %v2711_v53 }
0x11c0   :  { %v2716_v46 = vsel %vm2715_vm13, %v3708_v47, %v2712_v61 }
0x11c1   :  { %v2721_v58 = vsel %vm2718_vm14, %v2720_v63, %v2716_v46  ;;  %v2650_v0 = vpop.xlane.xlu0 %2649 }
0x11c2   :  { %3709 = vrcp.f32 %v2650_v0  ;;  %v2781_v2 = vmul.f32 %v4792_v30, %v2721_v58  ;;  %v2705_v1 = vand.u32 2147483648, %v2650_v0  ;;  %v2703_v6 = vand.u32 2147483647, %v2650_v0 }
0x11c3   :  { %vm2699_vm3 = vweird.f32 %v2650_v0 }
0x11c4   :  { %3556 = vmatmul.msk.f32.vlgmr.msra.gmra.mxu3 %vm267_vm2, %v2781_v2  ;;  %v2706_v52 = vor.u32 1.1754944e-38, %v2705_v1  ;;  %vm2704_vm5 = vcmp.eq.f32.partialorder %v2703_v6, 8.507059e+37 }
0x11c6   :  { %v2647_v29 = vpop.xlane.xlu2 %2646 }
0x11c7   :  { %3711 = vrcp.f32 %v2647_v29  ;;  %v2691_v13 = vand.u32 2147483648, %v2647_v29  ;;  %v2689_v40 = vand.u32 2147483647, %v2647_v29  ;;  %vm2685_vm7 = vweird.f32 %v2647_v29 }
0x11c8   :  { %v3710_v4 = vpop.eup %3709 }
0x11c9   :  { %v2695_v3 = vmul.f32 %v3710_v4, %v2650_v0  ;;  %vm2700_vm15 = vweird.f32 %v3710_v4  ;;  %v2692_v15 = vor.u32 1.1754944e-38, %v2691_v13  ;;  %vm2690_vm10 = vcmp.eq.f32.partialorder %v2689_v40, 8.507059e+37 }
0x11ca   :  { %vm2701_vm4 = vmor %vm2699_vm3, %vm2700_vm15 }
0x11cb   :  { %v2696_v7 = vsub.f32 1.0, %v2695_v3 }
0x11cd   :  { %v3712_v45 = vpop.eup %3711  ;;  %v2697_v31 = vmul.f32 %v3710_v4, %v2696_v7  ;;  %v2662_v8 = vpop.xlane.xlu0 %2661 }
0x11ce   :  { %v2681_v5 = vmul.f32 %v3712_v45, %v2647_v29  ;;  %3713 = vrcp.f32 %v2662_v8  ;;  %vm2686_vm6 = vweird.f32 %v3712_v45  ;;  %v2761_v59 = vand.u32 2147483648, %v2662_v8 }
0x11cf   :  { %v2698_v62 = vadd.f32 %v3710_v4, %v2697_v31  ;;  %vm2687_vm8 = vmor %vm2685_vm7, %vm2686_vm6  ;;  %v2759_v26 = vand.u32 2147483647, %v2662_v8  ;;  %vm2755_vm12 = vweird.f32 %v2662_v8 }
0x11d0   :  { %v2682_v30 = vsub.f32 1.0, %v2681_v5  ;;  %v2762_v19 = vor.u32 1.1754944e-38, %v2761_v59 }
0x11d1   :  { %v2702_v12 = vsel %vm2701_vm4, %v3710_v4, %v2698_v62  ;;  %vm2760_vm14 = vcmp.eq.f32.partialorder %v2759_v26, 8.507059e+37 }
0x11d2   :  { %v2707_v14 = vsel %vm2704_vm5, %v2706_v52, %v2702_v12  ;;  %v2683_v17 = vmul.f32 %v3712_v45, %v2682_v30  ;;  %v2659_v34 = vpop.xlane.xlu2 %2658 }
0x11d3   :  { %3715 = vrcp.f32 %v2659_v34  ;;  %v2780_v18 = vmul.f32 %v4796_v16, %v2707_v14  ;;  %v2745_v50 = vand.u32 2147483647, %v2659_v34  ;;  %v2747_v37 = vand.u32 2147483648, %v2659_v34 }
0x11d4   :  { %v3714_v51 = vpop.eup %3713  ;;  %v2684_v55 = vadd.f32 %v3712_v45, %v2683_v17  ;;  %vm2741_vm3 = vweird.f32 %v2659_v34 }
0x11d5   :  { %v2751_v20 = vmul.f32 %v3714_v51, %v2662_v8  ;;  %3555 = vmatmul.msk.f32.vlgmr.msra.gmra.mxu2 %vm267_vm2, %v2780_v18  ;;  %vm2756_vm11 = vweird.f32 %v3714_v51  ;;  %v2748_v61 = vor.u32 1.1754944e-38, %v2747_v37  ;;  %vm2746_vm5 = vcmp.eq.f32.partialorder %v2745_v50, 8.507059e+37 }
0x11d6   :  { %v2688_v36 = vsel %vm2687_vm8, %v3712_v45, %v2684_v55  ;;  %v2665_v24 = vpop.xlane.xlu1 %2664  ;;  %vm2757_vm13 = vmor %vm2755_vm12, %vm2756_vm11 }
0x11d7   :  { %v2693_v21 = vsel %vm2690_vm10, %v2692_v15, %v2688_v36  ;;  %v2752_v25 = vsub.f32 1.0, %v2751_v20  ;;  %3717 = vrcp.f32 %v2665_v24  ;;  %v2775_v29 = vand.u32 2147483648, %v2665_v24 }
0x11d8   :  { %v2779_v23 = vmul.f32 %v4800_v9, %v2693_v21  ;;  %vm2769_vm7 = vweird.f32 %v2665_v24 }
0x11d9   :  { %v3716_v32 = vpop.eup %3715  ;;  %v2753_v48 = vmul.f32 %v3714_v51, %v2752_v25  ;;  %v2776_v3 = vor.u32 1.1754944e-38, %v2775_v29 }
0x11da   :  { %v2737_v33 = vmul.f32 %v3716_v32, %v2659_v34  ;;  %3554 = vmatmul.msk.f32.vlgmr.msra.gmra.mxu1 %vm267_vm2, %v2779_v23  ;;  %v2928_v16 = vpop.permute.xlu2 %2927  ;;  %vm2742_vm15 = vweird.f32 %v3716_v32 }
0x11db   :  { %v2754_v38 = vadd.f32 %v3714_v51, %v2753_v48  ;;  %2948 = vmatpush.msrb.mxu1 %v2928_v16  ;;  %vm2743_vm4 = vmor %vm2741_vm3, %vm2742_vm15  ;;  %v3505_v16 = vld [vmem:[%s5018_s11 + $0x48] sm:$0xff] }
0x11dc   :  { %v2738_v41 = vsub.f32 1.0, %v2737_v33  ;;  %v3506_v33 = vld [vmem:[%s5018_s11 + $0x50] sm:$0xff] }
0x11dd   :  { %v3718_v42 = vpop.eup %3717  ;;  %v2758_v11 = vsel %vm2757_vm13, %v3714_v51, %v2754_v38  ;;  %v3504_v38 = vld [vmem:[%s5018_s11 + $0x40] sm:$0xff] }
0x11de   :  { %v2763_v9 = vsel %vm2760_vm14, %v2762_v19, %v2758_v11  ;;  %v2739_v47 = vmul.f32 %v3716_v32, %v2738_v41  ;;  %v2765_v39 = vmul.f32 %v3718_v42, %v2665_v24  ;;  %vm2770_vm6 = vweird.f32 %v3718_v42 }
0x11df   :  { %v2784_v56 = vmul.f32 %v4804_v22, %v2763_v9  ;;  %v2773_v22 = vand.u32 2147483647, %v2665_v24  ;;  %vm2771_vm8 = vmor %vm2769_vm7, %vm2770_vm6 }
0x11e0   :  { %v2740_v54 = vadd.f32 %v3716_v32, %v2739_v47  ;;  %v2766_v53 = vsub.f32 1.0, %v2765_v39  ;;  %v2954_v57 = vpop.permute.xlu0 %2953 }
0x11e1   :  { %2974 = vmatpush.msrb.mxu2 %v2954_v57  ;;  %vm2774_vm10 = vcmp.eq.f32.partialorder %v2773_v22, 8.507059e+37 }
0x11e2   :  { %v2744_v63 = vsel %vm2743_vm4, %v3716_v32, %v2740_v54  ;;  %v2767_v46 = vmul.f32 %v3718_v42, %v2766_v53  ;;  %3559 = vmatmul.msk.f32.vlgmr.msrb.gmra.mxu2 %vm267_vm2, %v2784_v56 }
0x11e3   :  { %v2749_v58 = vsel %vm2746_vm5, %v2748_v61, %v2744_v63  ;;  %v3020_v63 = vperm.slane %v4695_v44, 3 }
0x11e4   :  { %v2768_v0 = vadd.f32 %v3718_v42, %v2767_v46  ;;  %v2783_v2 = vmul.f32 %v4808_v27, %v2749_v58 }
0x11e6   :  { %3558 = vmatmul.msk.f32.vlgmr.msrb.gmra.mxu1 %vm267_vm2, %v2783_v2  ;;  %v2772_v4 = vsel %vm2771_vm8, %v3718_v42, %v2768_v0 }
0x11e7   :  { %v2777_v7 = vsel %vm2774_vm10, %v2776_v3, %v2772_v4 }
0x11e8   :  { %v2785_v45 = vmul.f32 %v4812_v35, %v2777_v7 }
0x11ee   :  { %v2980_v1 = vpop.permute.xlu1 %2979 }
0x11ef   :  { %3000 = vmatpush.msrb.mxu3 %v2980_v1 }
0x11f0   :  { %3560 = vmatmul.msk.f32.vlgmr.msrb.gmra.mxu3 %vm267_vm2, %v2785_v45 }
0x120b   :  { %v2644_v31 = vpop.xlane.xlu0 %2643 }
0x120c   :  { %3719 = vrcp.f32 %v2644_v31  ;;  %v2677_v5 = vand.u32 2147483648, %v2644_v31  ;;  %v2675_v52 = vand.u32 2147483647, %v2644_v31  ;;  %vm2671_vm12 = vweird.f32 %v2644_v31 }
0x120e   :  { %v2678_v13 = vor.u32 1.1754944e-38, %v2677_v5  ;;  %vm2676_vm14 = vcmp.eq.f32.partialorder %v2675_v52, 8.507059e+37  ;;  %v3510_v52 = vld [vmem:[%s5019_s12 + $0x50] sm:$0xff] }
0x1212   :  { %v3720_v6 = vpop.eup %3719 }
0x1213   :  { %v2667_v27 = vmul.f32 %v3720_v6, %v2644_v31  ;;  %vm2672_vm11 = vweird.f32 %v3720_v6 }
0x1214   :  { %vm2673_vm13 = vmor %vm2671_vm12, %vm2672_vm11 }
0x1215   :  { %v2668_v8 = vsub.f32 1.0, %v2667_v27 }
0x1217   :  { %v2669_v62 = vmul.f32 %v3720_v6, %v2668_v8 }
0x1219   :  { %v2670_v30 = vadd.f32 %v3720_v6, %v2669_v62  ;;  %v2656_v12 = vpop.xlane.xlu1 %2655 }
0x121a   :  { %3721 = vrcp.f32 %v2656_v12  ;;  %v2733_v55 = vand.u32 2147483648, %v2656_v12  ;;  %v2731_v15 = vand.u32 2147483647, %v2656_v12  ;;  %vm2727_vm3 = vweird.f32 %v2656_v12 }
0x121b   :  { %v2674_v14 = vsel %vm2673_vm13, %v3720_v6, %v2670_v30  ;;  %v3509_v30 = vld [vmem:[%s5019_s12 + $0x48] sm:$0xff] }
0x121c   :  { %v2679_v35 = vsel %vm2676_vm14, %v2678_v13, %v2674_v14  ;;  %v2734_v36 = vor.u32 1.1754944e-38, %v2733_v55  ;;  %vm2732_vm5 = vcmp.eq.f32.partialorder %v2731_v15, 8.507059e+37  ;;  %v3096_v15 = vperm.slane %v4695_v44, 4 }
0x121d   :  { %v2778_v17 = vmul.f32 %v4823_v28, %v2679_v35 }
0x121f   :  { %3553 = vmatmul.msk.f32.vlgmr.msrb.gmra.mxu0 %vm267_vm2, %v2778_v17 }
0x1220   :  { %v3722_v40 = vpop.eup %3721 }
0x1221   :  { %v2723_v34 = vmul.f32 %v3722_v40, %v2656_v12  ;;  %vm2728_vm15 = vweird.f32 %v3722_v40  ;;  %v3508_v12 = vld [vmem:[%s5019_s12 + $0x40] sm:$0xff] }
0x1222   :  { %vm2729_vm4 = vmor %vm2727_vm3, %vm2728_vm15 }
0x1223   :  { %v2724_v51 = vsub.f32 1.0, %v2723_v34 }
0x1225   :  { %v2725_v18 = vmul.f32 %v3722_v40, %v2724_v51 }
0x1227   :  { %v2726_v20 = vadd.f32 %v3722_v40, %v2725_v18 }
0x1229   :  { %v2730_v24 = vsel %vm2729_vm4, %v3722_v40, %v2726_v20 }
0x122a   :  { %v2735_v21 = vsel %vm2732_vm5, %v2734_v36, %v2730_v24  ;;  %v3099_v24 = vperm.slane %v4695_v44, 5 }
0x122b   :  { %v2782_v25 = vmul.f32 %v4828_v49, %v2735_v21  ;;  %v3507_v49 = vld [vmem:[%s5018_s11 + $0x58] sm:$0xff] }
0x122c   :  { %3039 = vmatpush.msrb.mxu0 %v3507_v49 }
0x122d   :  { %3557 = vmatmul.msk.f32.vlgmr.msra.gmra.mxu0 %vm267_vm2, %v2782_v25 }
0x122e   :  { %3040 = vmatpush.msrb.mxu0 %v3506_v33 }
0x1230   :  { %3041 = vmatpush.msrb.mxu0 %v3505_v16 }
0x1232   :  { %3042 = vmatpush.msrb.mxu0 %v3504_v38 }
0x1247   :  { %v2885_v32 = vpop.f32.mrf.mxu3 }
0x1257   :  { %v2833_v28 = vpop.f32.mrf.mxu1 }
0x1258   :  { %2889 = vrot.lane.b32.xlu2 %v2833_v28, %s3773_s2  ;;  %v2859_v59 = vpop.f32.mrf.mxu2 }
0x1260   :  { %2893 = vrot.lane.b32.xlu2 %v2859_v59, %s3772_s22 }
0x1263   :  { %v2950_v23 = vpop.f32.mrf.mxu1 }
0x1265   :  { %v2976_v26 = vpop.f32.mrf.mxu2 }
0x1268   :  { %3006 = vrot.lane.b32.xlu2 %v2950_v23, %s3773_s2 }
0x1270   :  { %2897 = vrot.lane.b32.xlu2 %v2885_v32, %s3771_s21 }
0x1273   :  { %v3002_v48 = vpop.f32.mrf.mxu3 }
0x1274   :  { %3014 = vrot.lane.b32.xlu0 %v3002_v48, %s3771_s21  ;;  %s3775_s21 = smov [#allocation2]  }
0x1275   :  { %s3361_s11 = sshll.u32 %s3775_s21, 4  ;;  %s3362_s11 = int_to_ptr.vmem [resolvable:$true] %s3361_s11 }
0x1278   :  { %3010 = vrot.lane.b32.xlu2 %v2976_v26, %s3772_s22  ;;  %s3776_s22 = smov 128  }
0x129c   :  { %v2806_v11 = vpop.f32.mrf.mxu0 }
0x12aa   :  { %v2923_v56 = vpop.f32.mrf.mxu0 }
0x12b2   :  { %v2890_v19 = vpop.permute.xlu2 %2889 }
0x12b3   :  { %v2900_v50 = vsel %vm267_vm2, %v2806_v11, %v2890_v19  ;;  %v3526_v11 = vld [vmem:[%s5020_s13 + $0x170] sm:$0xff] }
0x12ba   :  { %v2894_v41 = vpop.permute.xlu2 %2893 }
0x12bb   :  { %v2901_v37 = vsel %vm78_vm0, %v2900_v50, %v2894_v41  ;;  %v3597_v50 = vld [vmem:[%s5022_s15 + $0x2] ss:$0 sm:$0xff] }
0x12c2   :  { %v3007_v42 = vpop.permute.xlu2 %3006 }
0x12c3   :  { %v3017_v54 = vsel %vm267_vm2, %v2923_v56, %v3007_v42  ;;  %v3527_v42 = vld [vmem:[%s5020_s13 + $0x178] sm:$0xff] }
0x12c4   :  { %3223 = vmatpush.msra.mxu2 %v3527_v42  ;;  %v3523_v56 = vld [vmem:[%s5020_s13 + $0x158] sm:$0xff] }
0x12c6   :  { %3224 = vmatpush.msra.mxu2 %v3526_v11 }
0x12ca   :  { %v2898_v9 = vpop.permute.xlu2 %2897 }
0x12cb   :  { %v2902_v47 = vsel %vm796_vm9, %v2901_v37, %v2898_v9  ;;  %v3525_v37 = vld [vmem:[%s5020_s13 + $0x168] sm:$0xff] }
0x12cc   :  { %3561 = vmatmul.msk.f32.vlgmr.msrb.gmra.mxu0 %vm183_vm1, %v2902_v47  ;;  %3225 = vmatpush.msra.mxu2 %v3525_v37  ;;  %v3524_v47 = vld [vmem:[%s5020_s13 + $0x160] sm:$0xff] }
0x12ce   :  { %3226 = vmatpush.msra.mxu2 %v3524_v47 }
0x12d0   :  { %3227 = vmatpush.msra.mxu2 %v3523_v56 }
0x12d2   :  { %v3011_v39 = vpop.permute.xlu2 %3010 }
0x12d3   :  { %v3018_v53 = vsel %vm78_vm0, %v3017_v54, %v3011_v39 }
0x12e6   :  { %v3015_v57 = vpop.permute.xlu0 %3014 }
0x12e7   :  { %v3019_v61 = vsel %vm796_vm9, %v3018_v53, %v3015_v57  ;;  %v3522_v53 = vld [vmem:[%s5020_s13 + $0x150] sm:$0xff] }
0x12e8   :  { %3562 = vmatmul.msk.f32.gmra.mxu0 %vm183_vm1, %v3019_v61  ;;  %3228 = vmatpush.msra.mxu2 %v3522_v53  ;;  %v3521_v61 = vld [vmem:[%s5020_s13 + $0x148] sm:$0xff] }
0x12ea   :  { %3229 = vmatpush.msra.mxu2 %v3521_v61 }
0x1349   :  { %v3044_v46 = vpop.f32.mrf.mxu0 }
0x134a   :  { %v3045_v58 = vadd.f32 %v3044_v46, %v3020_v63  ;;  %v3520_v46 = vld [vmem:[%s5020_s13 + $0x140] sm:$0xff] }
0x134b   :  { %3230 = vmatpush.msra.mxu2 %v3520_v46 }
0x134c   :  { %v3050_v0 = vadd.f32 %v3045_v58, %v4359_v60 }
0x134e   :  { %v3052_v2 = vsel %vm183_vm1, %v3050_v0, 0.0 }
0x134f   :  { %3053 = vadd.xlane.f32.xlu2 %v3052_v2  ;;  %v3519_v2 = vld [vmem:[%s5020_s13 + $0x138] sm:$0xff] }
0x1350   :  { %3231 = vmatpush.msra.mxu2 %v3519_v2 }
0x1365   :  { %v3047_v29 = vpop.f32.mrf.mxu0 }
0x1366   :  { %v3048_v22 = vadd.f32 %v3047_v29, %v3020_v63 }
0x1368   :  { %v3051_v4 = vadd.f32 %v3048_v22, %v4365_v10  ;;  %v3511_v10 = vld [vmem:[%s5019_s12 + $0x58] sm:$0xff] }
0x1369   :  { %3123 = vmatpush.msra.mxu1 %v3511_v10 }
0x136a   :  { %v3055_v3 = vsel %vm183_vm1, %v3051_v4, 0.0 }
0x136b   :  { %3056 = vadd.xlane.f32.xlu1 %v3055_v3  ;;  %3124 = vmatpush.msra.mxu1 %v3510_v52  ;;  %v3513_v52 = vld [vmem:[%s5020_s13 + $0x108] sm:$0xff] }
0x136d   :  { %3125 = vmatpush.msra.mxu1 %v3509_v30 }
0x136f   :  { %3126 = vmatpush.msra.mxu1 %v3508_v12 }
0x13c2   :  { %v3054_v7 = vpop.xlane.xlu2 %3053 }
0x13c3   :  { %v3058_v1 = vmul.f32 %v3054_v7, %v4206_v43 }
0x13c5   :  { %v3060_v45 = vsub.f32 %v3050_v0, %v3058_v1  ;;  %v3517_v1 = vld [vmem:[%s5020_s13 + $0x128] sm:$0xff] }
0x13c7   :  { %v3062_v31 = vmul.f32 %v3060_v45, %v3060_v45 }
0x13c9   :  { %v3064_v6 = vsel %vm183_vm1, %v3062_v31, 0.0 }
0x13ca   :  { %3065 = vadd.xlane.f32.xlu1 %v3064_v6  ;;  %v3516_v6 = vld [vmem:[%s5020_s13 + $0x120] sm:$0xff] }
0x13de   :  { %v3057_v27 = vpop.xlane.xlu1 %3056 }
0x13df   :  { %v3059_v60 = vmul.f32 %v3057_v27, %v4206_v43 }
0x13e1   :  { %v3061_v8 = vsub.f32 %v3051_v4, %v3059_v60  ;;  %v3518_v4 = vld [vmem:[%s5020_s13 + $0x130] sm:$0xff]  ;;  %v3515_v60 = vld [vmem:[%s5020_s13 + $0x118] sm:$0xff] }
0x13e2   :  { %3232 = vmatpush.msra.mxu2 %v3518_v4 }
0x13e3   :  { %v3063_v5 = vmul.f32 %v3061_v8, %v3061_v8 }
0x13e4   :  { %3233 = vmatpush.msra.mxu2 %v3517_v1 }
0x13e5   :  { %v3067_v62 = vsel %vm183_vm1, %v3063_v5, 0.0 }
0x13e6   :  { %3068 = vadd.xlane.f32.xlu0 %v3067_v62  ;;  %3234 = vmatpush.msra.mxu2 %v3516_v6  ;;  %v3514_v62 = vld [vmem:[%s5020_s13 + $0x110] sm:$0xff] }
0x13e8   :  { %3235 = vmatpush.msra.mxu2 %v3515_v60 }
0x13ea   :  { %3236 = vmatpush.msra.mxu2 %v3514_v62 }
0x13ec   :  { %3237 = vmatpush.msra.mxu2 %v3513_v52 }
0x143d   :  { %v3066_v13 = vpop.xlane.xlu1 %3065 }
0x143e   :  { %v3070_v14 = vmul.f32 %v3066_v13, %v4206_v43  ;;  %v3512_v13 = vld [vmem:[%s5020_s13 + $0x100] sm:$0xff] }
0x143f   :  { %3238 = vmatpush.msra.mxu2 %v3512_v13 }
0x1440   :  { %v3072_v35 = vadd.f32 1e-05, %v3070_v14 }
0x1442   :  { %3723 = vrsqrt.f32 %v3072_v35  ;;  %vm3080_vm2 = vweird.f32 %v3072_v35 }
0x1448   :  { %v3724_v17 = vpop.eup %3723 }
0x1449   :  { %v3075_v40 = vmul.f32 %v3724_v17, %v3072_v35  ;;  %vm3081_vm0 = vweird.f32 %v3724_v17 }
0x144a   :  { %vm3082_vm9 = vmor %vm3080_vm2, %vm3081_vm0 }
0x144b   :  { %v3076_v34 = vmul.f32 %v3724_v17, %v3075_v40 }
0x144d   :  { %v3077_v51 = vmul.f32 0.5, %v3076_v34 }
0x144f   :  { %v3078_v55 = vsub.f32 1.5, %v3077_v51 }
0x1451   :  { %v3079_v18 = vmul.f32 %v3724_v17, %v3078_v55 }
0x1453   :  { %v3083_v20 = vsel %vm3082_vm9, %v3724_v17, %v3079_v18 }
0x1454   :  { %v3094_v36 = vmul.f32 %v3083_v20, %v3060_v45 }
0x1456   :  { %v3097_v21 = vmul.f32 %v3096_v15, %v3094_v36 }
0x1458   :  { %v4898_v25 = vadd.f32 %v3099_v24, %v3097_v21 }
0x1459   :  { %v3069_v28 = vpop.xlane.xlu0 %3068 }
0x145a   :  { %v3071_v59 = vmul.f32 %v3069_v28, %v4206_v43  ;;  %3563 = vmatmul.msk.f32.vlgmr.msra.gmra.mxu1 %vm183_vm1, %v4898_v25 }
0x145c   :  { %v3073_v23 = vadd.f32 1e-05, %v3071_v59 }
0x145e   :  { %3725 = vrsqrt.f32 %v3073_v23  ;;  %vm3090_vm7 = vweird.f32 %v3073_v23 }
0x1464   :  { %v3726_v32 = vpop.eup %3725 }
0x1465   :  { %v3085_v48 = vmul.f32 %v3726_v32, %v3073_v23  ;;  %vm3091_vm6 = vweird.f32 %v3726_v32 }
0x1466   :  { %vm3092_vm8 = vmor %vm3090_vm7, %vm3091_vm6 }
0x1467   :  { %v3086_v26 = vmul.f32 %v3726_v32, %v3085_v48 }
0x1469   :  { %v3087_v49 = vmul.f32 0.5, %v3086_v26 }
0x146b   :  { %v3088_v33 = vsub.f32 1.5, %v3087_v49 }
0x146d   :  { %v3089_v16 = vmul.f32 %v3726_v32, %v3088_v33 }
0x146f   :  { %v3093_v44 = vsel %vm3092_vm8, %v3726_v32, %v3089_v16 }
0x1470   :  { %v3095_v38 = vmul.f32 %v3093_v44, %v3061_v8 }
0x1472   :  { %v3098_v19 = vmul.f32 %v3096_v15, %v3095_v38 }
0x1474   :  { %v4903_v41 = vadd.f32 %v3099_v24, %v3098_v19 }
0x1476   :  { %3564 = vmatmul.msk.f32.gmra.mxu1 %vm183_vm1, %v4903_v41 }
0x14d7   :  { %v3128_v9 = vpop.f32.mrf.mxu1 }
0x14d8   :  { %v4922_v39 = vadd.f32 %v3597_v50, %v3128_v9 }
0x14da   :  { %v4928_v54 = vmul.f32 0.70710677, %v4922_v39 }
0x14dc   :  { %v3138_v57 = vmul.f32 %v4928_v54, %v4928_v54 }
0x14de   :  { %v3139_v63 = vmin.f32 %v3138_v57, 16.0 }
0x14e0   :  { %v3140_v58 = vmul.f32 2.1237322e-06, %v3139_v63  ;;  %v3151_v0 = vmul.f32 3.8918573e-05, %v3139_v63 }
0x14e2   :  { %v3141_v29 = vadd.f32 0.00028619796, %v3140_v58  ;;  %v3152_v22 = vadd.f32 0.001143296, %v3151_v0 }
0x14e4   :  { %v3142_v3 = vmul.f32 %v3141_v29, %v3139_v63  ;;  %v3153_v7 = vmul.f32 %v3152_v22, %v3139_v63 }
0x14e6   :  { %v3143_v45 = vadd.f32 0.0036580483, %v3142_v3  ;;  %v3154_v31 = vadd.f32 0.014752088, %v3153_v7 }
0x14e8   :  { %v3155_v27 = vmul.f32 %v3154_v31, %v3139_v63  ;;  %v3144_v8 = vmul.f32 %v3143_v45, %v3139_v63 }
0x14ea   :  { %v3156_v5 = vadd.f32 0.112945676, %v3155_v27  ;;  %v3145_v30 = vadd.f32 0.05243302, %v3144_v8 }
0x14ec   :  { %v3157_v10 = vmul.f32 %v3156_v5, %v3139_v63  ;;  %v3146_v35 = vmul.f32 %v3145_v30, %v3139_v63 }
0x14ee   :  { %v3158_v12 = vadd.f32 0.4994258, %v3157_v10  ;;  %v3147_v51 = vadd.f32 0.18741608, %v3146_v35 }
0x14f0   :  { %v3159_v14 = vmul.f32 %v3158_v12, %v3139_v63  ;;  %v3148_v20 = vmul.f32 %v3147_v51, %v3139_v63  ;;  %v3134_v63 = vmul.f32 0.5, %v4922_v39 }
0x14f2   :  { %v3160_v17 = vadd.f32 1.0, %v3159_v14  ;;  %v3149_v23 = vadd.f32 1.1283791, %v3148_v20 }
0x14f3   :  { %v3131_v40 = vpop.f32.mrf.mxu1 }
0x14f4   :  { %3727 = vrcp.f32 %v3160_v17  ;;  %v4965_v34 = vadd.f32 %v3597_v50, %v3131_v40  ;;  %v3170_v32 = vand.u32 2147483647, %v3160_v17  ;;  %v3172_v48 = vand.u32 2147483648, %v3160_v17 }
0x14f5   :  { %vm3166_vm11 = vweird.f32 %v3160_v17  ;;  %v3150_v42 = vmul.f32 %v3149_v23, %v4928_v54 }
0x14f6   :  { %v3137_v55 = vmul.f32 0.70710677, %v4965_v34  ;;  %v3173_v19 = vor.u32 1.1754944e-38, %v3172_v48  ;;  %vm3171_vm13 = vcmp.eq.f32.partialorder %v3170_v32, 8.507059e+37  ;;  %v3135_v13 = vmul.f32 0.5, %v4965_v34 }
0x14f8   :  { %v3178_v18 = vmul.f32 %v3137_v55, %v3137_v55 }
0x14fa   :  { %v3728_v15 = vpop.eup %3727  ;;  %v3179_v24 = vmin.f32 %v3178_v18, 16.0 }
0x14fb   :  { %v3162_v36 = vmul.f32 %v3728_v15, %v3160_v17  ;;  %vm3167_vm10 = vweird.f32 %v3728_v15  ;;  %v3741_v17 = vld [vmem:[%s5021_s14 + $0x20] sm:$0xff] }
0x14fc   :  { %v3180_v28 = vmul.f32 2.1237322e-06, %v3179_v24  ;;  %v3191_v59 = vmul.f32 3.8918573e-05, %v3179_v24  ;;  %vm3168_vm12 = vmor %vm3166_vm11, %vm3167_vm10  ;;  %v3222_v40 = vperm.slane %v3741_v17, 6 }
0x14fd   :  { %v3163_v21 = vsub.f32 1.0, %v3162_v36 }
0x14fe   :  { %v3181_v49 = vadd.f32 0.00028619796, %v3180_v28  ;;  %v3192_v33 = vadd.f32 0.001143296, %v3191_v59 }
0x14ff   :  { %v3164_v26 = vmul.f32 %v3728_v15, %v3163_v21 }
0x1500   :  { %v3182_v44 = vmul.f32 %v3181_v49, %v3179_v24  ;;  %v3193_v38 = vmul.f32 %v3192_v33, %v3179_v24 }
0x1501   :  { %v3165_v16 = vadd.f32 %v3728_v15, %v3164_v26 }
0x1502   :  { %v3194_v50 = vadd.f32 0.014752088, %v3193_v38  ;;  %v3183_v9 = vadd.f32 0.0036580483, %v3182_v44 }
0x1503   :  { %v3169_v11 = vsel %vm3168_vm12, %v3728_v15, %v3165_v16 }
0x1504   :  { %v3174_v37 = vsel %vm3171_vm13, %v3173_v19, %v3169_v11  ;;  %v3195_v56 = vmul.f32 %v3194_v50, %v3179_v24  ;;  %v3184_v61 = vmul.f32 %v3183_v9, %v3179_v24  ;;  %v3292_v9 = vperm.slane %v3741_v17, 7 }
0x1505   :  { %v3175_v47 = vmul.f32 %v3174_v37, %v3150_v42 }
0x1506   :  { %v3196_v57 = vadd.f32 0.112945676, %v3195_v56  ;;  %v3185_v29 = vadd.f32 0.05243302, %v3184_v61 }
0x1507   :  { %v3565_v53 = vclamps-f32 %v3175_v47, 1.0 }
0x1508   :  { %v3197_v58 = vmul.f32 %v3196_v57, %v3179_v24  ;;  %v3186_v4 = vmul.f32 %v3185_v29, %v3179_v24 }
0x1509   :  { %v3218_v46 = vadd.f32 1.0, %v3565_v53  ;;  %v3598_v53 = vld [vmem:[%s5021_s14 + $0x28] ss:$0 sm:$0xff] }
0x150a   :  { %v3198_v2 = vadd.f32 0.4994258, %v3197_v58  ;;  %v3187_v3 = vadd.f32 0.18741608, %v3186_v4 }
0x150b   :  { %v3220_v0 = vmul.f32 %v3218_v46, %v3134_v63 }
0x150c   :  { %v3199_v22 = vmul.f32 %v3198_v2, %v3179_v24  ;;  %v3188_v1 = vmul.f32 %v3187_v3, %v3179_v24 }
0x150d   :  { %3239 = vmatmul.f32.vlgmr.msra.gmra.mxu2 %v3220_v0 }
0x150e   :  { %v3200_v54 = vadd.f32 1.0, %v3199_v22  ;;  %v3189_v27 = vadd.f32 1.1283791, %v3188_v1 }
0x1510   :  { %3729 = vrcp.f32 %v3200_v54  ;;  %v3212_v6 = vand.u32 2147483648, %v3200_v54  ;;  %v3210_v39 = vand.u32 2147483647, %v3200_v54  ;;  %vm3206_vm15 = vweird.f32 %v3200_v54 }
0x1511   :  { %v3190_v62 = vmul.f32 %v3189_v27, %v3137_v55 }
0x1512   :  { %v3213_v5 = vor.u32 1.1754944e-38, %v3212_v6  ;;  %vm3211_vm4 = vcmp.eq.f32.partialorder %v3210_v39, 8.507059e+37 }
0x1516   :  { %v3730_v7 = vpop.eup %3729 }
0x1517   :  { %v3202_v45 = vmul.f32 %v3730_v7, %v3200_v54  ;;  %vm3207_vm14 = vweird.f32 %v3730_v7 }
0x1518   :  { %vm3208_vm3 = vmor %vm3206_vm15, %vm3207_vm14 }
0x1519   :  { %v3203_v31 = vsub.f32 1.0, %v3202_v45 }
0x151b   :  { %v3204_v60 = vmul.f32 %v3730_v7, %v3203_v31 }
0x151d   :  { %v3205_v8 = vadd.f32 %v3730_v7, %v3204_v60 }
0x151f   :  { %v3209_v10 = vsel %vm3208_vm3, %v3730_v7, %v3205_v8 }
0x1520   :  { %v3214_v52 = vsel %vm3211_vm4, %v3213_v5, %v3209_v10 }
0x1521   :  { %v3215_v30 = vmul.f32 %v3214_v52, %v3190_v62 }
0x1523   :  { %v3566_v12 = vclamps-f32 %v3215_v30, 1.0 }
0x1525   :  { %v3219_v14 = vadd.f32 1.0, %v3566_v12 }
0x1527   :  { %v3221_v35 = vmul.f32 %v3219_v14, %v3135_v13 }
0x1529   :  { %3242 = vmatmul.f32.gmra.mxu2 %v3221_v35 }
0x1590   :  { %v3240_v51 = vpop.f32.mrf.mxu2 }
0x1591   :  { %v3241_v18 = vadd.f32 %v3240_v51, %v3222_v40 }
0x1593   :  { %v3246_v15 = vadd.f32 %v3241_v18, %v4898_v25 }
0x1595   :  { %v3248_v55 = vsel %vm183_vm1, %v3246_v15, 0.0 }
0x1596   :  { %3249 = vadd.xlane.f32.xlu1 %v3248_v55 }
0x15ac   :  { %v3243_v20 = vpop.f32.mrf.mxu2 }
0x15ad   :  { %v3244_v36 = vadd.f32 %v3243_v20, %v3222_v40  ;;  %v3599_v20 = vld [vmem:[%s5023_s16] ss:$0 sm:$0xff] }
0x15af   :  { %v3247_v24 = vadd.f32 %v3244_v36, %v4903_v41 }
0x15b1   :  { %v3251_v34 = vsel %vm183_vm1, %v3247_v24, 0.0 }
0x15b2   :  { %3252 = vadd.xlane.f32.xlu1 %v3251_v34  ;;  %v3600_v34 = vld [vmem:[%s5024_s17] ss:$0 sm:$0xff] }
0x1609   :  { %v3250_v21 = vpop.xlane.xlu1 %3249 }
0x160a   :  { %v3254_v28 = vmul.f32 %v3250_v21, %v4206_v43 }
0x160c   :  { %v3256_v59 = vsub.f32 %v3246_v15, %v3254_v28 }
0x160e   :  { %v3258_v23 = vmul.f32 %v3256_v59, %v3256_v59 }
0x1610   :  { %v3260_v32 = vsel %vm183_vm1, %v3258_v23, 0.0 }
0x1611   :  { %3261 = vadd.xlane.f32.xlu1 %v3260_v32 }
0x1625   :  { %v3253_v48 = vpop.xlane.xlu1 %3252 }
0x1626   :  { %v3255_v25 = vmul.f32 %v3253_v48, %v4206_v43 }
0x1628   :  { %v3257_v26 = vsub.f32 %v3247_v24, %v3255_v25 }
0x162a   :  { %v3259_v49 = vmul.f32 %v3257_v26, %v3257_v26 }
0x162c   :  { %v3263_v33 = vsel %vm183_vm1, %v3259_v49, 0.0 }
0x162d   :  { %3264 = vadd.xlane.f32.xlu2 %v3263_v33 }
0x1684   :  { %v3262_v41 = vpop.xlane.xlu1 %3261 }
0x1685   :  { %v3266_v16 = vmul.f32 %v3262_v41, %v4206_v43 }
0x1687   :  { %v3268_v44 = vadd.f32 1e-05, %v3266_v16 }
0x1689   :  { %3731 = vrsqrt.f32 %v3268_v44  ;;  %vm3276_vm0 = vweird.f32 %v3268_v44 }
0x168f   :  { %v3732_v38 = vpop.eup %3731 }
0x1690   :  { %v3271_v19 = vmul.f32 %v3732_v38, %v3268_v44  ;;  %vm3277_vm5 = vweird.f32 %v3732_v38 }
0x1691   :  { %vm3278_vm2 = vmor %vm3276_vm0, %vm3277_vm5 }
0x1692   :  { %v3272_v42 = vmul.f32 %v3732_v38, %v3271_v19 }
0x1694   :  { %v3273_v11 = vmul.f32 0.5, %v3272_v42 }
0x1696   :  { %v3274_v50 = vsub.f32 1.5, %v3273_v11 }
0x1698   :  { %v3275_v37 = vmul.f32 %v3732_v38, %v3274_v50 }
0x169a   :  { %v3279_v47 = vsel %vm3278_vm2, %v3732_v38, %v3275_v37 }
0x169b   :  { %v3290_v56 = vmul.f32 %v3279_v47, %v3256_v59 }
0x169d   :  { %v3293_v57 = vmul.f32 %v3292_v9, %v3290_v56 }
0x169f   :  { %v3296_v61 = vadd.f32 %v3598_v53, %v3293_v57 }
0x16a0   :  { %v3265_v63 = vpop.xlane.xlu2 %3264 }
0x16a1   :  { %v3300_v46 = vsel %vm183_vm1, %v3296_v61, 0.0  ;;  %v3267_v58 = vmul.f32 %v3265_v63, %v4206_v43 }
0x16a2   :  { %3301 = vadd.xlane.f32.xlu1 %v3300_v46 }
0x16a3   :  { %v3269_v0 = vadd.f32 1e-05, %v3267_v58 }
0x16a5   :  { %3733 = vrsqrt.f32 %v3269_v0  ;;  %vm3286_vm6 = vweird.f32 %v3269_v0 }
0x16ab   :  { %v3734_v2 = vpop.eup %3733 }
0x16ac   :  { %v3281_v29 = vmul.f32 %v3734_v2, %v3269_v0  ;;  %vm3287_vm9 = vweird.f32 %v3734_v2 }
0x16ad   :  { %vm3288_vm7 = vmor %vm3286_vm6, %vm3287_vm9 }
0x16ae   :  { %v3282_v22 = vmul.f32 %v3734_v2, %v3281_v29 }
0x16b0   :  { %v3283_v54 = vmul.f32 0.5, %v3282_v22 }
0x16b2   :  { %v3284_v4 = vsub.f32 1.5, %v3283_v54 }
0x16b4   :  { %v3285_v3 = vmul.f32 %v3734_v2, %v3284_v4 }
0x16b6   :  { %v3289_v7 = vsel %vm3288_vm7, %v3734_v2, %v3285_v3 }
0x16b7   :  { %v3291_v1 = vmul.f32 %v3289_v7, %v3257_v26 }
0x16b9   :  { %v3294_v45 = vmul.f32 %v3292_v9, %v3291_v1 }
0x16bb   :  { %v3297_v31 = vadd.f32 %v3598_v53, %v3294_v45 }
0x16bd   :  { %v3303_v6 = vsel %vm183_vm1, %v3297_v31, 0.0 }
0x16be   :  { %3304 = vadd.xlane.f32.xlu2 %v3303_v6 }
0x1715   :  { %v3302_v27 = vpop.xlane.xlu1 %3301 }
0x1716   :  { %v3306_v60 = vmul.f32 %v3302_v27, %v4206_v43 }
0x1718   :  { %v3308_v39 = vsub.f32 %v3296_v61, %v3306_v60 }
0x171a   :  { %v3310_v8 = vmul.f32 %v3308_v39, %v3308_v39 }
0x171c   :  { %v3312_v5 = vsel %vm183_vm1, %v3310_v8, 0.0 }
0x171d   :  { %3313 = vadd.xlane.f32.xlu1 %v3312_v5 }
0x1731   :  { %v3305_v62 = vpop.xlane.xlu2 %3304 }
0x1732   :  { %v3307_v10 = vmul.f32 %v3305_v62, %v4206_v43 }
0x1734   :  { %v3309_v52 = vsub.f32 %v3297_v31, %v3307_v10 }
0x1736   :  { %v3311_v30 = vmul.f32 %v3309_v52, %v3309_v52 }
0x1738   :  { %v3315_v12 = vsel %vm183_vm1, %v3311_v30, 0.0 }
0x1739   :  { %3316 = vadd.xlane.f32.xlu0 %v3315_v12 }
0x1790   :  { %v3314_v13 = vpop.xlane.xlu1 %3313 }
0x1791   :  { %v3318_v14 = vmul.f32 %v3314_v13, %v4206_v43 }
0x1793   :  { %v3320_v35 = vadd.f32 1e-05, %v3318_v14 }
0x1795   :  { %3735 = vrsqrt.f32 %v3320_v35  ;;  %vm3328_vm10 = vweird.f32 %v3320_v35 }
0x179b   :  { %v3736_v17 = vpop.eup %3735 }
0x179c   :  { %v3323_v40 = vmul.f32 %v3736_v17, %v3320_v35  ;;  %vm3329_vm8 = vweird.f32 %v3736_v17 }
0x179d   :  { %vm3330_vm11 = vmor %vm3328_vm10, %vm3329_vm8 }
0x179e   :  { %v3324_v51 = vmul.f32 %v3736_v17, %v3323_v40 }
0x17a0   :  { %v3325_v18 = vmul.f32 0.5, %v3324_v51 }
0x17a2   :  { %v3326_v15 = vsub.f32 1.5, %v3325_v18 }
0x17a4   :  { %v3327_v55 = vmul.f32 %v3736_v17, %v3326_v15 }
0x17a6   :  { %v3331_v36 = vsel %vm3330_vm11, %v3736_v17, %v3327_v55 }
0x17a7   :  { %v3342_v24 = vmul.f32 %v3331_v36, %v3308_v39 }
0x17a9   :  { %v3347_v21 = vmul.f32 %v3599_v20, %v3342_v24 }
0x17ab   :  { %v3352_v28 = vadd.f32 %v3600_v34, %v3347_v21 }
0x17ac   :  { %v3317_v59 = vpop.xlane.xlu0 %3316 }
0x17ad   :  { %3354 = vst.msk [vmem:[#allocation2] sm:$0xff] %vm183_vm1, %v3352_v28  ;;  %v3319_v23 = vmul.f32 %v3317_v59, %v4206_v43 }
0x17af   :  { %v3321_v32 = vadd.f32 1e-05, %v3319_v23 }
0x17b1   :  { %3737 = vrsqrt.f32 %v3321_v32  ;;  %vm3338_vm13 = vweird.f32 %v3321_v32 }
0x17b7   :  { %v3738_v48 = vpop.eup %3737 }
0x17b8   :  { %v3333_v25 = vmul.f32 %v3738_v48, %v3321_v32  ;;  %vm3339_vm12 = vweird.f32 %v3738_v48 }
0x17b9   :  { %vm3340_vm14 = vmor %vm3338_vm13, %vm3339_vm12 }
0x17ba   :  { %v3334_v26 = vmul.f32 %v3738_v48, %v3333_v25 }
0x17bc   :  { %v3335_v49 = vmul.f32 0.5, %v3334_v26 }
0x17be   :  { %v3336_v33 = vsub.f32 1.5, %v3335_v49 }
0x17c0   :  { %v3337_v41 = vmul.f32 %v3738_v48, %v3336_v33 }
0x17c2   :  { %v3341_v16 = vsel %vm3340_vm14, %v3738_v48, %v3337_v41 }
0x17c3   :  { %v3343_v44 = vmul.f32 %v3341_v16, %v3309_v52 }
0x17c5   :  { %v3348_v43 = vmul.f32 %v3599_v20, %v3343_v44 }
0x17c7   :  { %v3353_v38 = vadd.f32 %v3600_v34, %v3348_v43 }
0x17c9   :  { %3356 = vst.msk [vmem:[#allocation2 + $0x8] sm:$0xff] %vm183_vm1, %v3353_v38 }
0x17ca   :  { %3369 = dma.vmem_to_hbm [thread:$0]  %s3362_s11, 256, %s3364_s0, [#allocation3], %s3776_s22, %s3776_s22, %s3773_s2  }
0x17cb   :  { %3766 = dma.done.wait [#allocation3], 256  }
0x17cc   :  { %3767 = vsyncadd [#allocation3], 4294967040 }
0x17cd   :  { %3374 = vsyncpa [#allocation3], 1 }

</bundles_post_ra>
